<compile_context>
chip_gen: v7x
topology: tpu7x:2x2x1
jax: 0.10.0
libtpu: 0.0.40
codegen_flags: <defaults>
</compile_context>

<pallas_src>
import functools

import jax
import jax.numpy as jnp
from jax import lax
from jax.experimental import pallas as pl
from jax.experimental.pallas import tpu as pltpu

# ----------------------------- config (small, synthetic) -----------------------------
B = 2               # batch
C = 3               # image channels
IMG = 16            # image H == W
PATCH = 4           # patch size -> 16 patches, seq = 17 with CLS
HIDDEN = 128        # CLIP vision hidden (1152 in the real model) -- lane-dense toy value
CLIP_LAYERS = 2     # CLIP encoder depth (scaled down)
CLIP_HEADS = 4
CLIP_MLP = 256      # CLIP MLP intermediate (scaled down)
DIM = 128           # Resampler dim       (1152 real)
DEPTH = 2           # Resampler depth     (4 real)
DIM_HEAD = 32       # Resampler dim_head  (64 real)
HEADS = 4           # Resampler heads     (12 real)
NUM_QUERIES = 16    # Resampler queries   (16 real)
OUTPUT_DIM = 128    # Resampler output_dim (1152 real)
FF_MULT = 4
VIDEO_LENGTH = 17   # video_proj_model latent multiplier (initialized, image path used)

GH = IMG // PATCH
NUM_PATCHES = GH * GH
SEQ = NUM_PATCHES + 1
CPP = C * PATCH * PATCH
INNER = DIM_HEAD * HEADS
FF_DIM = DIM * FF_MULT
PVEC_W_CLIP = 3 * HIDDEN           # packed per-layer vector slab width (>= CLIP_MLP)
PVEC_W_RES = DIM
GPARAM_W = max(DIM, OUTPUT_DIM)

assert PVEC_W_CLIP >= CLIP_MLP

F32 = jnp.float32
BF16 = jnp.bfloat16


# ----------------------------- in-kernel helpers -----------------------------
def _ln(x, g, b, eps=1e-5):
    """Row-wise LayerNorm in f32 (VPU/EUP path)."""
    x = x.astype(F32)
    mu = jnp.mean(x, axis=-1, keepdims=True)
    xc = x - mu
    var = jnp.mean(xc * xc, axis=-1, keepdims=True)
    return xc * lax.rsqrt(var + eps) * g + b


def _mm(a, w):
    """bf16 x bf16 MXU matmul with f32 accumulation: (M,K) @ (K,N) -> f32 (M,N)."""
    return lax.dot_general(a.astype(BF16), w.astype(BF16),
                           (((1,), (0,)), ((), ())),
                           preferred_element_type=F32)


def _qkt(q, k):
    """(Lq, dh) x (Lk, dh) -> (Lq, Lk), contracting last dims (no explicit .T)."""
    return lax.dot_general(q.astype(BF16), k.astype(BF16),
                           (((1,), (1,)), ((), ())),
                           preferred_element_type=F32)


def _quick_gelu(x):                    # CLIP quick_gelu: x * sigmoid(1.702 x)
    return x / (1.0 + jnp.exp(-1.702 * x))


def _gelu_tanh(x):
    # TODO(synk): torch.nn.GELU() is the exact erf form; tanh approximation used (Mosaic-safe EUP path).
    c = jnp.float32(0.7978845608028654)
    return 0.5 * x * (1.0 + jnp.tanh(c * (x + 0.044715 * x * x * x)))


# ----------------------------- Pallas kernels -----------------------------
def _clip_stack_kernel(patch_ref, pw_ref, ep_ref, wqkv_ref, wo_ref, w1_ref, w2_ref,
                       pvec_ref, o_ref, act_s, qkv_s, ao_s,
                       *, heads, hidden, seq, mlp):
    """grid = (batch, layer). Activation resident in act_s across layer steps.
    Layer 0 also computes patch-embed + CLS + pos-emb + pre-LayerNorm."""
    l = pl.program_id(1)
    dh = hidden // heads

    @pl.when(l == 0)
    def _():
        ep = ep_ref[...]                          # (seq+3, hidden): [pos; cls; pre_ln_g; pre_ln_b]
        pos = ep[:seq, :]
        cls = ep[seq:seq + 1, :]
        g = ep[seq + 1:seq + 2, :]
        bb = ep[seq + 2:seq + 3, :]
        pe = _mm(patch_ref[0], pw_ref[...])       # conv-as-matmul patch embedding
        # LayerNorm is row-wise -> apply per segment, two stores into scratch only.
        act_s[0:1, :] = _ln(cls + pos[0:1, :], g, bb)
        act_s[1:seq, :] = _ln(pe + pos[1:seq, :], g, bb)

    p = pvec_ref[0]                               # (8, 3*hidden) packed per-layer vectors
    ln1g, ln1b = p[0:1, :hidden], p[1:2, :hidden]
    bqkv = p[2:3, :3 * hidden]
    bo = p[3:4, :hidden]
    ln2g, ln2b = p[4:5, :hidden], p[5:6, :hidden]
    b1 = p[6:7, :mlp]
    b2 = p[7:8, :hidden]

    x = act_s[...]                                # (seq, hidden) f32

    # ---- attention block (scale already folded into the Q columns of wqkv) ----
    xn = _ln(x, ln1g, ln1b)
    qkv_s[...] = (_mm(xn, wqkv_ref[0]) + bqkv).astype(BF16)
    for h in range(heads):
        c = h * dh
        q = qkv_s[:, c:c + dh]
        k = qkv_s[:, hidden + c:hidden + c + dh]
        v = qkv_s[:, 2 * hidden + c:2 * hidden + c + dh]
        s = _qkt(q, k)
        s = s - jnp.max(s, axis=-1, keepdims=True)
        pr = jnp.exp(s)
        pr = pr * pl.reciprocal(jnp.sum(pr, axis=-1, keepdims=True), approx=True)
        ao_s[:, c:c + dh] = _mm(pr, v).astype(BF16)
    h1 = x + _mm(ao_s[...], wo_ref[0]) + bo       # one K=hidden out-projection

    # ---- MLP block (quick_gelu) with residual ----
    xn2 = _ln(h1, ln2g, ln2b)
    m = _quick_gelu(_mm(xn2, w1_ref[0]) + b1)
    h2 = h1 + _mm(m, w2_ref[0]) + b2
    act_s[...] = h2

    @pl.when(l == pl.num_programs(1) - 1)
    def _():
        o_ref[0] = h2.astype(o_ref.dtype)         # single full-block store


def _resampler_stack_kernel(x_ref, lat0_ref, pin_w_ref, pout_w_ref, gp_ref,
                            wq_ref, wkv_ref, wo_ref, ff1_ref, ff2_ref, pvec_ref,
                            o_ref, lat_s, xp_s, kvx_s, kvl_s, ao_s,
                            *, heads, dim_head, inner, dim, out_dim):
    """grid = (batch, depth). Latents resident in lat_s; proj_in at d==0,
    proj_out + norm_out at the last depth step."""
    d = pl.program_id(1)
    gp = gp_ref[...]                              # (4, W): [proj_in_b; proj_out_b; norm_out_g; norm_out_b]

    @pl.when(d == 0)
    def _():
        lat_s[...] = lat0_ref[...]
        xp_s[...] = _mm(x_ref[0], pin_w_ref[...]) + gp[0:1, :dim]   # proj_in once per batch

    p = pvec_ref[0]                               # (8, dim)
    n1g, n1b = p[0:1, :], p[1:2, :]
    n2g, n2b = p[2:3, :], p[3:4, :]
    ffg, ffb = p[4:5, :], p[5:6, :]

    lat = lat_s[...]
    xn = _ln(xp_s[...], n1g, n1b)
    lnl = _ln(lat, n2g, n2b)
    q = _mm(lnl, wq_ref[0]).astype(BF16)          # scale folded into wq at init
    kvx_s[...] = _mm(xn, wkv_ref[0]).astype(BF16)    # kv from image tokens
    kvl_s[...] = _mm(lnl, wkv_ref[0]).astype(BF16)   # kv from latents (concat as 2 blocks)
    for h in range(heads):
        c = h * dim_head
        qh = q[:, c:c + dim_head]
        kx = kvx_s[:, c:c + dim_head]
        kl = kvl_s[:, c:c + dim_head]
        vx = kvx_s[:, inner + c:inner + c + dim_head]
        vl = kvl_s[:, inner + c:inner + c + dim_head]
        s1 = _qkt(qh, kx)                         # (nq, sx)
        s2 = _qkt(qh, kl)                         # (nq, nq)
        mx = jnp.maximum(jnp.max(s1, axis=-1, keepdims=True),
                         jnp.max(s2, axis=-1, keepdims=True))
        p1 = jnp.exp(s1 - mx)
        p2 = jnp.exp(s2 - mx)
        denom = (jnp.sum(p1, axis=-1, keepdims=True)
                 + jnp.sum(p2, axis=-1, keepdims=True))
        o = (_mm(p1, vx) + _mm(p2, vl)) * pl.reciprocal(denom, approx=True)
        ao_s[:, c:c + dim_head] = o.astype(BF16)
    h1 = lat + _mm(ao_s[...], wo_ref[0])          # one K=inner to_out matmul + residual

    # ---- FeedForward (LN -> Linear -> GELU -> Linear, bias-free) with residual ----
    fn = _ln(h1, ffg, ffb)
    m = _gelu_tanh(_mm(fn, ff1_ref[0]))
    h2 = h1 + _mm(m, ff2_ref[0])
    lat_s[...] = h2

    @pl.when(d == pl.num_programs(1) - 1)
    def _():
        y = _mm(h2, pout_w_ref[...]) + gp[1:2, :out_dim]
        o_ref[0] = _ln(y, gp[2:3, :out_dim], gp[3:4, :out_dim]).astype(o_ref.dtype)


# ----------------------------- forward wrappers -----------------------------
def clip_vision_forward(p, pixel_values):
    """Returns hidden_states[-1] as a (B, SEQ, HIDDEN) bf16 slab (no post-layernorm)."""
    Bn = pixel_values.shape[0]
    # TODO(synk): HF AutoProcessor resize/center-crop/normalize is host-side preprocessing; pixel_values used as-is.
    # host-side im2col (layout glue only); column order (C,P,P) matches Conv2d weight.reshape(D,-1)
    x = pixel_values.reshape(Bn, C, GH, PATCH, GH, PATCH)
    x = x.transpose(0, 2, 4, 1, 3, 5).reshape(Bn, NUM_PATCHES, CPP)

    kernel = functools.partial(_clip_stack_kernel, heads=CLIP_HEADS, hidden=HIDDEN,
                               seq=SEQ, mlp=CLIP_MLP)
    return pl.pallas_call(
        kernel,
        out_shape=jax.ShapeDtypeStruct((Bn, SEQ, HIDDEN), BF16),
        grid=(Bn, CLIP_LAYERS),
        in_specs=[
            pl.BlockSpec((1, NUM_PATCHES, CPP), lambda b, l: (b, 0, 0)),
            pl.BlockSpec((CPP, HIDDEN), lambda b, l: (0, 0)),
            pl.BlockSpec((SEQ + 3, HIDDEN), lambda b, l: (0, 0)),
            pl.BlockSpec((1, HIDDEN, 3 * HIDDEN), lambda b, l: (l, 0, 0)),
            pl.BlockSpec((1, HIDDEN, HIDDEN), lambda b, l: (l, 0, 0)),
            pl.BlockSpec((1, HIDDEN, CLIP_MLP), lambda b, l: (l, 0, 0)),
            pl.BlockSpec((1, CLIP_MLP, HIDDEN), lambda b, l: (l, 0, 0)),
            pl.BlockSpec((1, 8, PVEC_W_CLIP), lambda b, l: (l, 0, 0)),
        ],
        out_specs=pl.BlockSpec((1, SEQ, HIDDEN), lambda b, l: (b, 0, 0)),
        scratch_shapes=[
            pltpu.VMEM((SEQ, HIDDEN), F32),         # resident activation
            pltpu.VMEM((SEQ, 3 * HIDDEN), BF16),    # fused QKV (MXU-operand dtype)
            pltpu.VMEM((SEQ, HIDDEN), BF16),        # per-head attention outputs
        ],
        compiler_params=pltpu.CompilerParams(
            dimension_semantics=("parallel", "arbitrary")),
    )(x, p["patch_w"], p["embed_params"], p["wqkv"], p["wo"], p["w1"], p["w2"], p["pvec"])


def resampler_forward(p, embeds):
    """IP-Adapter / DynamiCrafter-style Resampler; embeds is (B, SEQ, HIDDEN) bf16."""
    Bn = embeds.shape[0]
    nq = p["latents"].shape[0]
    kernel = functools.partial(_resampler_stack_kernel, heads=HEADS, dim_head=DIM_HEAD,
                               inner=INNER, dim=DIM, out_dim=OUTPUT_DIM)
    return pl.pallas_call(
        kernel,
        out_shape=jax.ShapeDtypeStruct((Bn, nq, OUTPUT_DIM), F32),
        grid=(Bn, DEPTH),
        in_specs=[
            pl.BlockSpec((1, SEQ, HIDDEN), lambda b, d: (b, 0, 0)),
            pl.BlockSpec((nq, DIM), lambda b, d: (0, 0)),
            pl.BlockSpec((HIDDEN, DIM), lambda b, d: (0, 0)),
            pl.BlockSpec((DIM, OUTPUT_DIM), lambda b, d: (0, 0)),
            pl.BlockSpec((4, GPARAM_W), lambda b, d: (0, 0)),
            pl.BlockSpec((1, DIM, INNER), lambda b, d: (d, 0, 0)),
            pl.BlockSpec((1, DIM, 2 * INNER), lambda b, d: (d, 0, 0)),
            pl.BlockSpec((1, INNER, DIM), lambda b, d: (d, 0, 0)),
            pl.BlockSpec((1, DIM, FF_DIM), lambda b, d: (d, 0, 0)),
            pl.BlockSpec((1, FF_DIM, DIM), lambda b, d: (d, 0, 0)),
            pl.BlockSpec((1, 8, PVEC_W_RES), lambda b, d: (d, 0, 0)),
        ],
        out_specs=pl.BlockSpec((1, nq, OUTPUT_DIM), lambda b, d: (b, 0, 0)),
        scratch_shapes=[
            pltpu.VMEM((nq, DIM), F32),             # resident latents
            pltpu.VMEM((SEQ, DIM), F32),            # proj_in(x), computed once per batch
            pltpu.VMEM((SEQ, 2 * INNER), BF16),     # kv(image tokens)
            pltpu.VMEM((nq, 2 * INNER), BF16),      # kv(latents)
            pltpu.VMEM((nq, INNER), BF16),          # per-head attention outputs
        ],
        compiler_params=pltpu.CompilerParams(
            dimension_semantics=("parallel", "arbitrary")),
    )(embeds, p["latents"], p["proj_in_w"], p["proj_out_w"], p["gparams"],
      p["wq"], p["wkv"], p["wo"], p["ff1"], p["ff2"], p["pvec"])


def clip_image_wrapper_forward(params, image, video_input=False):
    embeds = clip_vision_forward(params["clip"], image)          # hidden_states[-1]
    proj = params["video_proj"] if video_input else params["image_proj"]
    return resampler_forward(proj, embeds)                        # (B, num_queries, OUTPUT_DIM)


# ----------------------------- parameter init (deterministic, synthetic) -----------------------------
def _w(key, d_in, d_out, scale=0.02):
    # matmul weights stored in bf16 (MXU-native); accumulation stays f32
    return (jax.random.normal(key, (d_in, d_out), F32) * scale).astype(BF16)


def _pack_rows(rows, width, n_rows):
    out = []
    for r in rows:
        r = jnp.asarray(r, F32).reshape(-1)
        out.append(jnp.pad(r, (0, width - r.shape[0])))
    while len(out) < n_rows:
        out.append(jnp.zeros((width,), F32))
    return jnp.stack(out)


def init_clip_params(key):
    n_keys = 3 + 8 * CLIP_LAYERS
    keys = iter(jax.random.split(key, n_keys))
    dh = HIDDEN // CLIP_HEADS
    q_scale = dh ** -0.5

    patch_w = _w(next(keys), CPP, HIDDEN)
    cls = jax.random.normal(next(keys), (1, HIDDEN), F32) * 0.02
    pos = jax.random.normal(next(keys), (SEQ, HIDDEN), F32) * 0.02
    embed_params = jnp.concatenate(
        [pos, cls, jnp.ones((1, HIDDEN), F32), jnp.zeros((1, HIDDEN), F32)], axis=0)

    wqkv, wo, w1, w2, pvec = [], [], [], [], []
    for _ in range(CLIP_LAYERS):
        wq = jax.random.normal(next(keys), (HIDDEN, HIDDEN), F32) * 0.02 * q_scale  # scale folded
        wk = jax.random.normal(next(keys), (HIDDEN, HIDDEN), F32) * 0.02
        wv = jax.random.normal(next(keys), (HIDDEN, HIDDEN), F32) * 0.02
        wqkv.append(jnp.concatenate([wq, wk, wv], axis=1).astype(BF16))
        wo.append(_w(next(keys), HIDDEN, HIDDEN))
        w1.append(_w(next(keys), HIDDEN, CLIP_MLP))
        w2.append(_w(next(keys), CLIP_MLP, HIDDEN))
        bqkv = jax.random.normal(next(keys), (3 * HIDDEN,), F32) * 0.02
        bqkv = bqkv.at[:HIDDEN].multiply(q_scale)                                   # scale folded
        bmisc = jax.random.normal(next(keys), (2 * HIDDEN + CLIP_MLP,), F32) * 0.02
        bo, b1, b2 = (bmisc[:HIDDEN], bmisc[HIDDEN:HIDDEN + CLIP_MLP],
                      bmisc[HIDDEN + CLIP_MLP:])
        pvec.append(_pack_rows(
            [jnp.ones((HIDDEN,), F32), jnp.zeros((HIDDEN,), F32), bqkv, bo,
             jnp.ones((HIDDEN,), F32), jnp.zeros((HIDDEN,), F32), b1, b2],
            PVEC_W_CLIP, 8))
    return {"patch_w": patch_w, "embed_params": embed_params,
            "wqkv": jnp.stack(wqkv), "wo": jnp.stack(wo),
            "w1": jnp.stack(w1), "w2": jnp.stack(w2), "pvec": jnp.stack(pvec)}


def init_resampler_params(key, video_length):
    nq = NUM_QUERIES * (video_length if video_length is not None else 1)
    n_keys = 5 + 5 * DEPTH
    keys = iter(jax.random.split(key, n_keys))
    q_scale = DIM_HEAD ** -0.5

    latents = jax.random.normal(next(keys), (nq, DIM), F32) / (DIM ** 0.5)
    proj_in_w = _w(next(keys), HIDDEN, DIM)
    proj_out_w = _w(next(keys), DIM, OUTPUT_DIM)
    proj_in_b = jax.random.normal(next(keys), (DIM,), F32) * 0.02
    proj_out_b = jax.random.normal(next(keys), (OUTPUT_DIM,), F32) * 0.02
    gparams = _pack_rows(
        [proj_in_b, proj_out_b, jnp.ones((OUTPUT_DIM,), F32), jnp.zeros((OUTPUT_DIM,), F32)],
        GPARAM_W, 4)

    wq, wkv, wo, ff1, ff2, pvec = [], [], [], [], [], []
    for _ in range(DEPTH):
        wq.append((jax.random.normal(next(keys), (DIM, INNER), F32) * 0.02 * q_scale)
                  .astype(BF16))                                   # q_scale*k_scale folded
        wkv.append(_w(next(keys), DIM, 2 * INNER))                 # bias=False
        wo.append(_w(next(keys), INNER, DIM))                      # bias=False
        ff1.append(_w(next(keys), DIM, FF_DIM))                    # bias=False
        ff2.append(_w(next(keys), FF_DIM, DIM))                    # bias=False
        pvec.append(_pack_rows(
            [jnp.ones((DIM,), F32), jnp.zeros((DIM,), F32),        # norm1
             jnp.ones((DIM,), F32), jnp.zeros((DIM,), F32),        # norm2
             jnp.ones((DIM,), F32), jnp.zeros((DIM,), F32)],       # ff LayerNorm
            PVEC_W_RES, 8))
    return {"latents": latents, "proj_in_w": proj_in_w, "proj_out_w": proj_out_w,
            "gparams": gparams,
            "wq": jnp.stack(wq), "wkv": jnp.stack(wkv), "wo": jnp.stack(wo),
            "ff1": jnp.stack(ff1), "ff2": jnp.stack(ff2), "pvec": jnp.stack(pvec)}


def init_params(key):
    k_clip, k_img, k_vid = jax.random.split(key, 3)
    return {
        "clip": init_clip_params(k_clip),
        "image_proj": init_resampler_params(k_img, video_length=1),
        "video_proj": init_resampler_params(k_vid, video_length=VIDEO_LENGTH),
    }


# ----------------------------- main -----------------------------
if __name__ == "__main__":
    key = jax.random.PRNGKey(0)
    k_param, k_img = jax.random.split(key)
    params = init_params(k_param)
    image = jax.random.normal(k_img, (B, C, IMG, IMG), F32)

    fwd = jax.jit(functools.partial(clip_image_wrapper_forward, video_input=False))
    out = fwd(params, image)
    jax.block_until_ready(out)

    assert out.shape == (B, NUM_QUERIES, OUTPUT_DIM), out.shape
    assert bool(jnp.all(jnp.isfinite(out)))
    print("KERNEL_OK")
</pallas_src>

<mosaic_0001>
module attributes {stable_mosaic.version = 11 : i64} {
  func.func @_clip_stack_kernel(%arg0: i32, %arg1: i32, %arg2: memref<1x16x48xf32, #tpu.memory_space<vmem>>, %arg3: memref<48x128xbf16, #tpu.memory_space<vmem>>, %arg4: memref<20x128xf32, #tpu.memory_space<vmem>>, %arg5: memref<1x128x384xbf16, #tpu.memory_space<vmem>>, %arg6: memref<1x128x128xbf16, #tpu.memory_space<vmem>>, %arg7: memref<1x128x256xbf16, #tpu.memory_space<vmem>>, %arg8: memref<1x256x128xbf16, #tpu.memory_space<vmem>>, %arg9: memref<1x8x384xf32, #tpu.memory_space<vmem>>, %arg10: memref<1x17x128xbf16, #tpu.memory_space<vmem>>, %arg11: memref<17x128xf32, #tpu.memory_space<vmem>>, %arg12: memref<17x384xbf16, #tpu.memory_space<vmem>>, %arg13: memref<17x128xbf16, #tpu.memory_space<vmem>>) attributes {dimension_semantics = [#tpu.dimension_semantics<parallel>, #tpu.dimension_semantics<arbitrary>], iteration_bounds = array<i64: 2, 2>, scalar_prefetch = 0 : i64, scratch_operands = 3 : i64, tpu.core_type = #tpu.core_type<tc>, window_params = [{transform_indices = @transform_0, window_bounds = array<i64: 1, 16, 48>}, {pipeline_mode = #tpu.pipeline_mode<synchronous>, transform_indices = @transform_1, window_bounds = array<i64: 48, 128>}, {pipeline_mode = #tpu.pipeline_mode<synchronous>, transform_indices = @transform_2, window_bounds = array<i64: 20, 128>}, {transform_indices = @transform_3, window_bounds = array<i64: 1, 128, 384>}, {transform_indices = @transform_4, window_bounds = array<i64: 1, 128, 128>}, {transform_indices = @transform_5, window_bounds = array<i64: 1, 128, 256>}, {transform_indices = @transform_6, window_bounds = array<i64: 1, 256, 128>}, {transform_indices = @transform_7, window_bounds = array<i64: 1, 8, 384>}, {transform_indices = @transform_8, window_bounds = array<i64: 1, 17, 128>}]} {
    %c0_i32 = arith.constant 0 : i32
    %0 = arith.cmpi eq, %arg1, %c0_i32 : i32
    %1 = arith.extui %0 : i1 to i32
    %c0_i32_0 = arith.constant 0 : i32
    %2 = arith.cmpi ne, %1, %c0_i32_0 : i32
    scf.if %2 {
      %c0_76 = arith.constant 0 : index
      %c0_77 = arith.constant 0 : index
      %164 = vector.load %arg4[%c0_76, %c0_77] : memref<20x128xf32, #tpu.memory_space<vmem>>, vector<20x128xf32>
      %165 = vector.extract_strided_slice %164 {offsets = [0, 0], sizes = [17, 128], strides = [1, 1]} : vector<20x128xf32> to vector<17x128xf32>
      %166 = vector.extract_strided_slice %164 {offsets = [17, 0], sizes = [1, 128], strides = [1, 1]} : vector<20x128xf32> to vector<1x128xf32>
      %167 = vector.extract_strided_slice %164 {offsets = [18, 0], sizes = [1, 128], strides = [1, 1]} : vector<20x128xf32> to vector<1x128xf32>
      %168 = vector.extract_strided_slice %164 {offsets = [19, 0], sizes = [1, 128], strides = [1, 1]} : vector<20x128xf32> to vector<1x128xf32>
      %c0_78 = arith.constant 0 : index
      %c0_79 = arith.constant 0 : index
      %c0_80 = arith.constant 0 : index
      %169 = vector.load %arg2[%c0_78, %c0_79, %c0_80] : memref<1x16x48xf32, #tpu.memory_space<vmem>>, vector<1x16x48xf32>
      %170 = vector.shape_cast %169 : vector<1x16x48xf32> to vector<16x48xf32>
      %c0_81 = arith.constant 0 : index
      %c0_82 = arith.constant 0 : index
      %171 = vector.load %arg3[%c0_81, %c0_82] : memref<48x128xbf16, #tpu.memory_space<vmem>>, vector<48x128xbf16>
      %172 = arith.truncf %170 : vector<16x48xf32> to vector<16x48xbf16>
      %cst_83 = arith.constant dense<0.000000e+00> : vector<16x128xf32>
      %173 = tpu.matmul %172, %171, %cst_83 {dimension_numbers = #tpu.dot_dimension_numbers<[1], [0], [0], [1], [0, 0, 1, 1], [], []>} : vector<16x48xbf16>, vector<48x128xbf16>, vector<16x128xf32> -> vector<16x128xf32>
      %174 = vector.extract_strided_slice %165 {offsets = [0, 0], sizes = [1, 128], strides = [1, 1]} : vector<17x128xf32> to vector<1x128xf32>
      %175 = arith.addf %166, %174 : vector<1x128xf32>
      %cst_84 = arith.constant dense<0.000000e+00> : vector<1xf32>
      %176 = vector.multi_reduction <add>, %175, %cst_84 [1] : vector<1x128xf32> to vector<1xf32>
      %177 = vector.shape_cast %176 : vector<1xf32> to vector<1x1xf32>
      %cst_85 = arith.constant 1.280000e+02 : f32
      %178 = vector.broadcast %cst_85 : f32 to vector<1x1xf32>
      %179 = arith.divf %177, %178 : vector<1x1xf32>
      %180 = vector.broadcast %179 : vector<1x1xf32> to vector<1x128xf32>
      %181 = arith.subf %175, %180 : vector<1x128xf32>
      %182 = arith.mulf %181, %181 : vector<1x128xf32>
      %cst_86 = arith.constant dense<0.000000e+00> : vector<1xf32>
      %183 = vector.multi_reduction <add>, %182, %cst_86 [1] : vector<1x128xf32> to vector<1xf32>
      %184 = vector.shape_cast %183 : vector<1xf32> to vector<1x1xf32>
      %cst_87 = arith.constant 1.280000e+02 : f32
      %185 = vector.broadcast %cst_87 : f32 to vector<1x1xf32>
      %186 = arith.divf %184, %185 : vector<1x1xf32>
      %cst_88 = arith.constant 9.99999974E-6 : f32
      %187 = vector.broadcast %cst_88 : f32 to vector<1x1xf32>
      %188 = arith.addf %186, %187 : vector<1x1xf32>
      %189 = math.rsqrt %188 : vector<1x1xf32>
      %190 = vector.broadcast %189 : vector<1x1xf32> to vector<1x128xf32>
      %191 = arith.mulf %181, %190 : vector<1x128xf32>
      %192 = arith.mulf %191, %167 : vector<1x128xf32>
      %193 = arith.addf %192, %168 : vector<1x128xf32>
      %c0_89 = arith.constant 0 : index
      %c0_90 = arith.constant 0 : index
      %194 = vector.load %arg11[%c0_89, %c0_90] : memref<17x128xf32, #tpu.memory_space<vmem>>, vector<1x128xf32>
      tpu.vector_store %arg11[%c0_89, %c0_90], %193 {strides = array<i32>} : memref<17x128xf32, #tpu.memory_space<vmem>>, vector<1x128xf32>,
      %195 = vector.extract_strided_slice %165 {offsets = [1, 0], sizes = [16, 128], strides = [1, 1]} : vector<17x128xf32> to vector<16x128xf32>
      %196 = arith.addf %173, %195 : vector<16x128xf32>
      %cst_91 = arith.constant dense<0.000000e+00> : vector<16xf32>
      %197 = vector.multi_reduction <add>, %196, %cst_91 [1] : vector<16x128xf32> to vector<16xf32>
      %198 = vector.shape_cast %197 : vector<16xf32> to vector<16x1xf32>
      %cst_92 = arith.constant 1.280000e+02 : f32
      %199 = vector.broadcast %cst_92 : f32 to vector<16x1xf32>
      %200 = arith.divf %198, %199 : vector<16x1xf32>
      %201 = vector.broadcast %200 : vector<16x1xf32> to vector<16x128xf32>
      %202 = arith.subf %196, %201 : vector<16x128xf32>
      %203 = arith.mulf %202, %202 : vector<16x128xf32>
      %cst_93 = arith.constant dense<0.000000e+00> : vector<16xf32>
      %204 = vector.multi_reduction <add>, %203, %cst_93 [1] : vector<16x128xf32> to vector<16xf32>
      %205 = vector.shape_cast %204 : vector<16xf32> to vector<16x1xf32>
      %cst_94 = arith.constant 1.280000e+02 : f32
      %206 = vector.broadcast %cst_94 : f32 to vector<16x1xf32>
      %207 = arith.divf %205, %206 : vector<16x1xf32>
      %cst_95 = arith.constant 9.99999974E-6 : f32
      %208 = vector.broadcast %cst_95 : f32 to vector<16x1xf32>
      %209 = arith.addf %207, %208 : vector<16x1xf32>
      %210 = math.rsqrt %209 : vector<16x1xf32>
      %211 = vector.broadcast %210 : vector<16x1xf32> to vector<16x128xf32>
      %212 = arith.mulf %202, %211 : vector<16x128xf32>
      %213 = vector.broadcast %167 : vector<1x128xf32> to vector<16x128xf32>
      %214 = arith.mulf %212, %213 : vector<16x128xf32>
      %215 = vector.broadcast %168 : vector<1x128xf32> to vector<16x128xf32>
      %216 = arith.addf %214, %215 : vector<16x128xf32>
      %c1 = arith.constant 1 : index
      %c0_96 = arith.constant 0 : index
      %217 = vector.load %arg11[%c1, %c0_96] : memref<17x128xf32, #tpu.memory_space<vmem>>, vector<16x128xf32>
      tpu.vector_store %arg11[%c1, %c0_96], %216 {strides = array<i32>} : memref<17x128xf32, #tpu.memory_space<vmem>>, vector<16x128xf32>,
    } else {
    }
    %c0 = arith.constant 0 : index
    %c0_1 = arith.constant 0 : index
    %c0_2 = arith.constant 0 : index
    %3 = vector.load %arg9[%c0, %c0_1, %c0_2] : memref<1x8x384xf32, #tpu.memory_space<vmem>>, vector<1x8x384xf32>
    %4 = vector.shape_cast %3 : vector<1x8x384xf32> to vector<8x384xf32>
    %5 = vector.extract_strided_slice %4 {offsets = [0, 0], sizes = [1, 128], strides = [1, 1]} : vector<8x384xf32> to vector<1x128xf32>
    %6 = vector.extract_strided_slice %4 {offsets = [1, 0], sizes = [1, 128], strides = [1, 1]} : vector<8x384xf32> to vector<1x128xf32>
    %7 = vector.extract_strided_slice %4 {offsets = [2, 0], sizes = [1, 384], strides = [1, 1]} : vector<8x384xf32> to vector<1x384xf32>
    %8 = vector.extract_strided_slice %4 {offsets = [3, 0], sizes = [1, 128], strides = [1, 1]} : vector<8x384xf32> to vector<1x128xf32>
    %9 = vector.extract_strided_slice %4 {offsets = [4, 0], sizes = [1, 128], strides = [1, 1]} : vector<8x384xf32> to vector<1x128xf32>
    %10 = vector.extract_strided_slice %4 {offsets = [5, 0], sizes = [1, 128], strides = [1, 1]} : vector<8x384xf32> to vector<1x128xf32>
    %11 = vector.extract_strided_slice %4 {offsets = [6, 0], sizes = [1, 256], strides = [1, 1]} : vector<8x384xf32> to vector<1x256xf32>
    %12 = vector.extract_strided_slice %4 {offsets = [7, 0], sizes = [1, 128], strides = [1, 1]} : vector<8x384xf32> to vector<1x128xf32>
    %c0_3 = arith.constant 0 : index
    %c0_4 = arith.constant 0 : index
    %13 = vector.load %arg11[%c0_3, %c0_4] : memref<17x128xf32, #tpu.memory_space<vmem>>, vector<17x128xf32>
    %cst = arith.constant dense<0.000000e+00> : vector<17xf32>
    %14 = vector.multi_reduction <add>, %13, %cst [1] : vector<17x128xf32> to vector<17xf32>
    %15 = vector.shape_cast %14 : vector<17xf32> to vector<17x1xf32>
    %cst_5 = arith.constant 1.280000e+02 : f32
    %16 = vector.broadcast %cst_5 : f32 to vector<17x1xf32>
    %17 = arith.divf %15, %16 : vector<17x1xf32>
    %18 = vector.broadcast %17 : vector<17x1xf32> to vector<17x128xf32>
    %19 = arith.subf %13, %18 : vector<17x128xf32>
    %20 = arith.mulf %19, %19 : vector<17x128xf32>
    %cst_6 = arith.constant dense<0.000000e+00> : vector<17xf32>
    %21 = vector.multi_reduction <add>, %20, %cst_6 [1] : vector<17x128xf32> to vector<17xf32>
    %22 = vector.shape_cast %21 : vector<17xf32> to vector<17x1xf32>
    %cst_7 = arith.constant 1.280000e+02 : f32
    %23 = vector.broadcast %cst_7 : f32 to vector<17x1xf32>
    %24 = arith.divf %22, %23 : vector<17x1xf32>
    %cst_8 = arith.constant 9.99999974E-6 : f32
    %25 = vector.broadcast %cst_8 : f32 to vector<17x1xf32>
    %26 = arith.addf %24, %25 : vector<17x1xf32>
    %27 = math.rsqrt %26 : vector<17x1xf32>
    %28 = vector.broadcast %27 : vector<17x1xf32> to vector<17x128xf32>
    %29 = arith.mulf %19, %28 : vector<17x128xf32>
    %30 = vector.broadcast %5 : vector<1x128xf32> to vector<17x128xf32>
    %31 = arith.mulf %29, %30 : vector<17x128xf32>
    %32 = vector.broadcast %6 : vector<1x128xf32> to vector<17x128xf32>
    %33 = arith.addf %31, %32 : vector<17x128xf32>
    %c0_9 = arith.constant 0 : index
    %c0_10 = arith.constant 0 : index
    %c0_11 = arith.constant 0 : index
    %34 = vector.load %arg5[%c0_9, %c0_10, %c0_11] : memref<1x128x384xbf16, #tpu.memory_space<vmem>>, vector<1x128x384xbf16>
    %35 = vector.shape_cast %34 : vector<1x128x384xbf16> to vector<128x384xbf16>
    %36 = arith.truncf %33 : vector<17x128xf32> to vector<17x128xbf16>
    %cst_12 = arith.constant dense<0.000000e+00> : vector<17x384xf32>
    %37 = tpu.matmul %36, %35, %cst_12 {dimension_numbers = #tpu.dot_dimension_numbers<[1], [0], [0], [1], [0, 0, 1, 1], [], []>} : vector<17x128xbf16>, vector<128x384xbf16>, vector<17x384xf32> -> vector<17x384xf32>
    %38 = vector.broadcast %7 : vector<1x384xf32> to vector<17x384xf32>
    %39 = arith.addf %37, %38 : vector<17x384xf32>
    %40 = arith.truncf %39 : vector<17x384xf32> to vector<17x384xbf16>
    %c0_13 = arith.constant 0 : index
    %c0_14 = arith.constant 0 : index
    %41 = vector.load %arg12[%c0_13, %c0_14] : memref<17x384xbf16, #tpu.memory_space<vmem>>, vector<17x384xbf16>
    tpu.vector_store %arg12[%c0_13, %c0_14], %40 {strides = array<i32>} : memref<17x384xbf16, #tpu.memory_space<vmem>>, vector<17x384xbf16>,
    %c0_15 = arith.constant 0 : index
    %c0_16 = arith.constant 0 : index
    %42 = vector.load %arg12[%c0_15, %c0_16] : memref<17x384xbf16, #tpu.memory_space<vmem>>, vector<17x32xbf16>
    %c0_17 = arith.constant 0 : index
    %c128 = arith.constant 128 : index
    %43 = vector.load %arg12[%c0_17, %c128] : memref<17x384xbf16, #tpu.memory_space<vmem>>, vector<17x32xbf16>
    %c0_18 = arith.constant 0 : index
    %c256 = arith.constant 256 : index
    %44 = vector.load %arg12[%c0_18, %c256] : memref<17x384xbf16, #tpu.memory_space<vmem>>, vector<17x32xbf16>
    %cst_19 = arith.constant dense<0.000000e+00> : vector<17x17xf32>
    %45 = tpu.matmul %42, %43, %cst_19 {dimension_numbers = #tpu.dot_dimension_numbers<[1], [1], [0], [0], [0, 0, 1, 0], [], []>} : vector<17x32xbf16>, vector<17x32xbf16>, vector<17x17xf32> -> vector<17x17xf32>
    %cst_20 = arith.constant dense<0xFF800000> : vector<17xf32>
    %46 = vector.multi_reduction <maximumf>, %45, %cst_20 [1] : vector<17x17xf32> to vector<17xf32>
    %47 = vector.shape_cast %46 : vector<17xf32> to vector<17x1xf32>
    %48 = vector.broadcast %47 : vector<17x1xf32> to vector<17x17xf32>
    %49 = arith.subf %45, %48 : vector<17x17xf32>
    %50 = math.exp %49 : vector<17x17xf32>
    %cst_21 = arith.constant dense<0.000000e+00> : vector<17xf32>
    %51 = vector.multi_reduction <add>, %50, %cst_21 [1] : vector<17x17xf32> to vector<17xf32>
    %52 = vector.shape_cast %51 : vector<17xf32> to vector<17x1xf32>
    %53 = tpu.reciprocal %52 {approx = true} : vector<17x1xf32> -> vector<17x1xf32>
    %54 = vector.broadcast %53 : vector<17x1xf32> to vector<17x17xf32>
    %55 = arith.mulf %50, %54 : vector<17x17xf32>
    %56 = arith.truncf %55 : vector<17x17xf32> to vector<17x17xbf16>
    %cst_22 = arith.constant dense<0.000000e+00> : vector<17x32xf32>
    %57 = tpu.matmul %56, %44, %cst_22 {dimension_numbers = #tpu.dot_dimension_numbers<[1], [0], [0], [1], [0, 0, 1, 1], [], []>} : vector<17x17xbf16>, vector<17x32xbf16>, vector<17x32xf32> -> vector<17x32xf32>
    %58 = arith.truncf %57 : vector<17x32xf32> to vector<17x32xbf16>
    %c0_23 = arith.constant 0 : index
    %c0_24 = arith.constant 0 : index
    %59 = vector.load %arg13[%c0_23, %c0_24] : memref<17x128xbf16, #tpu.memory_space<vmem>>, vector<17x32xbf16>
    tpu.vector_store %arg13[%c0_23, %c0_24], %58 {strides = array<i32>} : memref<17x128xbf16, #tpu.memory_space<vmem>>, vector<17x32xbf16>,
    %c0_25 = arith.constant 0 : index
    %c32 = arith.constant 32 : index
    %60 = vector.load %arg12[%c0_25, %c32] : memref<17x384xbf16, #tpu.memory_space<vmem>>, vector<17x32xbf16>
    %c0_26 = arith.constant 0 : index
    %c160 = arith.constant 160 : index
    %61 = vector.load %arg12[%c0_26, %c160] : memref<17x384xbf16, #tpu.memory_space<vmem>>, vector<17x32xbf16>
    %c0_27 = arith.constant 0 : index
    %c288 = arith.constant 288 : index
    %62 = vector.load %arg12[%c0_27, %c288] : memref<17x384xbf16, #tpu.memory_space<vmem>>, vector<17x32xbf16>
    %cst_28 = arith.constant dense<0.000000e+00> : vector<17x17xf32>
    %63 = tpu.matmul %60, %61, %cst_28 {dimension_numbers = #tpu.dot_dimension_numbers<[1], [1], [0], [0], [0, 0, 1, 0], [], []>} : vector<17x32xbf16>, vector<17x32xbf16>, vector<17x17xf32> -> vector<17x17xf32>
    %cst_29 = arith.constant dense<0xFF800000> : vector<17xf32>
    %64 = vector.multi_reduction <maximumf>, %63, %cst_29 [1] : vector<17x17xf32> to vector<17xf32>
    %65 = vector.shape_cast %64 : vector<17xf32> to vector<17x1xf32>
    %66 = vector.broadcast %65 : vector<17x1xf32> to vector<17x17xf32>
    %67 = arith.subf %63, %66 : vector<17x17xf32>
    %68 = math.exp %67 : vector<17x17xf32>
    %cst_30 = arith.constant dense<0.000000e+00> : vector<17xf32>
    %69 = vector.multi_reduction <add>, %68, %cst_30 [1] : vector<17x17xf32> to vector<17xf32>
    %70 = vector.shape_cast %69 : vector<17xf32> to vector<17x1xf32>
    %71 = tpu.reciprocal %70 {approx = true} : vector<17x1xf32> -> vector<17x1xf32>
    %72 = vector.broadcast %71 : vector<17x1xf32> to vector<17x17xf32>
    %73 = arith.mulf %68, %72 : vector<17x17xf32>
    %74 = arith.truncf %73 : vector<17x17xf32> to vector<17x17xbf16>
    %cst_31 = arith.constant dense<0.000000e+00> : vector<17x32xf32>
    %75 = tpu.matmul %74, %62, %cst_31 {dimension_numbers = #tpu.dot_dimension_numbers<[1], [0], [0], [1], [0, 0, 1, 1], [], []>} : vector<17x17xbf16>, vector<17x32xbf16>, vector<17x32xf32> -> vector<17x32xf32>
    %76 = arith.truncf %75 : vector<17x32xf32> to vector<17x32xbf16>
    %c0_32 = arith.constant 0 : index
    %c32_33 = arith.constant 32 : index
    %77 = vector.load %arg13[%c0_32, %c32_33] : memref<17x128xbf16, #tpu.memory_space<vmem>>, vector<17x32xbf16>
    tpu.vector_store %arg13[%c0_32, %c32_33], %76 {strides = array<i32>} : memref<17x128xbf16, #tpu.memory_space<vmem>>, vector<17x32xbf16>,
    %c0_34 = arith.constant 0 : index
    %c64 = arith.constant 64 : index
    %78 = vector.load %arg12[%c0_34, %c64] : memref<17x384xbf16, #tpu.memory_space<vmem>>, vector<17x32xbf16>
    %c0_35 = arith.constant 0 : index
    %c192 = arith.constant 192 : index
    %79 = vector.load %arg12[%c0_35, %c192] : memref<17x384xbf16, #tpu.memory_space<vmem>>, vector<17x32xbf16>
    %c0_36 = arith.constant 0 : index
    %c320 = arith.constant 320 : index
    %80 = vector.load %arg12[%c0_36, %c320] : memref<17x384xbf16, #tpu.memory_space<vmem>>, vector<17x32xbf16>
    %cst_37 = arith.constant dense<0.000000e+00> : vector<17x17xf32>
    %81 = tpu.matmul %78, %79, %cst_37 {dimension_numbers = #tpu.dot_dimension_numbers<[1], [1], [0], [0], [0, 0, 1, 0], [], []>} : vector<17x32xbf16>, vector<17x32xbf16>, vector<17x17xf32> -> vector<17x17xf32>
    %cst_38 = arith.constant dense<0xFF800000> : vector<17xf32>
    %82 = vector.multi_reduction <maximumf>, %81, %cst_38 [1] : vector<17x17xf32> to vector<17xf32>
    %83 = vector.shape_cast %82 : vector<17xf32> to vector<17x1xf32>
    %84 = vector.broadcast %83 : vector<17x1xf32> to vector<17x17xf32>
    %85 = arith.subf %81, %84 : vector<17x17xf32>
    %86 = math.exp %85 : vector<17x17xf32>
    %cst_39 = arith.constant dense<0.000000e+00> : vector<17xf32>
    %87 = vector.multi_reduction <add>, %86, %cst_39 [1] : vector<17x17xf32> to vector<17xf32>
    %88 = vector.shape_cast %87 : vector<17xf32> to vector<17x1xf32>
    %89 = tpu.reciprocal %88 {approx = true} : vector<17x1xf32> -> vector<17x1xf32>
    %90 = vector.broadcast %89 : vector<17x1xf32> to vector<17x17xf32>
    %91 = arith.mulf %86, %90 : vector<17x17xf32>
    %92 = arith.truncf %91 : vector<17x17xf32> to vector<17x17xbf16>
    %cst_40 = arith.constant dense<0.000000e+00> : vector<17x32xf32>
    %93 = tpu.matmul %92, %80, %cst_40 {dimension_numbers = #tpu.dot_dimension_numbers<[1], [0], [0], [1], [0, 0, 1, 1], [], []>} : vector<17x17xbf16>, vector<17x32xbf16>, vector<17x32xf32> -> vector<17x32xf32>
    %94 = arith.truncf %93 : vector<17x32xf32> to vector<17x32xbf16>
    %c0_41 = arith.constant 0 : index
    %c64_42 = arith.constant 64 : index
    %95 = vector.load %arg13[%c0_41, %c64_42] : memref<17x128xbf16, #tpu.memory_space<vmem>>, vector<17x32xbf16>
    tpu.vector_store %arg13[%c0_41, %c64_42], %94 {strides = array<i32>} : memref<17x128xbf16, #tpu.memory_space<vmem>>, vector<17x32xbf16>,
    %c0_43 = arith.constant 0 : index
    %c96 = arith.constant 96 : index
    %96 = vector.load %arg12[%c0_43, %c96] : memref<17x384xbf16, #tpu.memory_space<vmem>>, vector<17x32xbf16>
    %c0_44 = arith.constant 0 : index
    %c224 = arith.constant 224 : index
    %97 = vector.load %arg12[%c0_44, %c224] : memref<17x384xbf16, #tpu.memory_space<vmem>>, vector<17x32xbf16>
    %c0_45 = arith.constant 0 : index
    %c352 = arith.constant 352 : index
    %98 = vector.load %arg12[%c0_45, %c352] : memref<17x384xbf16, #tpu.memory_space<vmem>>, vector<17x32xbf16>
    %cst_46 = arith.constant dense<0.000000e+00> : vector<17x17xf32>
    %99 = tpu.matmul %96, %97, %cst_46 {dimension_numbers = #tpu.dot_dimension_numbers<[1], [1], [0], [0], [0, 0, 1, 0], [], []>} : vector<17x32xbf16>, vector<17x32xbf16>, vector<17x17xf32> -> vector<17x17xf32>
    %cst_47 = arith.constant dense<0xFF800000> : vector<17xf32>
    %100 = vector.multi_reduction <maximumf>, %99, %cst_47 [1] : vector<17x17xf32> to vector<17xf32>
    %101 = vector.shape_cast %100 : vector<17xf32> to vector<17x1xf32>
    %102 = vector.broadcast %101 : vector<17x1xf32> to vector<17x17xf32>
    %103 = arith.subf %99, %102 : vector<17x17xf32>
    %104 = math.exp %103 : vector<17x17xf32>
    %cst_48 = arith.constant dense<0.000000e+00> : vector<17xf32>
    %105 = vector.multi_reduction <add>, %104, %cst_48 [1] : vector<17x17xf32> to vector<17xf32>
    %106 = vector.shape_cast %105 : vector<17xf32> to vector<17x1xf32>
    %107 = tpu.reciprocal %106 {approx = true} : vector<17x1xf32> -> vector<17x1xf32>
    %108 = vector.broadcast %107 : vector<17x1xf32> to vector<17x17xf32>
    %109 = arith.mulf %104, %108 : vector<17x17xf32>
    %110 = arith.truncf %109 : vector<17x17xf32> to vector<17x17xbf16>
    %cst_49 = arith.constant dense<0.000000e+00> : vector<17x32xf32>
    %111 = tpu.matmul %110, %98, %cst_49 {dimension_numbers = #tpu.dot_dimension_numbers<[1], [0], [0], [1], [0, 0, 1, 1], [], []>} : vector<17x17xbf16>, vector<17x32xbf16>, vector<17x32xf32> -> vector<17x32xf32>
    %112 = arith.truncf %111 : vector<17x32xf32> to vector<17x32xbf16>
    %c0_50 = arith.constant 0 : index
    %c96_51 = arith.constant 96 : index
    %113 = vector.load %arg13[%c0_50, %c96_51] : memref<17x128xbf16, #tpu.memory_space<vmem>>, vector<17x32xbf16>
    tpu.vector_store %arg13[%c0_50, %c96_51], %112 {strides = array<i32>} : memref<17x128xbf16, #tpu.memory_space<vmem>>, vector<17x32xbf16>,
    %c0_52 = arith.constant 0 : index
    %c0_53 = arith.constant 0 : index
    %114 = vector.load %arg13[%c0_52, %c0_53] : memref<17x128xbf16, #tpu.memory_space<vmem>>, vector<17x128xbf16>
    %c0_54 = arith.constant 0 : index
    %c0_55 = arith.constant 0 : index
    %c0_56 = arith.constant 0 : index
    %115 = vector.load %arg6[%c0_54, %c0_55, %c0_56] : memref<1x128x128xbf16, #tpu.memory_space<vmem>>, vector<1x128x128xbf16>
    %116 = vector.shape_cast %115 : vector<1x128x128xbf16> to vector<128x128xbf16>
    %cst_57 = arith.constant dense<0.000000e+00> : vector<17x128xf32>
    %117 = tpu.matmul %114, %116, %cst_57 {dimension_numbers = #tpu.dot_dimension_numbers<[1], [0], [0], [1], [0, 0, 1, 1], [], []>} : vector<17x128xbf16>, vector<128x128xbf16>, vector<17x128xf32> -> vector<17x128xf32>
    %118 = arith.addf %13, %117 : vector<17x128xf32>
    %119 = vector.broadcast %8 : vector<1x128xf32> to vector<17x128xf32>
    %120 = arith.addf %118, %119 : vector<17x128xf32>
    %cst_58 = arith.constant dense<0.000000e+00> : vector<17xf32>
    %121 = vector.multi_reduction <add>, %120, %cst_58 [1] : vector<17x128xf32> to vector<17xf32>
    %122 = vector.shape_cast %121 : vector<17xf32> to vector<17x1xf32>
    %cst_59 = arith.constant 1.280000e+02 : f32
    %123 = vector.broadcast %cst_59 : f32 to vector<17x1xf32>
    %124 = arith.divf %122, %123 : vector<17x1xf32>
    %125 = vector.broadcast %124 : vector<17x1xf32> to vector<17x128xf32>
    %126 = arith.subf %120, %125 : vector<17x128xf32>
    %127 = arith.mulf %126, %126 : vector<17x128xf32>
    %cst_60 = arith.constant dense<0.000000e+00> : vector<17xf32>
    %128 = vector.multi_reduction <add>, %127, %cst_60 [1] : vector<17x128xf32> to vector<17xf32>
    %129 = vector.shape_cast %128 : vector<17xf32> to vector<17x1xf32>
    %cst_61 = arith.constant 1.280000e+02 : f32
    %130 = vector.broadcast %cst_61 : f32 to vector<17x1xf32>
    %131 = arith.divf %129, %130 : vector<17x1xf32>
    %cst_62 = arith.constant 9.99999974E-6 : f32
    %132 = vector.broadcast %cst_62 : f32 to vector<17x1xf32>
    %133 = arith.addf %131, %132 : vector<17x1xf32>
    %134 = math.rsqrt %133 : vector<17x1xf32>
    %135 = vector.broadcast %134 : vector<17x1xf32> to vector<17x128xf32>
    %136 = arith.mulf %126, %135 : vector<17x128xf32>
    %137 = vector.broadcast %9 : vector<1x128xf32> to vector<17x128xf32>
    %138 = arith.mulf %136, %137 : vector<17x128xf32>
    %139 = vector.broadcast %10 : vector<1x128xf32> to vector<17x128xf32>
    %140 = arith.addf %138, %139 : vector<17x128xf32>
    %c0_63 = arith.constant 0 : index
    %c0_64 = arith.constant 0 : index
    %c0_65 = arith.constant 0 : index
    %141 = vector.load %arg7[%c0_63, %c0_64, %c0_65] : memref<1x128x256xbf16, #tpu.memory_space<vmem>>, vector<1x128x256xbf16>
    %142 = vector.shape_cast %141 : vector<1x128x256xbf16> to vector<128x256xbf16>
    %143 = arith.truncf %140 : vector<17x128xf32> to vector<17x128xbf16>
    %cst_66 = arith.constant dense<0.000000e+00> : vector<17x256xf32>
    %144 = tpu.matmul %143, %142, %cst_66 {dimension_numbers = #tpu.dot_dimension_numbers<[1], [0], [0], [1], [0, 0, 1, 1], [], []>} : vector<17x128xbf16>, vector<128x256xbf16>, vector<17x256xf32> -> vector<17x256xf32>
    %145 = vector.broadcast %11 : vector<1x256xf32> to vector<17x256xf32>
    %146 = arith.addf %144, %145 : vector<17x256xf32>
    %cst_67 = arith.constant -1.702000e+00 : f32
    %147 = vector.broadcast %cst_67 : f32 to vector<17x256xf32>
    %148 = arith.mulf %147, %146 : vector<17x256xf32>
    %149 = math.exp %148 : vector<17x256xf32>
    %cst_68 = arith.constant 1.000000e+00 : f32
    %150 = vector.broadcast %cst_68 : f32 to vector<17x256xf32>
    %151 = arith.addf %150, %149 : vector<17x256xf32>
    %152 = arith.divf %146, %151 : vector<17x256xf32>
    %c0_69 = arith.constant 0 : index
    %c0_70 = arith.constant 0 : index
    %c0_71 = arith.constant 0 : index
    %153 = vector.load %arg8[%c0_69, %c0_70, %c0_71] : memref<1x256x128xbf16, #tpu.memory_space<vmem>>, vector<1x256x128xbf16>
    %154 = vector.shape_cast %153 : vector<1x256x128xbf16> to vector<256x128xbf16>
    %155 = arith.truncf %152 : vector<17x256xf32> to vector<17x256xbf16>
    %cst_72 = arith.constant dense<0.000000e+00> : vector<17x128xf32>
    %156 = tpu.matmul %155, %154, %cst_72 {dimension_numbers = #tpu.dot_dimension_numbers<[1], [0], [0], [1], [0, 0, 1, 1], [], []>} : vector<17x256xbf16>, vector<256x128xbf16>, vector<17x128xf32> -> vector<17x128xf32>
    %157 = arith.addf %120, %156 : vector<17x128xf32>
    %158 = vector.broadcast %12 : vector<1x128xf32> to vector<17x128xf32>
    %159 = arith.addf %157, %158 : vector<17x128xf32>
    %c0_73 = arith.constant 0 : index
    %c0_74 = arith.constant 0 : index
    %160 = vector.load %arg11[%c0_73, %c0_74] : memref<17x128xf32, #tpu.memory_space<vmem>>, vector<17x128xf32>
    tpu.vector_store %arg11[%c0_73, %c0_74], %159 {strides = array<i32>} : memref<17x128xf32, #tpu.memory_space<vmem>>, vector<17x128xf32>,
    %c1_i32 = arith.constant 1 : i32
    %161 = arith.cmpi eq, %arg1, %c1_i32 : i32
    %162 = arith.extui %161 : i1 to i32
    %c0_i32_75 = arith.constant 0 : i32
    %163 = arith.cmpi ne, %162, %c0_i32_75 : i32
    scf.if %163 {
      %164 = arith.truncf %159 : vector<17x128xf32> to vector<17x128xbf16>
      %c0_76 = arith.constant 0 : index
      %c0_77 = arith.constant 0 : index
      %c0_78 = arith.constant 0 : index
      %165 = vector.load %arg10[%c0_76, %c0_77, %c0_78] : memref<1x17x128xbf16, #tpu.memory_space<vmem>>, vector<1x17x128xbf16>
      %166 = vector.shape_cast %165 : vector<1x17x128xbf16> to vector<17x128xbf16>
      %167 = vector.shape_cast %164 : vector<17x128xbf16> to vector<1x17x128xbf16>
      tpu.vector_store %arg10[%c0_76, %c0_77, %c0_78], %167 {strides = array<i32>} : memref<1x17x128xbf16, #tpu.memory_space<vmem>>, vector<1x17x128xbf16>,
    } else {
    }
    return
  }
  func.func @transform_0(%arg0: i32, %arg1: i32) -> (i32, i32, i32) {
    %c0_i32 = arith.constant 0 : i32
    %c0_i32_0 = arith.constant 0 : i32
    %c0_i32_1 = arith.constant 0 : i32
    return %arg0, %c0_i32, %c0_i32_0 : i32, i32, i32
  }
  func.func @transform_1(%arg0: i32, %arg1: i32) -> (i32, i32) {
    %c0_i32 = arith.constant 0 : i32
    %c0_i32_0 = arith.constant 0 : i32
    %c0_i32_1 = arith.constant 0 : i32
    return %c0_i32, %c0_i32_0 : i32, i32
  }
  func.func @transform_2(%arg0: i32, %arg1: i32) -> (i32, i32) {
    %c0_i32 = arith.constant 0 : i32
    %c0_i32_0 = arith.constant 0 : i32
    %c0_i32_1 = arith.constant 0 : i32
    return %c0_i32, %c0_i32_0 : i32, i32
  }
  func.func @transform_3(%arg0: i32, %arg1: i32) -> (i32, i32, i32) {
    %c0_i32 = arith.constant 0 : i32
    %c0_i32_0 = arith.constant 0 : i32
    %c0_i32_1 = arith.constant 0 : i32
    return %arg1, %c0_i32, %c0_i32_0 : i32, i32, i32
  }
  func.func @transform_4(%arg0: i32, %arg1: i32) -> (i32, i32, i32) {
    %c0_i32 = arith.constant 0 : i32
    %c0_i32_0 = arith.constant 0 : i32
    %c0_i32_1 = arith.constant 0 : i32
    return %arg1, %c0_i32, %c0_i32_0 : i32, i32, i32
  }
  func.func @transform_5(%arg0: i32, %arg1: i32) -> (i32, i32, i32) {
    %c0_i32 = arith.constant 0 : i32
    %c0_i32_0 = arith.constant 0 : i32
    %c0_i32_1 = arith.constant 0 : i32
    return %arg1, %c0_i32, %c0_i32_0 : i32, i32, i32
  }
  func.func @transform_6(%arg0: i32, %arg1: i32) -> (i32, i32, i32) {
    %c0_i32 = arith.constant 0 : i32
    %c0_i32_0 = arith.constant 0 : i32
    %c0_i32_1 = arith.constant 0 : i32
    return %arg1, %c0_i32, %c0_i32_0 : i32, i32, i32
  }
  func.func @transform_7(%arg0: i32, %arg1: i32) -> (i32, i32, i32) {
    %c0_i32 = arith.constant 0 : i32
    %c0_i32_0 = arith.constant 0 : i32
    %c0_i32_1 = arith.constant 0 : i32
    return %arg1, %c0_i32, %c0_i32_0 : i32, i32, i32
  }
  func.func @transform_8(%arg0: i32, %arg1: i32) -> (i32, i32, i32) {
    %c0_i32 = arith.constant 0 : i32
    %c0_i32_0 = arith.constant 0 : i32
    %c0_i32_1 = arith.constant 0 : i32
    return %arg0, %c0_i32, %c0_i32_0 : i32, i32, i32
  }
}

module attributes {stable_mosaic.version = 11 : i64} {
  func.func @_resampler_stack_kernel(%arg0: i32, %arg1: i32, %arg2: memref<1x17x128xbf16, #tpu.memory_space<vmem>>, %arg3: memref<16x128xf32, #tpu.memory_space<vmem>>, %arg4: memref<128x128xbf16, #tpu.memory_space<vmem>>, %arg5: memref<128x128xbf16, #tpu.memory_space<vmem>>, %arg6: memref<4x128xf32, #tpu.memory_space<vmem>>, %arg7: memref<1x128x128xbf16, #tpu.memory_space<vmem>>, %arg8: memref<1x128x256xbf16, #tpu.memory_space<vmem>>, %arg9: memref<1x128x128xbf16, #tpu.memory_space<vmem>>, %arg10: memref<1x128x512xbf16, #tpu.memory_space<vmem>>, %arg11: memref<1x512x128xbf16, #tpu.memory_space<vmem>>, %arg12: memref<1x8x128xf32, #tpu.memory_space<vmem>>, %arg13: memref<1x16x128xf32, #tpu.memory_space<vmem>>, %arg14: memref<16x128xf32, #tpu.memory_space<vmem>>, %arg15: memref<17x128xf32, #tpu.memory_space<vmem>>, %arg16: memref<17x256xbf16, #tpu.memory_space<vmem>>, %arg17: memref<16x256xbf16, #tpu.memory_space<vmem>>, %arg18: memref<16x128xbf16, #tpu.memory_space<vmem>>) attributes {dimension_semantics = [#tpu.dimension_semantics<parallel>, #tpu.dimension_semantics<arbitrary>], iteration_bounds = array<i64: 2, 2>, scalar_prefetch = 0 : i64, scratch_operands = 5 : i64, tpu.core_type = #tpu.core_type<tc>, window_params = [{transform_indices = @transform_0, window_bounds = array<i64: 1, 17, 128>}, {pipeline_mode = #tpu.pipeline_mode<synchronous>, transform_indices = @transform_1, window_bounds = array<i64: 16, 128>}, {pipeline_mode = #tpu.pipeline_mode<synchronous>, transform_indices = @transform_2, window_bounds = array<i64: 128, 128>}, {pipeline_mode = #tpu.pipeline_mode<synchronous>, transform_indices = @transform_3, window_bounds = array<i64: 128, 128>}, {pipeline_mode = #tpu.pipeline_mode<synchronous>, transform_indices = @transform_4, window_bounds = array<i64: 4, 128>}, {transform_indices = @transform_5, window_bounds = array<i64: 1, 128, 128>}, {transform_indices = @transform_6, window_bounds = array<i64: 1, 128, 256>}, {transform_indices = @transform_7, window_bounds = array<i64: 1, 128, 128>}, {transform_indices = @transform_8, window_bounds = array<i64: 1, 128, 512>}, {transform_indices = @transform_9, window_bounds = array<i64: 1, 512, 128>}, {transform_indices = @transform_10, window_bounds = array<i64: 1, 8, 128>}, {transform_indices = @transform_11, window_bounds = array<i64: 1, 16, 128>}]} {
    %c0 = arith.constant 0 : index
    %c0_0 = arith.constant 0 : index
    %0 = vector.load %arg6[%c0, %c0_0] : memref<4x128xf32, #tpu.memory_space<vmem>>, vector<4x128xf32>
    %c0_i32 = arith.constant 0 : i32
    %1 = arith.cmpi eq, %arg1, %c0_i32 : i32
    %2 = arith.extui %1 : i1 to i32
    %c0_i32_1 = arith.constant 0 : i32
    %3 = arith.cmpi ne, %2, %c0_i32_1 : i32
    scf.if %3 {
      %c0_125 = arith.constant 0 : index
      %c0_126 = arith.constant 0 : index
      %254 = vector.load %arg3[%c0_125, %c0_126] : memref<16x128xf32, #tpu.memory_space<vmem>>, vector<16x128xf32>
      %c0_127 = arith.constant 0 : index
      %c0_128 = arith.constant 0 : index
      %255 = vector.load %arg14[%c0_127, %c0_128] : memref<16x128xf32, #tpu.memory_space<vmem>>, vector<16x128xf32>
      tpu.vector_store %arg14[%c0_127, %c0_128], %254 {strides = array<i32>} : memref<16x128xf32, #tpu.memory_space<vmem>>, vector<16x128xf32>,
      %c0_129 = arith.constant 0 : index
      %c0_130 = arith.constant 0 : index
      %c0_131 = arith.constant 0 : index
      %256 = vector.load %arg2[%c0_129, %c0_130, %c0_131] : memref<1x17x128xbf16, #tpu.memory_space<vmem>>, vector<1x17x128xbf16>
      %257 = vector.shape_cast %256 : vector<1x17x128xbf16> to vector<17x128xbf16>
      %c0_132 = arith.constant 0 : index
      %c0_133 = arith.constant 0 : index
      %258 = vector.load %arg4[%c0_132, %c0_133] : memref<128x128xbf16, #tpu.memory_space<vmem>>, vector<128x128xbf16>
      %cst_134 = arith.constant dense<0.000000e+00> : vector<17x128xf32>
      %259 = tpu.matmul %257, %258, %cst_134 {dimension_numbers = #tpu.dot_dimension_numbers<[1], [0], [0], [1], [0, 0, 1, 1], [], []>} : vector<17x128xbf16>, vector<128x128xbf16>, vector<17x128xf32> -> vector<17x128xf32>
      %260 = vector.extract_strided_slice %0 {offsets = [0, 0], sizes = [1, 128], strides = [1, 1]} : vector<4x128xf32> to vector<1x128xf32>
      %261 = vector.broadcast %260 : vector<1x128xf32> to vector<17x128xf32>
      %262 = arith.addf %259, %261 : vector<17x128xf32>
      %c0_135 = arith.constant 0 : index
      %c0_136 = arith.constant 0 : index
      %263 = vector.load %arg15[%c0_135, %c0_136] : memref<17x128xf32, #tpu.memory_space<vmem>>, vector<17x128xf32>
      tpu.vector_store %arg15[%c0_135, %c0_136], %262 {strides = array<i32>} : memref<17x128xf32, #tpu.memory_space<vmem>>, vector<17x128xf32>,
    } else {
    }
    %c0_2 = arith.constant 0 : index
    %c0_3 = arith.constant 0 : index
    %c0_4 = arith.constant 0 : index
    %4 = vector.load %arg12[%c0_2, %c0_3, %c0_4] : memref<1x8x128xf32, #tpu.memory_space<vmem>>, vector<1x8x128xf32>
    %5 = vector.shape_cast %4 : vector<1x8x128xf32> to vector<8x128xf32>
    %6 = vector.extract_strided_slice %5 {offsets = [0, 0], sizes = [1, 128], strides = [1, 1]} : vector<8x128xf32> to vector<1x128xf32>
    %7 = vector.extract_strided_slice %5 {offsets = [1, 0], sizes = [1, 128], strides = [1, 1]} : vector<8x128xf32> to vector<1x128xf32>
    %8 = vector.extract_strided_slice %5 {offsets = [2, 0], sizes = [1, 128], strides = [1, 1]} : vector<8x128xf32> to vector<1x128xf32>
    %9 = vector.extract_strided_slice %5 {offsets = [3, 0], sizes = [1, 128], strides = [1, 1]} : vector<8x128xf32> to vector<1x128xf32>
    %10 = vector.extract_strided_slice %5 {offsets = [4, 0], sizes = [1, 128], strides = [1, 1]} : vector<8x128xf32> to vector<1x128xf32>
    %11 = vector.extract_strided_slice %5 {offsets = [5, 0], sizes = [1, 128], strides = [1, 1]} : vector<8x128xf32> to vector<1x128xf32>
    %c0_5 = arith.constant 0 : index
    %c0_6 = arith.constant 0 : index
    %12 = vector.load %arg14[%c0_5, %c0_6] : memref<16x128xf32, #tpu.memory_space<vmem>>, vector<16x128xf32>
    %c0_7 = arith.constant 0 : index
    %c0_8 = arith.constant 0 : index
    %13 = vector.load %arg15[%c0_7, %c0_8] : memref<17x128xf32, #tpu.memory_space<vmem>>, vector<17x128xf32>
    %cst = arith.constant dense<0.000000e+00> : vector<17xf32>
    %14 = vector.multi_reduction <add>, %13, %cst [1] : vector<17x128xf32> to vector<17xf32>
    %15 = vector.shape_cast %14 : vector<17xf32> to vector<17x1xf32>
    %cst_9 = arith.constant 1.280000e+02 : f32
    %16 = vector.broadcast %cst_9 : f32 to vector<17x1xf32>
    %17 = arith.divf %15, %16 : vector<17x1xf32>
    %18 = vector.broadcast %17 : vector<17x1xf32> to vector<17x128xf32>
    %19 = arith.subf %13, %18 : vector<17x128xf32>
    %20 = arith.mulf %19, %19 : vector<17x128xf32>
    %cst_10 = arith.constant dense<0.000000e+00> : vector<17xf32>
    %21 = vector.multi_reduction <add>, %20, %cst_10 [1] : vector<17x128xf32> to vector<17xf32>
    %22 = vector.shape_cast %21 : vector<17xf32> to vector<17x1xf32>
    %cst_11 = arith.constant 1.280000e+02 : f32
    %23 = vector.broadcast %cst_11 : f32 to vector<17x1xf32>
    %24 = arith.divf %22, %23 : vector<17x1xf32>
    %cst_12 = arith.constant 9.99999974E-6 : f32
    %25 = vector.broadcast %cst_12 : f32 to vector<17x1xf32>
    %26 = arith.addf %24, %25 : vector<17x1xf32>
    %27 = math.rsqrt %26 : vector<17x1xf32>
    %28 = vector.broadcast %27 : vector<17x1xf32> to vector<17x128xf32>
    %29 = arith.mulf %19, %28 : vector<17x128xf32>
    %30 = vector.broadcast %6 : vector<1x128xf32> to vector<17x128xf32>
    %31 = arith.mulf %29, %30 : vector<17x128xf32>
    %32 = vector.broadcast %7 : vector<1x128xf32> to vector<17x128xf32>
    %33 = arith.addf %31, %32 : vector<17x128xf32>
    %cst_13 = arith.constant dense<0.000000e+00> : vector<16xf32>
    %34 = vector.multi_reduction <add>, %12, %cst_13 [1] : vector<16x128xf32> to vector<16xf32>
    %35 = vector.shape_cast %34 : vector<16xf32> to vector<16x1xf32>
    %cst_14 = arith.constant 1.280000e+02 : f32
    %36 = vector.broadcast %cst_14 : f32 to vector<16x1xf32>
    %37 = arith.divf %35, %36 : vector<16x1xf32>
    %38 = vector.broadcast %37 : vector<16x1xf32> to vector<16x128xf32>
    %39 = arith.subf %12, %38 : vector<16x128xf32>
    %40 = arith.mulf %39, %39 : vector<16x128xf32>
    %cst_15 = arith.constant dense<0.000000e+00> : vector<16xf32>
    %41 = vector.multi_reduction <add>, %40, %cst_15 [1] : vector<16x128xf32> to vector<16xf32>
    %42 = vector.shape_cast %41 : vector<16xf32> to vector<16x1xf32>
    %cst_16 = arith.constant 1.280000e+02 : f32
    %43 = vector.broadcast %cst_16 : f32 to vector<16x1xf32>
    %44 = arith.divf %42, %43 : vector<16x1xf32>
    %cst_17 = arith.constant 9.99999974E-6 : f32
    %45 = vector.broadcast %cst_17 : f32 to vector<16x1xf32>
    %46 = arith.addf %44, %45 : vector<16x1xf32>
    %47 = math.rsqrt %46 : vector<16x1xf32>
    %48 = vector.broadcast %47 : vector<16x1xf32> to vector<16x128xf32>
    %49 = arith.mulf %39, %48 : vector<16x128xf32>
    %50 = vector.broadcast %8 : vector<1x128xf32> to vector<16x128xf32>
    %51 = arith.mulf %49, %50 : vector<16x128xf32>
    %52 = vector.broadcast %9 : vector<1x128xf32> to vector<16x128xf32>
    %53 = arith.addf %51, %52 : vector<16x128xf32>
    %c0_18 = arith.constant 0 : index
    %c0_19 = arith.constant 0 : index
    %c0_20 = arith.constant 0 : index
    %54 = vector.load %arg7[%c0_18, %c0_19, %c0_20] : memref<1x128x128xbf16, #tpu.memory_space<vmem>>, vector<1x128x128xbf16>
    %55 = vector.shape_cast %54 : vector<1x128x128xbf16> to vector<128x128xbf16>
    %56 = arith.truncf %53 : vector<16x128xf32> to vector<16x128xbf16>
    %cst_21 = arith.constant dense<0.000000e+00> : vector<16x128xf32>
    %57 = tpu.matmul %56, %55, %cst_21 {dimension_numbers = #tpu.dot_dimension_numbers<[1], [0], [0], [1], [0, 0, 1, 1], [], []>} : vector<16x128xbf16>, vector<128x128xbf16>, vector<16x128xf32> -> vector<16x128xf32>
    %58 = arith.truncf %57 : vector<16x128xf32> to vector<16x128xbf16>
    %c0_22 = arith.constant 0 : index
    %c0_23 = arith.constant 0 : index
    %c0_24 = arith.constant 0 : index
    %59 = vector.load %arg8[%c0_22, %c0_23, %c0_24] : memref<1x128x256xbf16, #tpu.memory_space<vmem>>, vector<1x128x256xbf16>
    %60 = vector.shape_cast %59 : vector<1x128x256xbf16> to vector<128x256xbf16>
    %61 = arith.truncf %33 : vector<17x128xf32> to vector<17x128xbf16>
    %cst_25 = arith.constant dense<0.000000e+00> : vector<17x256xf32>
    %62 = tpu.matmul %61, %60, %cst_25 {dimension_numbers = #tpu.dot_dimension_numbers<[1], [0], [0], [1], [0, 0, 1, 1], [], []>} : vector<17x128xbf16>, vector<128x256xbf16>, vector<17x256xf32> -> vector<17x256xf32>
    %63 = arith.truncf %62 : vector<17x256xf32> to vector<17x256xbf16>
    %c0_26 = arith.constant 0 : index
    %c0_27 = arith.constant 0 : index
    %64 = vector.load %arg16[%c0_26, %c0_27] : memref<17x256xbf16, #tpu.memory_space<vmem>>, vector<17x256xbf16>
    tpu.vector_store %arg16[%c0_26, %c0_27], %63 {strides = array<i32>} : memref<17x256xbf16, #tpu.memory_space<vmem>>, vector<17x256xbf16>,
    %c0_28 = arith.constant 0 : index
    %c0_29 = arith.constant 0 : index
    %c0_30 = arith.constant 0 : index
    %65 = vector.load %arg8[%c0_28, %c0_29, %c0_30] : memref<1x128x256xbf16, #tpu.memory_space<vmem>>, vector<1x128x256xbf16>
    %66 = vector.shape_cast %65 : vector<1x128x256xbf16> to vector<128x256xbf16>
    %67 = arith.truncf %53 : vector<16x128xf32> to vector<16x128xbf16>
    %cst_31 = arith.constant dense<0.000000e+00> : vector<16x256xf32>
    %68 = tpu.matmul %67, %66, %cst_31 {dimension_numbers = #tpu.dot_dimension_numbers<[1], [0], [0], [1], [0, 0, 1, 1], [], []>} : vector<16x128xbf16>, vector<128x256xbf16>, vector<16x256xf32> -> vector<16x256xf32>
    %69 = arith.truncf %68 : vector<16x256xf32> to vector<16x256xbf16>
    %c0_32 = arith.constant 0 : index
    %c0_33 = arith.constant 0 : index
    %70 = vector.load %arg17[%c0_32, %c0_33] : memref<16x256xbf16, #tpu.memory_space<vmem>>, vector<16x256xbf16>
    tpu.vector_store %arg17[%c0_32, %c0_33], %69 {strides = array<i32>} : memref<16x256xbf16, #tpu.memory_space<vmem>>, vector<16x256xbf16>,
    %71 = vector.extract_strided_slice %58 {offsets = [0, 0], sizes = [16, 32], strides = [1, 1]} : vector<16x128xbf16> to vector<16x32xbf16>
    %c0_34 = arith.constant 0 : index
    %c0_35 = arith.constant 0 : index
    %72 = vector.load %arg16[%c0_34, %c0_35] : memref<17x256xbf16, #tpu.memory_space<vmem>>, vector<17x32xbf16>
    %c0_36 = arith.constant 0 : index
    %c0_37 = arith.constant 0 : index
    %73 = vector.load %arg17[%c0_36, %c0_37] : memref<16x256xbf16, #tpu.memory_space<vmem>>, vector<16x32xbf16>
    %c0_38 = arith.constant 0 : index
    %c128 = arith.constant 128 : index
    %74 = vector.load %arg16[%c0_38, %c128] : memref<17x256xbf16, #tpu.memory_space<vmem>>, vector<17x32xbf16>
    %c0_39 = arith.constant 0 : index
    %c128_40 = arith.constant 128 : index
    %75 = vector.load %arg17[%c0_39, %c128_40] : memref<16x256xbf16, #tpu.memory_space<vmem>>, vector<16x32xbf16>
    %cst_41 = arith.constant dense<0.000000e+00> : vector<16x17xf32>
    %76 = tpu.matmul %71, %72, %cst_41 {dimension_numbers = #tpu.dot_dimension_numbers<[1], [1], [0], [0], [0, 0, 1, 0], [], []>} : vector<16x32xbf16>, vector<17x32xbf16>, vector<16x17xf32> -> vector<16x17xf32>
    %cst_42 = arith.constant dense<0.000000e+00> : vector<16x16xf32>
    %77 = tpu.matmul %71, %73, %cst_42 {dimension_numbers = #tpu.dot_dimension_numbers<[1], [1], [0], [0], [0, 0, 1, 0], [], []>} : vector<16x32xbf16>, vector<16x32xbf16>, vector<16x16xf32> -> vector<16x16xf32>
    %cst_43 = arith.constant dense<0xFF800000> : vector<16xf32>
    %78 = vector.multi_reduction <maximumf>, %76, %cst_43 [1] : vector<16x17xf32> to vector<16xf32>
    %79 = vector.shape_cast %78 : vector<16xf32> to vector<16x1xf32>
    %cst_44 = arith.constant dense<0xFF800000> : vector<16xf32>
    %80 = vector.multi_reduction <maximumf>, %77, %cst_44 [1] : vector<16x16xf32> to vector<16xf32>
    %81 = vector.shape_cast %80 : vector<16xf32> to vector<16x1xf32>
    %82 = arith.maximumf %79, %81 : vector<16x1xf32>
    %83 = vector.broadcast %82 : vector<16x1xf32> to vector<16x17xf32>
    %84 = arith.subf %76, %83 : vector<16x17xf32>
    %85 = math.exp %84 : vector<16x17xf32>
    %86 = vector.broadcast %82 : vector<16x1xf32> to vector<16x16xf32>
    %87 = arith.subf %77, %86 : vector<16x16xf32>
    %88 = math.exp %87 : vector<16x16xf32>
    %cst_45 = arith.constant dense<0.000000e+00> : vector<16xf32>
    %89 = vector.multi_reduction <add>, %85, %cst_45 [1] : vector<16x17xf32> to vector<16xf32>
    %90 = vector.shape_cast %89 : vector<16xf32> to vector<16x1xf32>
    %cst_46 = arith.constant dense<0.000000e+00> : vector<16xf32>
    %91 = vector.multi_reduction <add>, %88, %cst_46 [1] : vector<16x16xf32> to vector<16xf32>
    %92 = vector.shape_cast %91 : vector<16xf32> to vector<16x1xf32>
    %93 = arith.addf %90, %92 : vector<16x1xf32>
    %94 = arith.truncf %85 : vector<16x17xf32> to vector<16x17xbf16>
    %cst_47 = arith.constant dense<0.000000e+00> : vector<16x32xf32>
    %95 = tpu.matmul %94, %74, %cst_47 {dimension_numbers = #tpu.dot_dimension_numbers<[1], [0], [0], [1], [0, 0, 1, 1], [], []>} : vector<16x17xbf16>, vector<17x32xbf16>, vector<16x32xf32> -> vector<16x32xf32>
    %96 = arith.truncf %88 : vector<16x16xf32> to vector<16x16xbf16>
    %cst_48 = arith.constant dense<0.000000e+00> : vector<16x32xf32>
    %97 = tpu.matmul %96, %75, %cst_48 {dimension_numbers = #tpu.dot_dimension_numbers<[1], [0], [0], [1], [0, 0, 1, 1], [], []>} : vector<16x16xbf16>, vector<16x32xbf16>, vector<16x32xf32> -> vector<16x32xf32>
    %98 = arith.addf %95, %97 : vector<16x32xf32>
    %99 = tpu.reciprocal %93 {approx = true} : vector<16x1xf32> -> vector<16x1xf32>
    %100 = vector.broadcast %99 : vector<16x1xf32> to vector<16x32xf32>
    %101 = arith.mulf %98, %100 : vector<16x32xf32>
    %102 = arith.truncf %101 : vector<16x32xf32> to vector<16x32xbf16>
    %c0_49 = arith.constant 0 : index
    %c0_50 = arith.constant 0 : index
    %103 = vector.load %arg18[%c0_49, %c0_50] : memref<16x128xbf16, #tpu.memory_space<vmem>>, vector<16x32xbf16>
    tpu.vector_store %arg18[%c0_49, %c0_50], %102 {strides = array<i32>} : memref<16x128xbf16, #tpu.memory_space<vmem>>, vector<16x32xbf16>,
    %104 = vector.extract_strided_slice %58 {offsets = [0, 32], sizes = [16, 32], strides = [1, 1]} : vector<16x128xbf16> to vector<16x32xbf16>
    %c0_51 = arith.constant 0 : index
    %c32 = arith.constant 32 : index
    %105 = vector.load %arg16[%c0_51, %c32] : memref<17x256xbf16, #tpu.memory_space<vmem>>, vector<17x32xbf16>
    %c0_52 = arith.constant 0 : index
    %c32_53 = arith.constant 32 : index
    %106 = vector.load %arg17[%c0_52, %c32_53] : memref<16x256xbf16, #tpu.memory_space<vmem>>, vector<16x32xbf16>
    %c0_54 = arith.constant 0 : index
    %c160 = arith.constant 160 : index
    %107 = vector.load %arg16[%c0_54, %c160] : memref<17x256xbf16, #tpu.memory_space<vmem>>, vector<17x32xbf16>
    %c0_55 = arith.constant 0 : index
    %c160_56 = arith.constant 160 : index
    %108 = vector.load %arg17[%c0_55, %c160_56] : memref<16x256xbf16, #tpu.memory_space<vmem>>, vector<16x32xbf16>
    %cst_57 = arith.constant dense<0.000000e+00> : vector<16x17xf32>
    %109 = tpu.matmul %104, %105, %cst_57 {dimension_numbers = #tpu.dot_dimension_numbers<[1], [1], [0], [0], [0, 0, 1, 0], [], []>} : vector<16x32xbf16>, vector<17x32xbf16>, vector<16x17xf32> -> vector<16x17xf32>
    %cst_58 = arith.constant dense<0.000000e+00> : vector<16x16xf32>
    %110 = tpu.matmul %104, %106, %cst_58 {dimension_numbers = #tpu.dot_dimension_numbers<[1], [1], [0], [0], [0, 0, 1, 0], [], []>} : vector<16x32xbf16>, vector<16x32xbf16>, vector<16x16xf32> -> vector<16x16xf32>
    %cst_59 = arith.constant dense<0xFF800000> : vector<16xf32>
    %111 = vector.multi_reduction <maximumf>, %109, %cst_59 [1] : vector<16x17xf32> to vector<16xf32>
    %112 = vector.shape_cast %111 : vector<16xf32> to vector<16x1xf32>
    %cst_60 = arith.constant dense<0xFF800000> : vector<16xf32>
    %113 = vector.multi_reduction <maximumf>, %110, %cst_60 [1] : vector<16x16xf32> to vector<16xf32>
    %114 = vector.shape_cast %113 : vector<16xf32> to vector<16x1xf32>
    %115 = arith.maximumf %112, %114 : vector<16x1xf32>
    %116 = vector.broadcast %115 : vector<16x1xf32> to vector<16x17xf32>
    %117 = arith.subf %109, %116 : vector<16x17xf32>
    %118 = math.exp %117 : vector<16x17xf32>
    %119 = vector.broadcast %115 : vector<16x1xf32> to vector<16x16xf32>
    %120 = arith.subf %110, %119 : vector<16x16xf32>
    %121 = math.exp %120 : vector<16x16xf32>
    %cst_61 = arith.constant dense<0.000000e+00> : vector<16xf32>
    %122 = vector.multi_reduction <add>, %118, %cst_61 [1] : vector<16x17xf32> to vector<16xf32>
    %123 = vector.shape_cast %122 : vector<16xf32> to vector<16x1xf32>
    %cst_62 = arith.constant dense<0.000000e+00> : vector<16xf32>
    %124 = vector.multi_reduction <add>, %121, %cst_62 [1] : vector<16x16xf32> to vector<16xf32>
    %125 = vector.shape_cast %124 : vector<16xf32> to vector<16x1xf32>
    %126 = arith.addf %123, %125 : vector<16x1xf32>
    %127 = arith.truncf %118 : vector<16x17xf32> to vector<16x17xbf16>
    %cst_63 = arith.constant dense<0.000000e+00> : vector<16x32xf32>
    %128 = tpu.matmul %127, %107, %cst_63 {dimension_numbers = #tpu.dot_dimension_numbers<[1], [0], [0], [1], [0, 0, 1, 1], [], []>} : vector<16x17xbf16>, vector<17x32xbf16>, vector<16x32xf32> -> vector<16x32xf32>
    %129 = arith.truncf %121 : vector<16x16xf32> to vector<16x16xbf16>
    %cst_64 = arith.constant dense<0.000000e+00> : vector<16x32xf32>
    %130 = tpu.matmul %129, %108, %cst_64 {dimension_numbers = #tpu.dot_dimension_numbers<[1], [0], [0], [1], [0, 0, 1, 1], [], []>} : vector<16x16xbf16>, vector<16x32xbf16>, vector<16x32xf32> -> vector<16x32xf32>
    %131 = arith.addf %128, %130 : vector<16x32xf32>
    %132 = tpu.reciprocal %126 {approx = true} : vector<16x1xf32> -> vector<16x1xf32>
    %133 = vector.broadcast %132 : vector<16x1xf32> to vector<16x32xf32>
    %134 = arith.mulf %131, %133 : vector<16x32xf32>
    %135 = arith.truncf %134 : vector<16x32xf32> to vector<16x32xbf16>
    %c0_65 = arith.constant 0 : index
    %c32_66 = arith.constant 32 : index
    %136 = vector.load %arg18[%c0_65, %c32_66] : memref<16x128xbf16, #tpu.memory_space<vmem>>, vector<16x32xbf16>
    tpu.vector_store %arg18[%c0_65, %c32_66], %135 {strides = array<i32>} : memref<16x128xbf16, #tpu.memory_space<vmem>>, vector<16x32xbf16>,
    %137 = vector.extract_strided_slice %58 {offsets = [0, 64], sizes = [16, 32], strides = [1, 1]} : vector<16x128xbf16> to vector<16x32xbf16>
    %c0_67 = arith.constant 0 : index
    %c64 = arith.constant 64 : index
    %138 = vector.load %arg16[%c0_67, %c64] : memref<17x256xbf16, #tpu.memory_space<vmem>>, vector<17x32xbf16>
    %c0_68 = arith.constant 0 : index
    %c64_69 = arith.constant 64 : index
    %139 = vector.load %arg17[%c0_68, %c64_69] : memref<16x256xbf16, #tpu.memory_space<vmem>>, vector<16x32xbf16>
    %c0_70 = arith.constant 0 : index
    %c192 = arith.constant 192 : index
    %140 = vector.load %arg16[%c0_70, %c192] : memref<17x256xbf16, #tpu.memory_space<vmem>>, vector<17x32xbf16>
    %c0_71 = arith.constant 0 : index
    %c192_72 = arith.constant 192 : index
    %141 = vector.load %arg17[%c0_71, %c192_72] : memref<16x256xbf16, #tpu.memory_space<vmem>>, vector<16x32xbf16>
    %cst_73 = arith.constant dense<0.000000e+00> : vector<16x17xf32>
    %142 = tpu.matmul %137, %138, %cst_73 {dimension_numbers = #tpu.dot_dimension_numbers<[1], [1], [0], [0], [0, 0, 1, 0], [], []>} : vector<16x32xbf16>, vector<17x32xbf16>, vector<16x17xf32> -> vector<16x17xf32>
    %cst_74 = arith.constant dense<0.000000e+00> : vector<16x16xf32>
    %143 = tpu.matmul %137, %139, %cst_74 {dimension_numbers = #tpu.dot_dimension_numbers<[1], [1], [0], [0], [0, 0, 1, 0], [], []>} : vector<16x32xbf16>, vector<16x32xbf16>, vector<16x16xf32> -> vector<16x16xf32>
    %cst_75 = arith.constant dense<0xFF800000> : vector<16xf32>
    %144 = vector.multi_reduction <maximumf>, %142, %cst_75 [1] : vector<16x17xf32> to vector<16xf32>
    %145 = vector.shape_cast %144 : vector<16xf32> to vector<16x1xf32>
    %cst_76 = arith.constant dense<0xFF800000> : vector<16xf32>
    %146 = vector.multi_reduction <maximumf>, %143, %cst_76 [1] : vector<16x16xf32> to vector<16xf32>
    %147 = vector.shape_cast %146 : vector<16xf32> to vector<16x1xf32>
    %148 = arith.maximumf %145, %147 : vector<16x1xf32>
    %149 = vector.broadcast %148 : vector<16x1xf32> to vector<16x17xf32>
    %150 = arith.subf %142, %149 : vector<16x17xf32>
    %151 = math.exp %150 : vector<16x17xf32>
    %152 = vector.broadcast %148 : vector<16x1xf32> to vector<16x16xf32>
    %153 = arith.subf %143, %152 : vector<16x16xf32>
    %154 = math.exp %153 : vector<16x16xf32>
    %cst_77 = arith.constant dense<0.000000e+00> : vector<16xf32>
    %155 = vector.multi_reduction <add>, %151, %cst_77 [1] : vector<16x17xf32> to vector<16xf32>
    %156 = vector.shape_cast %155 : vector<16xf32> to vector<16x1xf32>
    %cst_78 = arith.constant dense<0.000000e+00> : vector<16xf32>
    %157 = vector.multi_reduction <add>, %154, %cst_78 [1] : vector<16x16xf32> to vector<16xf32>
    %158 = vector.shape_cast %157 : vector<16xf32> to vector<16x1xf32>
    %159 = arith.addf %156, %158 : vector<16x1xf32>
    %160 = arith.truncf %151 : vector<16x17xf32> to vector<16x17xbf16>
    %cst_79 = arith.constant dense<0.000000e+00> : vector<16x32xf32>
    %161 = tpu.matmul %160, %140, %cst_79 {dimension_numbers = #tpu.dot_dimension_numbers<[1], [0], [0], [1], [0, 0, 1, 1], [], []>} : vector<16x17xbf16>, vector<17x32xbf16>, vector<16x32xf32> -> vector<16x32xf32>
    %162 = arith.truncf %154 : vector<16x16xf32> to vector<16x16xbf16>
    %cst_80 = arith.constant dense<0.000000e+00> : vector<16x32xf32>
    %163 = tpu.matmul %162, %141, %cst_80 {dimension_numbers = #tpu.dot_dimension_numbers<[1], [0], [0], [1], [0, 0, 1, 1], [], []>} : vector<16x16xbf16>, vector<16x32xbf16>, vector<16x32xf32> -> vector<16x32xf32>
    %164 = arith.addf %161, %163 : vector<16x32xf32>
    %165 = tpu.reciprocal %159 {approx = true} : vector<16x1xf32> -> vector<16x1xf32>
    %166 = vector.broadcast %165 : vector<16x1xf32> to vector<16x32xf32>
    %167 = arith.mulf %164, %166 : vector<16x32xf32>
    %168 = arith.truncf %167 : vector<16x32xf32> to vector<16x32xbf16>
    %c0_81 = arith.constant 0 : index
    %c64_82 = arith.constant 64 : index
    %169 = vector.load %arg18[%c0_81, %c64_82] : memref<16x128xbf16, #tpu.memory_space<vmem>>, vector<16x32xbf16>
    tpu.vector_store %arg18[%c0_81, %c64_82], %168 {strides = array<i32>} : memref<16x128xbf16, #tpu.memory_space<vmem>>, vector<16x32xbf16>,
    %170 = vector.extract_strided_slice %58 {offsets = [0, 96], sizes = [16, 32], strides = [1, 1]} : vector<16x128xbf16> to vector<16x32xbf16>
    %c0_83 = arith.constant 0 : index
    %c96 = arith.constant 96 : index
    %171 = vector.load %arg16[%c0_83, %c96] : memref<17x256xbf16, #tpu.memory_space<vmem>>, vector<17x32xbf16>
    %c0_84 = arith.constant 0 : index
    %c96_85 = arith.constant 96 : index
    %172 = vector.load %arg17[%c0_84, %c96_85] : memref<16x256xbf16, #tpu.memory_space<vmem>>, vector<16x32xbf16>
    %c0_86 = arith.constant 0 : index
    %c224 = arith.constant 224 : index
    %173 = vector.load %arg16[%c0_86, %c224] : memref<17x256xbf16, #tpu.memory_space<vmem>>, vector<17x32xbf16>
    %c0_87 = arith.constant 0 : index
    %c224_88 = arith.constant 224 : index
    %174 = vector.load %arg17[%c0_87, %c224_88] : memref<16x256xbf16, #tpu.memory_space<vmem>>, vector<16x32xbf16>
    %cst_89 = arith.constant dense<0.000000e+00> : vector<16x17xf32>
    %175 = tpu.matmul %170, %171, %cst_89 {dimension_numbers = #tpu.dot_dimension_numbers<[1], [1], [0], [0], [0, 0, 1, 0], [], []>} : vector<16x32xbf16>, vector<17x32xbf16>, vector<16x17xf32> -> vector<16x17xf32>
    %cst_90 = arith.constant dense<0.000000e+00> : vector<16x16xf32>
    %176 = tpu.matmul %170, %172, %cst_90 {dimension_numbers = #tpu.dot_dimension_numbers<[1], [1], [0], [0], [0, 0, 1, 0], [], []>} : vector<16x32xbf16>, vector<16x32xbf16>, vector<16x16xf32> -> vector<16x16xf32>
    %cst_91 = arith.constant dense<0xFF800000> : vector<16xf32>
    %177 = vector.multi_reduction <maximumf>, %175, %cst_91 [1] : vector<16x17xf32> to vector<16xf32>
    %178 = vector.shape_cast %177 : vector<16xf32> to vector<16x1xf32>
    %cst_92 = arith.constant dense<0xFF800000> : vector<16xf32>
    %179 = vector.multi_reduction <maximumf>, %176, %cst_92 [1] : vector<16x16xf32> to vector<16xf32>
    %180 = vector.shape_cast %179 : vector<16xf32> to vector<16x1xf32>
    %181 = arith.maximumf %178, %180 : vector<16x1xf32>
    %182 = vector.broadcast %181 : vector<16x1xf32> to vector<16x17xf32>
    %183 = arith.subf %175, %182 : vector<16x17xf32>
    %184 = math.exp %183 : vector<16x17xf32>
    %185 = vector.broadcast %181 : vector<16x1xf32> to vector<16x16xf32>
    %186 = arith.subf %176, %185 : vector<16x16xf32>
    %187 = math.exp %186 : vector<16x16xf32>
    %cst_93 = arith.constant dense<0.000000e+00> : vector<16xf32>
    %188 = vector.multi_reduction <add>, %184, %cst_93 [1] : vector<16x17xf32> to vector<16xf32>
    %189 = vector.shape_cast %188 : vector<16xf32> to vector<16x1xf32>
    %cst_94 = arith.constant dense<0.000000e+00> : vector<16xf32>
    %190 = vector.multi_reduction <add>, %187, %cst_94 [1] : vector<16x16xf32> to vector<16xf32>
    %191 = vector.shape_cast %190 : vector<16xf32> to vector<16x1xf32>
    %192 = arith.addf %189, %191 : vector<16x1xf32>
    %193 = arith.truncf %184 : vector<16x17xf32> to vector<16x17xbf16>
    %cst_95 = arith.constant dense<0.000000e+00> : vector<16x32xf32>
    %194 = tpu.matmul %193, %173, %cst_95 {dimension_numbers = #tpu.dot_dimension_numbers<[1], [0], [0], [1], [0, 0, 1, 1], [], []>} : vector<16x17xbf16>, vector<17x32xbf16>, vector<16x32xf32> -> vector<16x32xf32>
    %195 = arith.truncf %187 : vector<16x16xf32> to vector<16x16xbf16>
    %cst_96 = arith.constant dense<0.000000e+00> : vector<16x32xf32>
    %196 = tpu.matmul %195, %174, %cst_96 {dimension_numbers = #tpu.dot_dimension_numbers<[1], [0], [0], [1], [0, 0, 1, 1], [], []>} : vector<16x16xbf16>, vector<16x32xbf16>, vector<16x32xf32> -> vector<16x32xf32>
    %197 = arith.addf %194, %196 : vector<16x32xf32>
    %198 = tpu.reciprocal %192 {approx = true} : vector<16x1xf32> -> vector<16x1xf32>
    %199 = vector.broadcast %198 : vector<16x1xf32> to vector<16x32xf32>
    %200 = arith.mulf %197, %199 : vector<16x32xf32>
    %201 = arith.truncf %200 : vector<16x32xf32> to vector<16x32xbf16>
    %c0_97 = arith.constant 0 : index
    %c96_98 = arith.constant 96 : index
    %202 = vector.load %arg18[%c0_97, %c96_98] : memref<16x128xbf16, #tpu.memory_space<vmem>>, vector<16x32xbf16>
    tpu.vector_store %arg18[%c0_97, %c96_98], %201 {strides = array<i32>} : memref<16x128xbf16, #tpu.memory_space<vmem>>, vector<16x32xbf16>,
    %c0_99 = arith.constant 0 : index
    %c0_100 = arith.constant 0 : index
    %203 = vector.load %arg18[%c0_99, %c0_100] : memref<16x128xbf16, #tpu.memory_space<vmem>>, vector<16x128xbf16>
    %c0_101 = arith.constant 0 : index
    %c0_102 = arith.constant 0 : index
    %c0_103 = arith.constant 0 : index
    %204 = vector.load %arg9[%c0_101, %c0_102, %c0_103] : memref<1x128x128xbf16, #tpu.memory_space<vmem>>, vector<1x128x128xbf16>
    %205 = vector.shape_cast %204 : vector<1x128x128xbf16> to vector<128x128xbf16>
    %cst_104 = arith.constant dense<0.000000e+00> : vector<16x128xf32>
    %206 = tpu.matmul %203, %205, %cst_104 {dimension_numbers = #tpu.dot_dimension_numbers<[1], [0], [0], [1], [0, 0, 1, 1], [], []>} : vector<16x128xbf16>, vector<128x128xbf16>, vector<16x128xf32> -> vector<16x128xf32>
    %207 = arith.addf %12, %206 : vector<16x128xf32>
    %cst_105 = arith.constant dense<0.000000e+00> : vector<16xf32>
    %208 = vector.multi_reduction <add>, %207, %cst_105 [1] : vector<16x128xf32> to vector<16xf32>
    %209 = vector.shape_cast %208 : vector<16xf32> to vector<16x1xf32>
    %cst_106 = arith.constant 1.280000e+02 : f32
    %210 = vector.broadcast %cst_106 : f32 to vector<16x1xf32>
    %211 = arith.divf %209, %210 : vector<16x1xf32>
    %212 = vector.broadcast %211 : vector<16x1xf32> to vector<16x128xf32>
    %213 = arith.subf %207, %212 : vector<16x128xf32>
    %214 = arith.mulf %213, %213 : vector<16x128xf32>
    %cst_107 = arith.constant dense<0.000000e+00> : vector<16xf32>
    %215 = vector.multi_reduction <add>, %214, %cst_107 [1] : vector<16x128xf32> to vector<16xf32>
    %216 = vector.shape_cast %215 : vector<16xf32> to vector<16x1xf32>
    %cst_108 = arith.constant 1.280000e+02 : f32
    %217 = vector.broadcast %cst_108 : f32 to vector<16x1xf32>
    %218 = arith.divf %216, %217 : vector<16x1xf32>
    %cst_109 = arith.constant 9.99999974E-6 : f32
    %219 = vector.broadcast %cst_109 : f32 to vector<16x1xf32>
    %220 = arith.addf %218, %219 : vector<16x1xf32>
    %221 = math.rsqrt %220 : vector<16x1xf32>
    %222 = vector.broadcast %221 : vector<16x1xf32> to vector<16x128xf32>
    %223 = arith.mulf %213, %222 : vector<16x128xf32>
    %224 = vector.broadcast %10 : vector<1x128xf32> to vector<16x128xf32>
    %225 = arith.mulf %223, %224 : vector<16x128xf32>
    %226 = vector.broadcast %11 : vector<1x128xf32> to vector<16x128xf32>
    %227 = arith.addf %225, %226 : vector<16x128xf32>
    %c0_110 = arith.constant 0 : index
    %c0_111 = arith.constant 0 : index
    %c0_112 = arith.constant 0 : index
    %228 = vector.load %arg10[%c0_110, %c0_111, %c0_112] : memref<1x128x512xbf16, #tpu.memory_space<vmem>>, vector<1x128x512xbf16>
    %229 = vector.shape_cast %228 : vector<1x128x512xbf16> to vector<128x512xbf16>
    %230 = arith.truncf %227 : vector<16x128xf32> to vector<16x128xbf16>
    %cst_113 = arith.constant dense<0.000000e+00> : vector<16x512xf32>
    %231 = tpu.matmul %230, %229, %cst_113 {dimension_numbers = #tpu.dot_dimension_numbers<[1], [0], [0], [1], [0, 0, 1, 1], [], []>} : vector<16x128xbf16>, vector<128x512xbf16>, vector<16x512xf32> -> vector<16x512xf32>
    %cst_114 = arith.constant 5.000000e-01 : f32
    %232 = vector.broadcast %cst_114 : f32 to vector<16x512xf32>
    %233 = arith.mulf %232, %231 : vector<16x512xf32>
    %cst_115 = arith.constant 4.471500e-02 : f32
    %234 = vector.broadcast %cst_115 : f32 to vector<16x512xf32>
    %235 = arith.mulf %234, %231 : vector<16x512xf32>
    %236 = arith.mulf %235, %231 : vector<16x512xf32>
    %237 = arith.mulf %236, %231 : vector<16x512xf32>
    %238 = arith.addf %231, %237 : vector<16x512xf32>
    %cst_116 = arith.constant 0.797884583 : f32
    %239 = vector.broadcast %cst_116 : f32 to vector<16x512xf32>
    %240 = arith.mulf %239, %238 : vector<16x512xf32>
    %241 = math.tanh %240 : vector<16x512xf32>
    %cst_117 = arith.constant 1.000000e+00 : f32
    %242 = vector.broadcast %cst_117 : f32 to vector<16x512xf32>
    %243 = arith.addf %242, %241 : vector<16x512xf32>
    %244 = arith.mulf %233, %243 : vector<16x512xf32>
    %c0_118 = arith.constant 0 : index
    %c0_119 = arith.constant 0 : index
    %c0_120 = arith.constant 0 : index
    %245 = vector.load %arg11[%c0_118, %c0_119, %c0_120] : memref<1x512x128xbf16, #tpu.memory_space<vmem>>, vector<1x512x128xbf16>
    %246 = vector.shape_cast %245 : vector<1x512x128xbf16> to vector<512x128xbf16>
    %247 = arith.truncf %244 : vector<16x512xf32> to vector<16x512xbf16>
    %cst_121 = arith.constant dense<0.000000e+00> : vector<16x128xf32>
    %248 = tpu.matmul %247, %246, %cst_121 {dimension_numbers = #tpu.dot_dimension_numbers<[1], [0], [0], [1], [0, 0, 1, 1], [], []>} : vector<16x512xbf16>, vector<512x128xbf16>, vector<16x128xf32> -> vector<16x128xf32>
    %249 = arith.addf %207, %248 : vector<16x128xf32>
    %c0_122 = arith.constant 0 : index
    %c0_123 = arith.constant 0 : index
    %250 = vector.load %arg14[%c0_122, %c0_123] : memref<16x128xf32, #tpu.memory_space<vmem>>, vector<16x128xf32>
    tpu.vector_store %arg14[%c0_122, %c0_123], %249 {strides = array<i32>} : memref<16x128xf32, #tpu.memory_space<vmem>>, vector<16x128xf32>,
    %c1_i32 = arith.constant 1 : i32
    %251 = arith.cmpi eq, %arg1, %c1_i32 : i32
    %252 = arith.extui %251 : i1 to i32
    %c0_i32_124 = arith.constant 0 : i32
    %253 = arith.cmpi ne, %252, %c0_i32_124 : i32
    scf.if %253 {
      %c0_125 = arith.constant 0 : index
      %c0_126 = arith.constant 0 : index
      %254 = vector.load %arg5[%c0_125, %c0_126] : memref<128x128xbf16, #tpu.memory_space<vmem>>, vector<128x128xbf16>
      %255 = arith.truncf %249 : vector<16x128xf32> to vector<16x128xbf16>
      %cst_127 = arith.constant dense<0.000000e+00> : vector<16x128xf32>
      %256 = tpu.matmul %255, %254, %cst_127 {dimension_numbers = #tpu.dot_dimension_numbers<[1], [0], [0], [1], [0, 0, 1, 1], [], []>} : vector<16x128xbf16>, vector<128x128xbf16>, vector<16x128xf32> -> vector<16x128xf32>
      %257 = vector.extract_strided_slice %0 {offsets = [1, 0], sizes = [1, 128], strides = [1, 1]} : vector<4x128xf32> to vector<1x128xf32>
      %258 = vector.broadcast %257 : vector<1x128xf32> to vector<16x128xf32>
      %259 = arith.addf %256, %258 : vector<16x128xf32>
      %260 = vector.extract_strided_slice %0 {offsets = [2, 0], sizes = [1, 128], strides = [1, 1]} : vector<4x128xf32> to vector<1x128xf32>
      %261 = vector.extract_strided_slice %0 {offsets = [3, 0], sizes = [1, 128], strides = [1, 1]} : vector<4x128xf32> to vector<1x128xf32>
      %cst_128 = arith.constant dense<0.000000e+00> : vector<16xf32>
      %262 = vector.multi_reduction <add>, %259, %cst_128 [1] : vector<16x128xf32> to vector<16xf32>
      %263 = vector.shape_cast %262 : vector<16xf32> to vector<16x1xf32>
      %cst_129 = arith.constant 1.280000e+02 : f32
      %264 = vector.broadcast %cst_129 : f32 to vector<16x1xf32>
      %265 = arith.divf %263, %264 : vector<16x1xf32>
      %266 = vector.broadcast %265 : vector<16x1xf32> to vector<16x128xf32>
      %267 = arith.subf %259, %266 : vector<16x128xf32>
      %268 = arith.mulf %267, %267 : vector<16x128xf32>
      %cst_130 = arith.constant dense<0.000000e+00> : vector<16xf32>
      %269 = vector.multi_reduction <add>, %268, %cst_130 [1] : vector<16x128xf32> to vector<16xf32>
      %270 = vector.shape_cast %269 : vector<16xf32> to vector<16x1xf32>
      %cst_131 = arith.constant 1.280000e+02 : f32
      %271 = vector.broadcast %cst_131 : f32 to vector<16x1xf32>
      %272 = arith.divf %270, %271 : vector<16x1xf32>
      %cst_132 = arith.constant 9.99999974E-6 : f32
      %273 = vector.broadcast %cst_132 : f32 to vector<16x1xf32>
      %274 = arith.addf %272, %273 : vector<16x1xf32>
      %275 = math.rsqrt %274 : vector<16x1xf32>
      %276 = vector.broadcast %275 : vector<16x1xf32> to vector<16x128xf32>
      %277 = arith.mulf %267, %276 : vector<16x128xf32>
      %278 = vector.broadcast %260 : vector<1x128xf32> to vector<16x128xf32>
      %279 = arith.mulf %277, %278 : vector<16x128xf32>
      %280 = vector.broadcast %261 : vector<1x128xf32> to vector<16x128xf32>
      %281 = arith.addf %279, %280 : vector<16x128xf32>
      %c0_133 = arith.constant 0 : index
      %c0_134 = arith.constant 0 : index
      %c0_135 = arith.constant 0 : index
      %282 = vector.load %arg13[%c0_133, %c0_134, %c0_135] : memref<1x16x128xf32, #tpu.memory_space<vmem>>, vector<1x16x128xf32>
      %283 = vector.shape_cast %282 : vector<1x16x128xf32> to vector<16x128xf32>
      %284 = vector.shape_cast %281 : vector<16x128xf32> to vector<1x16x128xf32>
      tpu.vector_store %arg13[%c0_133, %c0_134, %c0_135], %284 {strides = array<i32>} : memref<1x16x128xf32, #tpu.memory_space<vmem>>, vector<1x16x128xf32>,
    } else {
    }
    return
  }
  func.func @transform_0(%arg0: i32, %arg1: i32) -> (i32, i32, i32) {
    %c0_i32 = arith.constant 0 : i32
    %c0_i32_0 = arith.constant 0 : i32
    %c0_i32_1 = arith.constant 0 : i32
    return %arg0, %c0_i32, %c0_i32_0 : i32, i32, i32
  }
  func.func @transform_1(%arg0: i32, %arg1: i32) -> (i32, i32) {
    %c0_i32 = arith.constant 0 : i32
    %c0_i32_0 = arith.constant 0 : i32
    %c0_i32_1 = arith.constant 0 : i32
    return %c0_i32, %c0_i32_0 : i32, i32
  }
  func.func @transform_2(%arg0: i32, %arg1: i32) -> (i32, i32) {
    %c0_i32 = arith.constant 0 : i32
    %c0_i32_0 = arith.constant 0 : i32
    %c0_i32_1 = arith.constant 0 : i32
    return %c0_i32, %c0_i32_0 : i32, i32
  }
  func.func @transform_3(%arg0: i32, %arg1: i32) -> (i32, i32) {
    %c0_i32 = arith.constant 0 : i32
    %c0_i32_0 = arith.constant 0 : i32
    %c0_i32_1 = arith.constant 0 : i32
    return %c0_i32, %c0_i32_0 : i32, i32
  }
  func.func @transform_4(%arg0: i32, %arg1: i32) -> (i32, i32) {
    %c0_i32 = arith.constant 0 : i32
    %c0_i32_0 = arith.constant 0 : i32
    %c0_i32_1 = arith.constant 0 : i32
    return %c0_i32, %c0_i32_0 : i32, i32
  }
  func.func @transform_5(%arg0: i32, %arg1: i32) -> (i32, i32, i32) {
    %c0_i32 = arith.constant 0 : i32
    %c0_i32_0 = arith.constant 0 : i32
    %c0_i32_1 = arith.constant 0 : i32
    return %arg1, %c0_i32, %c0_i32_0 : i32, i32, i32
  }
  func.func @transform_6(%arg0: i32, %arg1: i32) -> (i32, i32, i32) {
    %c0_i32 = arith.constant 0 : i32
    %c0_i32_0 = arith.constant 0 : i32
    %c0_i32_1 = arith.constant 0 : i32
    return %arg1, %c0_i32, %c0_i32_0 : i32, i32, i32
  }
  func.func @transform_7(%arg0: i32, %arg1: i32) -> (i32, i32, i32) {
    %c0_i32 = arith.constant 0 : i32
    %c0_i32_0 = arith.constant 0 : i32
    %c0_i32_1 = arith.constant 0 : i32
    return %arg1, %c0_i32, %c0_i32_0 : i32, i32, i32
  }
  func.func @transform_8(%arg0: i32, %arg1: i32) -> (i32, i32, i32) {
    %c0_i32 = arith.constant 0 : i32
    %c0_i32_0 = arith.constant 0 : i32
    %c0_i32_1 = arith.constant 0 : i32
    return %arg1, %c0_i32, %c0_i32_0 : i32, i32, i32
  }
  func.func @transform_9(%arg0: i32, %arg1: i32) -> (i32, i32, i32) {
    %c0_i32 = arith.constant 0 : i32
    %c0_i32_0 = arith.constant 0 : i32
    %c0_i32_1 = arith.constant 0 : i32
    return %arg1, %c0_i32, %c0_i32_0 : i32, i32, i32
  }
  func.func @transform_10(%arg0: i32, %arg1: i32) -> (i32, i32, i32) {
    %c0_i32 = arith.constant 0 : i32
    %c0_i32_0 = arith.constant 0 : i32
    %c0_i32_1 = arith.constant 0 : i32
    return %arg1, %c0_i32, %c0_i32_0 : i32, i32, i32
  }
  func.func @transform_11(%arg0: i32, %arg1: i32) -> (i32, i32, i32) {
    %c0_i32 = arith.constant 0 : i32
    %c0_i32_0 = arith.constant 0 : i32
    %c0_i32_1 = arith.constant 0 : i32
    return %arg0, %c0_i32, %c0_i32_0 : i32, i32, i32
  }
}

</mosaic_0001>

<bundles_post_ra>
// kernel: clip_image_wrapper_forward.2
= control target key start
LH: loop header
LB: loop body
LE: loop exit
PB: predicated region body
PF: predicated region fallthrough
CT: control target
= control target key end

     0   :  { %s3285_s27 = smov 0   ;;  %s3287_s28 = smov 0   ;;  %s3654_s0 = inlined_call_operand.vmem [shape: f32[2,16,48], index: 0, kind: input, shape index: {}]   ;;  %s3655_s1 = inlined_call_operand.vmem [shape: bf16[48,128], index: 1, kind: input, shape index: {}]   ;;  %s3656_s2 = inlined_call_operand.vmem [shape: f32[20,128], index: 2, kind: input, shape index: {}]   ;;  %s3657_s3 = inlined_call_operand.vmem [shape: bf16[2,128,384], index: 3, kind: input, shape index: {}]   ;;  %s3658_s4 = inlined_call_operand.vmem [shape: bf16[2,128,128], index: 4, kind: input, shape index: {}]   ;;  %s3659_s5 = inlined_call_operand.vmem [shape: bf16[2,128,256], index: 5, kind: input, shape index: {}]   ;;  %s3660_s6 = inlined_call_operand.vmem [shape: bf16[2,256,128], index: 6, kind: input, shape index: {}]   ;;  %s3661_s7 = inlined_call_operand.vmem [shape: f32[2,8,384], index: 7, kind: input, shape index: {}]   ;;  %s3662_s8 = inlined_call_operand.vmem [shape: bf16[2,17,128], index: 8, kind: output, shape index: {}]  }
   0x1   :  { %3664 = sst [smem:[#allocation8_spill]] %s3654_s0  ;;  %s3289_s29 = smov 0  }
   0x2   :  { %s3291_s30 = smov 0   ;;  %s3293_s9 = smov 0  }
   0x3 LB: > { %3665 = sst [smem:[#allocation5_spill]] %s3228_s30  ;;  %s27_s10 = sadd.s32 1, %s3224_s29  ;;  %s3232_s9 = sphi %s3293_s9, %s18_s9   ;;  %s3228_s30 = sphi %s3291_s30, %s3673_s30   ;;  %s3224_s29 = sphi %s3289_s29, %s3675_s29   ;;  %s3220_s28 = sphi %s3287_s28, %s3671_s28   ;;  %s3216_s27 = sphi %s3285_s27, %s3674_s27  }
   0x4   : > { %s30_s11 = sadd.s32 1, %s3228_s30  ;;  %p28_p0 = scmp.ge.s32.totalorder %s27_s10, 2 }
   0x5   : > { %p2558_p1 = scmp.ge.s32.totalorder %s3232_s9, 1  ;;  %p324_p2 = scmp.lt.s32.totalorder %s3232_s9, 5 }
   0x6   : > { %s3677_s10 = smov (%p28_p0, %s27_s10), 0  ;;  %s3679_s11 = smov (!%p28_p0, %s30_s11), %s3228_s30 }
   0x7   : > { %3666 = sst [smem:[#allocation6_spill]] %s3677_s10  ;;  %p325_p3 = pnand %p2558_p1, %p324_p2 }
   0x8   : > { %p32_p4 = scmp.ge.s32.totalorder %s3679_s11, 2  ;;  %p383_p5 = scmp.lt.s32.totalorder (!%p325_p3), %s3220_s28, 1 }
   0x9   : > { %328 = sbr.rel (%p325_p3) target bundleno = 4139 (0x102b), region = 52  ;;  %p388_p6 = scmp.lt.s32.totalorder (!%p325_p3), %s3216_s27, 1 }
   0xa   : > { %s3681_s11 = smov (%p32_p4, %s3679_s11), 0  ;;  %s3668_s0 = sld [smem:[#allocation8_spill]] (!%p325_p3) }
   0xb   : > { %3667 = sst [smem:[#allocation7_spill]] %s3681_s11  ;;  %p2570_p7 = scmp.ne.s32.totalorder (!%p325_p3), %s3216_s27, 0 }
  0x10   : > { %s3683_s28 = smov (!%p383_p5, %s3220_s28), 1  ;;  %v2990_v0 = vld [vmem:[%s3655_s1] sm:$0xff] (!%p2570_p7)   ;;  %v3234_v1 = vmov (!%p2570_p7), 0.0   ;;  %v2991_v2 = vld [vmem:[%s3655_s1 + $0x8] sm:$0xff] (!%p2570_p7)   ;;  %vm3235_vm0 = vmmov (!%p2570_p7), 0   ;;  %vm439_vm1 = vcmask (!%p2570_p7), 1041409   ;;  %v555_v47 = vlaneseq (!%p2570_p7) }
  0x11   : > { %s389_s12 = scalar_select %p388_p6, %s3216_s27, 1 }
  0x12   : > { %s2705_s13 = sshll.u32 %s3683_s28, 4  ;;  %s2943_s14 = smul.u32 12, %s3683_s28  ;;  %2819 = vmatprep.subr.bf16.mxu0 (!%p2570_p7), %v3234_v1  ;;  %2825 = vmatprep.mubr.msk.bf16.mxu0 (!%p2570_p7), %vm3235_vm0, %v3234_v1  ;;  %v423_v3 = vld [vmem:[%s3656_s2] sm:$0xff] (!%p2570_p7)  ;;  %v3365_v4 = vld [vmem:[%s3656_s2 + $0x10] sm:$0xf] (!%p2570_p7)  ;;  %vm488_vm2 = vcmask (!%p2570_p7), 392192  }
  0x13   : > { %s387_s17 = scalar_lea.vmem %s3668_s0, %s2705_s13  ;;  %s2941_s18 = smul.u32 192, %s389_s12  ;;  %2820 = vmatpush3.bf16.msra.mxu0 (!%p2570_p7), %v2990_v0  ;;  %v436_v5 = vrot.slane (!%p2570_p7), %v423_v3, 7  ;;  %v2992_v6 = vld [vmem:[%s3655_s1 + $0x10] sm:$0xff] (!%p2570_p7)   ;;  %v424_v12 = vld [vmem:[%s3656_s2 + $0x8] sm:$0xff] (!%p2570_p7)  ;;  %v482_v14 = vrot.slane (!%p2570_p7), %v423_v3, 1  ;;  %vm481_vm3 = vcmask (!%p2570_p7), 1046528  }
  0x14   : > { %s2706_s19 = sshll.u32 %s389_s12, 6  ;;  %s2707_s20 = sshll.u32 %s389_s12, 7  ;;  %2821 = vmatprep.subr.bf16.mxu0 (!%p2570_p7), %v3234_v1  ;;  %v426_v7 = vld [vmem:[%s387_s17] sm:$0xff] (!%p2570_p7)  ;;  %v427_v8 = vld [vmem:[%s387_s17 + $0x8] sm:$0xff] (!%p2570_p7)  ;;  %v483_v15 = vrot.slane (!%p2570_p7), %v424_v12, 1  ;;  %v455_v17 = vrot.slane (!%p2570_p7), %v3365_v4, 1 }
  0x15   : > { %s3325_s23 = scalar_lea.vmem %s3657_s3, %s2941_s18  ;;  %s3330_s26 = scalar_lea.vmem %s3658_s4, %s2706_s19  ;;  %v438_v9 = vadd.f32 (!%p2570_p7), %v436_v5, %v3365_v4  ;;  %v434_v11 = vpack.c.bf16 (!%p2570_p7), %v427_v8, %v426_v7  ;;  %v458_v41 = vrot.slane (!%p2570_p7), %v3365_v4, 2  ;;  %v556_v52 = vshrl.u32 (!%p2570_p7), %v555_v47, 7 }
  0x16   : > { %s3335_s28 = scalar_lea.vmem %s3659_s5, %s2707_s20  ;;  %s3340_s16 = scalar_lea.vmem %s3660_s6, %s2707_s20  ;;  %v484_v18 = vsel (!%p2570_p7), %vm481_vm3, %v482_v14, %v483_v15  ;;  %v485_v21 = vsel (!%p2570_p7), %vm481_vm3, %v483_v15, %v455_v17 }
  0x17   : > { %s2942_s0 = smul.u32 24, %s389_s12  ;;  %s3345_s18 = scalar_lea.vmem %s3662_s8, %s2943_s14  ;;  %2822 = vmatpush3.bf16.msra.mxu0 (!%p2570_p7), %v2991_v2  ;;  %v440_v10 = vsel (!%p2570_p7), %vm439_vm1, %v438_v9, 0.0  ;;  %v557_v53 = vsub.s32 (!%p2570_p7), 2, %v556_v52  ;;  %v563_v54 = vsub.s32 (!%p2570_p7), 3, %v556_v52 }
  0x18   : > { %422 = sbr.rel (%p2570_p7) target bundleno = 558 (0x22e), region = 56  ;;  %2823 = vmatprep.subr.bf16.mxu0 (!%p2570_p7), %v3234_v1  ;;  %441 = vadd.xlane.f32.xlu0 (!%p2570_p7), %v440_v10 }
  0x19   : > { %s3350_s19 = scalar_lea.vmem %s3661_s7, %s2942_s0  ;;  %v558_v55 = vrot.slane (!%p2570_p7), %v3365_v4, %v557_v53  ;;  %v564_v57 = vrot.slane (!%p2570_p7), %v3365_v4, %v563_v54 }
  0x1b   : > { %2824 = vmatpush3.bf16.msra.mxu0 (!%p2570_p7), %v2992_v6 }
  0x1e   : > { %2826 = vmatmul.mubr.msk.bf16.vlgmr.msra.gmra.mrb[0].mxu0 (!%p2570_p7), %vm488_vm2, %v434_v11 }
  0xa5   : > { %v442_v13 = vpop.xlane.xlu0 %441 }
  0xa6   : > { %v444_v16 = vmul.f32 0.0078125, %v442_v13 }
  0xa8   : > { %v445_v19 = vsub.f32 %v438_v9, %v444_v16 }
  0xaa   : > { %v446_v25 = vmul.f32 %v445_v19, %v445_v19 }
  0xac   : > { %v447_v28 = vsel %vm439_vm1, %v446_v25, 0.0 }
  0xf1   : > { %v526_v20 = vpop.f32.mrb[0].mxu0 }
  0xf2   : > { %v527_v22 = vadd.f32 %v526_v20, %v484_v18  ;;  %v2827_v23 = vpop.f32.mrb[1].mxu0 }
  0xf3   : > { %v529_v24 = vpop.f32.mrb[2].mxu0 }
  0xf4   : > { %v530_v26 = vadd.f32 %v529_v24, %v485_v21  ;;  %v2828_v27 = vpop.f32.mrb[3].mxu0  ;;  %533 = vadd.xlane.f32.xlu0 %v527_v22 }
  0xf6   : > { %535 = vadd.xlane.f32.xlu1 %v530_v26 }
  0xfa   : > { %448 = vadd.xlane.f32.xlu1 %v447_v28 }
 0x181   : > { %v534_v29 = vpop.xlane.xlu0 %533 }
 0x182   : > { %v537_v30 = vmul.f32 0.0078125, %v534_v29 }
 0x183   : > { %v536_v31 = vpop.xlane.xlu1 %535 }
 0x184   : > { %v539_v32 = vsub.f32 %v527_v22, %v537_v30  ;;  %v538_v33 = vmul.f32 0.0078125, %v536_v31 }
 0x186   : > { %v540_v34 = vsub.f32 %v530_v26, %v538_v33  ;;  %v541_v35 = vmul.f32 %v539_v32, %v539_v32 }
 0x187   : > { %v449_v36 = vpop.xlane.xlu1 %448 }
 0x188   : > { %v450_v37 = vmul.f32 0.0078125, %v449_v36  ;;  %543 = vadd.xlane.f32.xlu0 %v541_v35  ;;  %v542_v38 = vmul.f32 %v540_v34, %v540_v34 }
 0x18a   : > { %v451_v39 = vadd.f32 1e-05, %v450_v37  ;;  %545 = vadd.xlane.f32.xlu1 %v542_v38 }
 0x18c   : > { %2993 = vrsqrt.f32 %v451_v39 }
 0x196   : > { %v2994_v40 = vpop.eup %2993 }
 0x197   : > { %v453_v42 = vmul.f32 %v2994_v40, %v445_v19 }
 0x199   : > { %v457_v43 = vmul.f32 %v455_v17, %v453_v42 }
 0x19b   : > { %v460_v44 = vadd.f32 %v458_v41, %v457_v43 }
 0x19d   : > { %461 = vst [vmem:[#allocation2 - $0x1] sm:$0x2] %v460_v44 }
 0x215   : > { %v544_v45 = vpop.xlane.xlu0 %543 }
 0x216   : > { %v547_v46 = vmul.f32 0.0078125, %v544_v45 }
 0x217   : > { %v546_v48 = vpop.xlane.xlu1 %545 }
 0x218   : > { %v549_v49 = vadd.f32 1e-05, %v547_v46  ;;  %v548_v50 = vmul.f32 0.0078125, %v546_v48 }
 0x21a   : > { %2995 = vrsqrt.f32 %v549_v49  ;;  %v550_v51 = vadd.f32 1e-05, %v548_v50 }
 0x21c   : > { %2997 = vrsqrt.f32 %v550_v51 }
 0x224   : > { %v2996_v56 = vpop.eup %2995 }
 0x225   : > { %v553_v58 = vmul.f32 %v2996_v56, %v539_v32 }
 0x226   : > { %v2998_v59 = vpop.eup %2997 }
 0x227   : > { %v559_v60 = vmul.f32 %v558_v55, %v553_v58  ;;  %v554_v61 = vmul.f32 %v2998_v59, %v540_v34 }
 0x229   : > { %v565_v62 = vadd.f32 %v564_v57, %v559_v60  ;;  %v560_v63 = vmul.f32 %v558_v55, %v554_v61 }
 0x22b   : > { %567 = vst [vmem:[#allocation2 + $0x1] sm:$0xff] %v565_v62  ;;  %v566_v0 = vadd.f32 %v564_v57, %v560_v63 }
 0x22d   : > { %568 = vst [vmem:[#allocation2 + $0x9] sm:$0xff] %v566_v0 }
 0x22e PF: > { %vm579_vm4 = vcmask 1040384   ;;  %v2999_v5 = vld [vmem:[%s3325_s23 + $0x4] ss:$12 sps:$4 sm:$0xff]   ;;  %v3001_v6 = vld [vmem:[%s3325_s23] ss:$12 sps:$4 sm:$0xff]   ;;  %v3236_v38 = vmov 0   ;;  %v612_v50 = vlaneseq }
 0x22f   : > { %v3002_v7 = vld [vmem:[%s3325_s23 + $0x8] ss:$12 sps:$4 sm:$0xff]   ;;  %800 = vmatprep.subr.bf16.mxu0 %v2999_v5  ;;  %v3005_v22 = vld [vmem:[%s3325_s23 + $0x18] ss:$12 sps:$4 sm:$0xff]   ;;  %v3006_v23 = vld [vmem:[%s3325_s23 + $0x20] ss:$12 sps:$4 sm:$0xff]   ;;  %832 = vmatprep.mubr.bf16.mxu0 %v3236_v38 }
 0x230   : > { %v3003_v8 = vld [vmem:[%s3325_s23 + $0x1c] ss:$12 sps:$4 sm:$0xff]   ;;  %2829 = vmatprep.subr.bf16.mxu1 %v3002_v7  ;;  %801 = vmatpush1.bf16.msra.mxu0 %v3001_v6  ;;  %v3007_v24 = vld [vmem:[%s3325_s23 + $0x34] ss:$12 sps:$4 sm:$0xff]   ;;  %v3010_v26 = vld [vmem:[%s3325_s23 + $0x38] ss:$12 sps:$4 sm:$0xff]  }
 0x231   : > { %2830 = vmatpush3.bf16.msra.mxu1 %v3002_v7  ;;  %802 = vmatprep.subr.bf16.mxu0 %v3003_v8  ;;  %v3009_v25 = vld [vmem:[%s3325_s23 + $0x30] ss:$12 sps:$4 sm:$0xff]   ;;  %v3011_v27 = vld [vmem:[%s3325_s23 + $0x4c] ss:$12 sps:$4 sm:$0xff]   ;;  %v3013_v28 = vld [vmem:[%s3325_s23 + $0x48] ss:$12 sps:$4 sm:$0xff]  }
 0x232   : > { %v572_v1 = vld [vmem:[#allocation2] sm:$0xff]  ;;  %2831 = vmatprep.subr.bf16.mxu1 %v3006_v23  ;;  %v3014_v29 = vld [vmem:[%s3325_s23 + $0x50] ss:$12 sps:$4 sm:$0xff]   ;;  %v3018_v32 = vld [vmem:[%s3325_s23 + $0x68] ss:$12 sps:$4 sm:$0xff]   ;;  %v3419_v53 = vshrl.u32 %v612_v50, 7 }
 0x233   : > { %575 = vadd.xlane.f32.xlu0 %v572_v1  ;;  %v3015_v30 = vld [vmem:[%s3325_s23 + $0x64] ss:$12 sps:$4 sm:$0xff]   ;;  %v3017_v31 = vld [vmem:[%s3325_s23 + $0x60] ss:$12 sps:$4 sm:$0xff]   ;;  %v3019_v33 = vld [vmem:[%s3325_s23 + $0x7c] ss:$12 sps:$4 sm:$0xff]  }
 0x234   : > { %v574_v2 = vld [vmem:[#allocation2 + $0x10] sm:$0x1]  ;;  %v573_v3 = vld [vmem:[#allocation2 + $0x8] sm:$0xff]  ;;  %803 = vmatpush1.bf16.msra.mxu0 %v3005_v22  ;;  %v3021_v35 = vld [vmem:[%s3325_s23 + $0x78] ss:$12 sps:$4 sm:$0xff]   ;;  %v614_v54 = vsub.s32 0, %v3419_v53 }
 0x235   : > { %v580_v4 = vsel %vm579_vm4, %v574_v2, 0.0  ;;  %2832 = vmatpush3.bf16.msra.mxu1 %v3006_v23  ;;  %804 = vmatprep.subr.bf16.mxu0 %v3007_v24  ;;  %v3022_v34 = vld [vmem:[%s3325_s23 + $0x80] ss:$12 sps:$4 sm:$0xff]   ;;  %v3026_v37 = vld [vmem:[%s3325_s23 + $0x98] ss:$12 sps:$4 sm:$0xff]   ;;  %v621_v59 = vsub.s32 1, %v3419_v53 }
 0x236   : > { %581 = vadd.xlane.f32.xlu1 %v580_v4  ;;  %2833 = vmatprep.subr.bf16.mxu1 %v3010_v26  ;;  %v3023_v36 = vld [vmem:[%s3325_s23 + $0x94] ss:$12 sps:$4 sm:$0xff]   ;;  %v3025_v39 = vld [vmem:[%s3325_s23 + $0x90] ss:$12 sps:$4 sm:$0xff]   ;;  %v3027_v40 = vld [vmem:[%s3325_s23 + $0xac] ss:$12 sps:$4 sm:$0xff]  }
 0x237   : > { %577 = vadd.xlane.f32.xlu0 %v573_v3  ;;  %v3030_v41 = vld [vmem:[%s3325_s23 + $0xb0] ss:$12 sps:$4 sm:$0xff]   ;;  %v3029_v42 = vld [vmem:[%s3325_s23 + $0xa8] ss:$12 sps:$4 sm:$0xff]   ;;  %v569_v55 = vld [vmem:[%s3350_s19] sm:$0xff]  ;;  %vm939_vm7 = vcmask 1044484  }
 0x238   : > { %805 = vmatpush1.bf16.msra.mxu0 %v3009_v25  ;;  %v615_v58 = vrot.slane %v569_v55, %v614_v54  ;;  %vm937_vm5 = vsmask.f32 256  ;;  %v946_v24 = vld [vmem:[#allocation3 + $0x20] sm:$0x1]  ;;  %vm940_vm8 = vsmask.f32 4352 }
 0x239   : > { %2834 = vmatpush3.bf16.msra.mxu1 %v3010_v26  ;;  %806 = vmatprep.subr.bf16.mxu0 %v3011_v27  ;;  %vm3433_vm6 = vmand %vm579_vm4, %vm937_vm5  ;;  %vm974_vm11 = vcmask 261120   ;;  %vm1035_vm12 = vcmask 138240   ;;  %vm1042_vm13 = vcmask 131072   ;;  %s3237_s17 = smov 96   ;;  %s3238_s23 = smov 64   ;;  %vm1156_vm14 = vcmask 253952  }
 0x23a   : > { %2835 = vmatprep.subr.bf16.mxu1 %v3014_v29  ;;  %vm941_vm9 = vmand %vm939_vm7, %vm940_vm8  ;;  %vm1153_vm0 = vcmask 257024   ;;  %s3239_s24 = smov 32   ;;  %vm1381_vm1 = vcmask 516352   ;;  %vm1378_vm3 = vcmask 519424   ;;  %vm1606_vm7 = vcmask 778752   ;;  %p2699_p8 = scmp.ne.s32.totalorder %s3216_s27, 1 }
 0x23b   : > { %vm942_vm10 = vmor %vm941_vm9, %vm3433_vm6  ;;  %vm1603_vm8 = vcmask 781824  }
 0x23c   : > { %807 = vmatpush1.bf16.msra.mxu0 %v3013_v28  ;;  %vm1157_vm15 = vmand %vm1156_vm14, %vm937_vm5 }
 0x23d   : > { %2836 = vmatpush3.bf16.msra.mxu1 %v3014_v29  ;;  %808 = vmatprep.subr.bf16.mxu0 %v3015_v30  ;;  %vm1382_vm2 = vmand %vm1381_vm1, %vm937_vm5 }
 0x23e   : > { %2837 = vmatprep.subr.bf16.mxu1 %v3018_v32  ;;  %vm1607_vm9 = vmand %vm1606_vm7, %vm937_vm5 }
 0x240   : > { %809 = vmatpush1.bf16.msra.mxu0 %v3017_v31 }
 0x241   : > { %2838 = vmatpush3.bf16.msra.mxu1 %v3018_v32  ;;  %810 = vmatprep.subr.bf16.mxu0 %v3019_v33 }
 0x242   : > { %2839 = vmatprep.subr.bf16.mxu1 %v3022_v34 }
 0x244   : > { %811 = vmatpush1.bf16.msra.mxu0 %v3021_v35 }
 0x245   : > { %2840 = vmatpush3.bf16.msra.mxu1 %v3022_v34  ;;  %812 = vmatprep.subr.bf16.mxu0 %v3023_v36 }
 0x246   : > { %2841 = vmatprep.subr.bf16.mxu1 %v3026_v37 }
 0x248   : > { %813 = vmatpush1.bf16.msra.mxu0 %v3025_v39 }
 0x249   : > { %2842 = vmatpush3.bf16.msra.mxu1 %v3026_v37  ;;  %814 = vmatprep.subr.bf16.mxu0 %v3027_v40 }
 0x24a   : > { %2843 = vmatprep.subr.bf16.mxu1 %v3030_v41 }
 0x24c   : > { %815 = vmatpush1.bf16.msra.mxu0 %v3029_v42 }
 0x24d   : > { %2844 = vmatpush3.bf16.msra.mxu1 %v3030_v41 }
 0x2c0   : > { %v576_v9 = vpop.xlane.xlu0 %575 }
 0x2c1   : > { %v584_v10 = vmul.f32 0.0078125, %v576_v9  ;;  %v662_v9 = vsub.s32 2, %v3419_v53 }
 0x2c3   : > { %v582_v11 = vpop.xlane.xlu1 %581  ;;  %v3385_v13 = vsub.f32 %v572_v1, %v584_v10  ;;  %v622_v1 = vrot.slane %v569_v55, %v621_v59  ;;  %v570_v10 = vld [vmem:[%s3350_s19 + $0x8] sm:$0xff] }
 0x2c4   : > { %v586_v12 = vmul.f32 0.0078125, %v582_v11  ;;  %v578_v15 = vpop.xlane.xlu0 %577  ;;  %v571_v11 = vld [vmem:[%s3350_s19 + $0x10] sm:$0xff] }
 0x2c5   : > { %v585_v16 = vmul.f32 0.0078125, %v578_v15  ;;  %v590_v17 = vmul.f32 %v3385_v13, %v3385_v13 }
 0x2c6   : > { %v3387_v14 = vsub.f32 %v574_v2, %v586_v12  ;;  %v663_v12 = vrot.slane %v569_v55, %v662_v9 }
 0x2c7   : > { %v3393_v19 = vsub.f32 %v573_v3, %v585_v16  ;;  %593 = vadd.xlane.f32.xlu1 %v590_v17 }
 0x2c8   : > { %v592_v18 = vmul.f32 %v3387_v14, %v3387_v14 }
 0x2c9   : > { %v591_v21 = vmul.f32 %v3393_v19, %v3393_v19 }
 0x2ca   : > { %v597_v20 = vsel %vm579_vm4, %v592_v18, 0.0 }
 0x2cb   : > { %598 = vadd.xlane.f32.xlu1 %v597_v20  ;;  %595 = vadd.xlane.f32.xlu0 %v591_v21 }
 0x354   : > { %v594_v43 = vpop.xlane.xlu1 %593 }
 0x355   : > { %v600_v44 = vmul.f32 0.0078125, %v594_v43 }
 0x357   : > { %v603_v45 = vadd.f32 1e-05, %v600_v44  ;;  %v943_v44 = vld [vmem:[#allocation3 + $0x18] sm:$0x11] }
 0x358   : > { %v599_v46 = vpop.xlane.xlu1 %598  ;;  %v596_v47 = vpop.xlane.xlu0 %595 }
 0x359   : > { %3105 = vrsqrt.f32 %v603_v45  ;;  %v602_v48 = vmul.f32 0.0078125, %v599_v46  ;;  %v601_v49 = vmul.f32 0.0078125, %v596_v47  ;;  %v3443_v47 = vsel %vm579_vm4, 65535, %v3236_v38 }
 0x35b   : > { %v605_v51 = vadd.f32 1e-05, %v602_v48  ;;  %v604_v52 = vadd.f32 1e-05, %v601_v49 }
 0x35d   : > { %3107 = vrsqrt.f32 %v605_v51 }
 0x35e   : > { %3109 = vrsqrt.f32 %v604_v52 }
 0x363   : > { %v3106_v56 = vpop.eup %3105 }
 0x364   : > { %v609_v57 = vmul.f32 %v3106_v56, %v3385_v13  ;;  %v667_v13 = vrot.slane %v570_v10, %v662_v9 }
 0x366   : > { %v616_v0 = vmul.f32 %v615_v58, %v609_v57 }
 0x367   : > { %v3108_v60 = vpop.eup %3107 }
 0x368   : > { %v3110_v61 = vpop.eup %3109  ;;  %v611_v62 = vmul.f32 %v3108_v60, %v3387_v14  ;;  %v623_v5 = vadd.f32 %v622_v1, %v616_v0  ;;  %v671_v14 = vrot.slane %v571_v11, %v662_v9 }
 0x369   : > { %v610_v63 = vmul.f32 %v3110_v61, %v3393_v19 }
 0x36a   : > { %v618_v2 = vmul.f32 %v615_v58, %v611_v62 }
 0x36b   : > { %v617_v3 = vmul.f32 %v615_v58, %v610_v63 }
 0x36c   : > { %v625_v4 = vadd.f32 %v622_v1, %v618_v2 }
 0x36d   : > { %v624_v6 = vadd.f32 %v622_v1, %v617_v3 }
 0x36e   : > { %v659_v7 = vpack.c.bf16 %v625_v4, %v625_v4 }
 0x36f   : > { %v658_v8 = vpack.c.bf16 %v624_v6, %v623_v5 }
 0x371   : > { %833 = vmatmul.mubr.bf16.vlgmr.msra.gmra.mrb[0].mxu0 %v658_v8  ;;  %2845 = vmatprep.mubr.bf16.mxu1 %v658_v8 }
 0x372   : > { %2846 = vmatmul.mubr.bf16.vlgmr.msra.gmra.mrb[0].mxu1 %v659_v7  ;;  %842 = vmatprep.mubr.bf16.mxu0 %v3236_v38 }
 0x379   : > { %843 = vmatmul.mubr.bf16.gmra.mrb[4].mxu0 %v659_v7 }
 0x444   : > { %v834_v15 = vpop.f32.mrb[0].mxu0 }
 0x445   : > { %v835_v16 = vadd.f32 %v834_v15, %v663_v12  ;;  %v836_v17 = vpop.f32.mrb[1].mxu0  ;;  %v2847_v18 = vpop.f32.mrb[0].mxu1 }
 0x446   : > { %v837_v19 = vadd.f32 %v836_v17, %v667_v13  ;;  %v894_v20 = vadd.f32 %v2847_v18, %v671_v14  ;;  %v838_v21 = vpop.f32.mrb[2].mxu0  ;;  %v885_v22 = vpop.f32.mrb[1].mxu1 }
 0x447   : > { %v839_v25 = vadd.f32 %v838_v21, %v663_v12  ;;  %v886_v26 = vadd.f32 %v885_v22, %v671_v14  ;;  %v840_v27 = vpop.f32.mrb[3].mxu0  ;;  %v2848_v28 = vpop.f32.mrb[2].mxu1 }
 0x448   : > { %v2709_v29 = vpack.c.bf16 %v837_v19, %v835_v16  ;;  %v2714_v30 = vpack.c.bf16 %v894_v20, %v894_v20  ;;  %v841_v31 = vadd.f32 %v840_v27, %v667_v13  ;;  %v888_v32 = vpop.f32.mrb[3].mxu1 }
 0x449   : > { %v2710_v33 = vpack.c.bf16 %v886_v26, %v886_v26  ;;  %v889_v34 = vadd.f32 %v888_v32, %v671_v14 }
 0x44a   : > { %932 = vst [vmem:[#allocation3] sm:$0xff] %v2709_v29  ;;  %v947_v35 = vsel %vm3433_vm6, %v2714_v30, %v946_v24  ;;  %v2711_v36 = vpack.c.bf16 %v841_v31, %v839_v25 }
 0x44b   : > { %948 = vst [vmem:[#allocation3 + $0x20] sm:$0x1] %v947_v35  ;;  %933 = vst [vmem:[#allocation3 + $0x8] sm:$0xf] %v2710_v33  ;;  %v2712_v37 = vpack.c.bf16 %v889_v34, %v889_v34 }
 0x44c   : > { %934 = vst [vmem:[#allocation3 + $0xc] sm:$0xff] %v2711_v36  ;;  %v844_v39 = vpop.f32.mrb[4].mxu0 }
 0x44d   : > { %935 = vst [vmem:[#allocation3 + $0x14] sm:$0xf] %v2712_v37  ;;  %v845_v40 = vadd.f32 %v844_v39, %v663_v12  ;;  %v846_v41 = vpop.f32.mrb[5].mxu0 }
 0x44e   : > { %v847_v42 = vadd.f32 %v846_v41, %v667_v13  ;;  %v848_v43 = vpop.f32.mrb[6].mxu0 }
 0x44f   : > { %v849_v45 = vpop.f32.mrb[7].mxu0 }
 0x450   : > { %v2713_v46 = vpack.c.bf16 %v847_v42, %v845_v40 }
 0x452   : > { %v944_v48 = vsel %vm942_vm10, %v2713_v46, %v943_v44  ;;  %v3034_v54 = vld [vmem:[#allocation3 + $0x20] ss:$0 sps:$4 sm:$0x11]   ;;  %vm1828_vm10 = vcmask 1044224  }
 0x453   : > { %945 = vst [vmem:[#allocation3 + $0x18] sm:$0x11] %v944_v48  ;;  %v3031_v49 = vld [vmem:[#allocation3 + $0x4] ss:$12 sps:$4 sm:$0xff]   ;;  %v3032_v50 = vld [vmem:[#allocation3] ss:$12 sps:$4 sm:$0xff]   ;;  %v1090_v55 = vand.u32 %v3034_v54, %v3443_v47 }
 0x454   : > { %v3033_v51 = vld [vmem:[#allocation3 + $0x8] ss:$12 sps:$4 sm:$0xff]   ;;  %2933 = vmatprep.subr.msk.bf16.mxu0 %vm974_vm11, %v3031_v49  ;;  %v982_v52 = vsel %vm974_vm11, %v3031_v49, 0  ;;  %2853 = vmatprep.mubr.msk.bf16.mxu0 %vm974_vm11, %v3032_v50  ;;  %v3038_v18 = vld [vmem:[#allocation3 + $0x4] ss:$12 sps:$4 sm:$0xff]  }
 0x455   : > { %2850 = vmatpush3.bf16.xpose.msra.mxu0 %v982_v52  ;;  %2857 = vmatprep.subr.bf16.mxu1 %v3033_v51  ;;  %v3039_v19 = vld [vmem:[#allocation3] ss:$12 sps:$4 sm:$0xff]   ;;  %v3041_v21 = vld [vmem:[#allocation3 + $0x4] ss:$12 sps:$4 sm:$0xff]  }
 0x456   : > { %2858 = vmatpush3.bf16.msra.mxu1 %v3033_v51  ;;  %v3042_v22 = vld [vmem:[#allocation3] ss:$12 sps:$4 sm:$0xff]  }
 0x457   : > { %2859 = vmatprep.subr.bf16.mxu1 %v1090_v55  ;;  %v1158_v52 = vld [vmem:[#allocation4 + $0x8] sm:$0x1] }
 0x45a   : > { %v3035_v56 = vld [vmem:[#allocation3 + $0x1c] ss:$0 sps:$4 sm:$0x11]   ;;  %2860 = vmatpush3.bf16.msra.mxu1 %v1090_v55  ;;  %v3036_v58 = vld [vmem:[#allocation3 + $0x18] ss:$0 sps:$4 sm:$0x11]  }
 0x45b   : > { %2934 = vmatprep.subr.msk.bf16.mxu0 %vm974_vm11, %v3035_v56  ;;  %v985_v57 = vsel %vm974_vm11, %v3035_v56, 0  ;;  %v3037_v17 = vld [vmem:[#allocation3 + $0x1c] ss:$0 sps:$4 sm:$0x11]  }
 0x45c   : > { %v3040_v20 = vld [vmem:[#allocation3 + $0x18] ss:$0 sps:$4 sm:$0x11]   ;;  %v3043_v24 = vld [vmem:[#allocation3 + $0x1c] ss:$0 sps:$4 sm:$0x11]  }
 0x45d   : > { %2852 = vmatpush3.bf16.xpose.msra.mxu0 %v985_v57  ;;  %v3044_v25 = vld [vmem:[#allocation3 + $0x18] ss:$0 sps:$4 sm:$0x11]  }
 0x464   : > { %2854 = vmatmul.mubr.msk.bf16.vlgmr.msra.gmra.mrb[8].mxu0 %vm974_vm11, %v3036_v58 }
 0x537   : > { %v2855_v59 = vpop.f32.mrb[8].mxu0 }
 0x538   : > { %v1021_v60 = vpop.f32.mrb[9].mxu0  ;;  %v1043_v1 = vsel %vm1042_vm13, %v2855_v59, -inf }
 0x539   : > { %v2856_v61 = vpop.f32.mrb[10].mxu0  ;;  %v1036_v62 = vsel %vm1035_vm12, %v1021_v60, -inf }
 0x53a   : > { %1037 = vmax.xlane.f32.xlu0 %v1036_v62  ;;  %v1024_v63 = vpop.f32.mrb[11].mxu0 }
 0x53b   : > { %v1039_v0 = vsel %vm1035_vm12, %v1024_v63, -inf }
 0x53c   : > { %1040 = vmax.xlane.f32.xlu1 %v1039_v0 }
 0x53e   : > { %1044 = vmax.xlane.f32.xlu0 %v1043_v1 }
 0x5c7   : > { %v1038_v2 = vpop.xlane.xlu0 %1037 }
 0x5c8   : > { %v1046_v3 = vsub.f32 %v1021_v60, %v1038_v2 }
 0x5c9   : > { %v1041_v4 = vpop.xlane.xlu1 %1040 }
 0x5ca   : > { %v1049_v5 = vmul.f32 1.442695, %v1046_v3  ;;  %v1047_v6 = vsub.f32 %v1024_v63, %v1041_v4 }
 0x5cb   : > { %v1045_v7 = vpop.xlane.xlu0 %1044 }
 0x5cc   : > { %3111 = vpow2.f32 %v1049_v5  ;;  %v1051_v8 = vmul.f32 1.442695, %v1047_v6  ;;  %v1048_v9 = vsub.f32 %v2855_v59, %v1045_v7 }
 0x5ce   : > { %3113 = vpow2.f32 %v1051_v8  ;;  %v1053_v10 = vmul.f32 1.442695, %v1048_v9 }
 0x5d0   : > { %3115 = vpow2.f32 %v1053_v10 }
 0x5d6   : > { %v3112_v11 = vpop.eup %3111 }
 0x5d7   : > { %v1055_v12 = vsel %vm1035_vm12, %v3112_v11, 0.0 }
 0x5d8   : > { %v3114_v13 = vpop.eup %3113  ;;  %1056 = vadd.xlane.f32.xlu1 %v1055_v12 }
 0x5d9   : > { %v1058_v14 = vsel %vm1035_vm12, %v3114_v13, 0.0 }
 0x5da   : > { %v3116_v15 = vpop.eup %3115  ;;  %1059 = vadd.xlane.f32.xlu0 %v1058_v14 }
 0x5db   : > { %v1061_v16 = vsel %vm1042_vm13, %v3116_v15, 0.0 }
 0x5dc   : > { %1062 = vadd.xlane.f32.xlu1 %v1061_v16 }
 0x5ed   : > { %1192 = vrot.lane.b32.xlu1 %v3037_v17, %s3237_s17 }
 0x5f0   : > { %1190 = vrot.lane.b32.xlu0 %v3038_v18, %s3237_s17 }
 0x5f1   : > { %1178 = vrot.lane.b32.xlu1 %v3039_v19, %s3237_s17 }
 0x5f4   : > { %1180 = vrot.lane.b32.xlu0 %v3040_v20, %s3237_s17 }
 0x5f5   : > { %1415 = vrot.lane.b32.xlu1 %v3041_v21, %s3238_s23 }
 0x5f8   : > { %1403 = vrot.lane.b32.xlu0 %v3042_v22, %s3238_s23 }
 0x5f9   : > { %1417 = vrot.lane.b32.xlu1 %v3043_v24, %s3238_s23  ;;  %v3045_v24 = vld [vmem:[#allocation3 + $0x20] ss:$0 sps:$4 sm:$0x11]  }
 0x5fd   : > { %1405 = vrot.lane.b32.xlu1 %v3044_v25, %s3238_s23  ;;  %v3046_v25 = vld [vmem:[#allocation3 + $0x4] ss:$12 sps:$4 sm:$0xff]  }
 0x665   : > { %v1057_v26 = vpop.xlane.xlu1 %1056 }
 0x666   : > { %3117 = vrcp.f32 %v1057_v26  ;;  %v3047_v26 = vld [vmem:[#allocation3 + $0x8] ss:$12 sps:$4 sm:$0xff]  }
 0x667   : > { %v1060_v27 = vpop.xlane.xlu0 %1059 }
 0x668   : > { %3119 = vrcp.f32 %v1060_v27  ;;  %v3048_v27 = vld [vmem:[#allocation3 + $0x1c] ss:$0 sps:$4 sm:$0x11]  }
 0x669   : > { %v1063_v28 = vpop.xlane.xlu1 %1062 }
 0x66a   : > { %3121 = vrcp.f32 %v1063_v28  ;;  %v3049_v28 = vld [vmem:[#allocation3] ss:$12 sps:$4 sm:$0xff]  }
 0x66b   : > { %v1191_v29 = vpop.permute.xlu0 %1190 }
 0x66c   : > { %2935 = vmatprep.subr.msk.bf16.mxu1 %vm974_vm11, %v1191_v29  ;;  %v1201_v40 = vsel %vm974_vm11, %v1191_v29, 0  ;;  %v3050_v29 = vld [vmem:[#allocation3 + $0x18] ss:$0 sps:$4 sm:$0x11]  }
 0x66d   : > { %v1193_v32 = vpop.permute.xlu1 %1192 }
 0x66e   : > { %v1204_v42 = vsel %vm974_vm11, %v1193_v32, 0 }
 0x66f   : > { %v1181_v44 = vpop.permute.xlu0 %1180 }
 0x670   : > { %v3118_v30 = vpop.eup %3117 }
 0x671   : > { %v1067_v33 = vmul.f32 %v3118_v30, %v3112_v11  ;;  %v1179_v41 = vpop.permute.xlu1 %1178 }
 0x672   : > { %v3120_v31 = vpop.eup %3119 }
 0x673   : > { %v1068_v34 = vmul.f32 %v3120_v31, %v3114_v13  ;;  %v1404_v45 = vpop.permute.xlu0 %1403 }
 0x674   : > { %v3122_v35 = vpop.eup %3121 }
 0x675   : > { %v1069_v36 = vmul.f32 %v3122_v35, %v3116_v15  ;;  %v1070_v37 = vpack.c.bf16 %v1068_v34, %v1067_v33  ;;  %v1416_v43 = vpop.permute.xlu1 %1415 }
 0x676   : > { %v1426_v46 = vsel %vm974_vm11, %v1416_v43, 0 }
 0x677   : > { %2861 = vmatprep.mubr.msk.bf16.mxu1 %vm1035_vm12, %v1070_v37  ;;  %v1071_v39 = vpack.c.bf16 %v1069_v36, %v1069_v36 }
 0x679   : > { %2862 = vmatmul.mubr.msk.bf16.vlgmr.msra.gmra.mrb[4].mxu1 %vm1035_vm12, %v1071_v39  ;;  %v1418_v48 = vpop.permute.xlu1 %1417 }
 0x67a   : > { %2866 = vmatpush3.bf16.xpose.msra.mxu1 %v1201_v40  ;;  %2869 = vmatprep.mubr.msk.bf16.mxu1 %vm974_vm11, %v1179_v41  ;;  %v1429_v49 = vsel %vm974_vm11, %v1418_v48, 0 }
 0x67b   : > { %2936 = vmatprep.subr.msk.bf16.mxu1 %vm974_vm11, %v1193_v32 }
 0x67d   : > { %v1406_v50 = vpop.permute.xlu1 %1405 }
 0x682   : > { %2868 = vmatpush3.bf16.xpose.msra.mxu1 %v1204_v42 }
 0x683   : > { %2937 = vmatprep.subr.msk.bf16.mxu1 %vm974_vm11, %v1416_v43 }
 0x689   : > { %2870 = vmatmul.mubr.msk.bf16.vlgmr.msra.gmra.mrb[8].mxu1 %vm974_vm11, %v1181_v44 }
 0x68a   : > { %2882 = vmatpush3.bf16.xpose.msra.mxu1 %v1426_v46  ;;  %2885 = vmatprep.mubr.msk.bf16.mxu1 %vm974_vm11, %v1404_v45 }
 0x68b   : > { %2938 = vmatprep.subr.msk.bf16.mxu1 %vm974_vm11, %v1418_v48 }
 0x692   : > { %2884 = vmatpush3.bf16.xpose.msra.mxu1 %v1429_v49 }
 0x699   : > { %2886 = vmatmul.mubr.msk.bf16.vlgmr.msra.gmra.mrb[12].mxu1 %vm974_vm11, %v1406_v50 }
 0x74c   : > { %v2863_v51 = vpop.f32.mrb[4].mxu1 }
 0x74d   : > { %v2717_v54 = vpack.c.bf16 %v2863_v51, %v2863_v51  ;;  %v1126_v55 = vpop.f32.mrb[5].mxu1 }
 0x74e   : > { %v2715_v56 = vpack.c.bf16 %v1126_v55, %v1126_v55  ;;  %v2864_v57 = vpop.f32.mrb[6].mxu1 }
 0x74f   : > { %v1159_v58 = vsel %vm1157_vm15, %v2717_v54, %v1158_v52  ;;  %v1129_v59 = vpop.f32.mrb[7].mxu1 }
 0x750   : > { %1160 = vst [vmem:[#allocation4 + $0x8] sm:$0x1] %v1159_v58  ;;  %1154 = vst.msk [vmem:[#allocation4] sm:$0xf] %vm1153_vm0, %v2715_v56  ;;  %v2716_v60 = vpack.c.bf16 %v1129_v59, %v1129_v59 }
 0x752   : > { %1155 = vst.msk [vmem:[#allocation4 + $0x4] sm:$0xf] %vm1153_vm0, %v2716_v60 }
 0x75c   : > { %v3481_v61 = vpop.f32.mrb[8].mxu1 }
 0x75d   : > { %v3483_v62 = vpop.f32.mrb[9].mxu1  ;;  %v1260_v31 = vsel %vm1042_vm13, %v3481_v61, -inf }
 0x75e   : > { %v2872_v63 = vpop.f32.mrb[10].mxu1  ;;  %v1254_v30 = vsel %vm1035_vm12, %v3483_v62, -inf }
 0x75f   : > { %v3485_v0 = vpop.f32.mrb[11].mxu1 }
 0x760   : > { %v1257_v32 = vsel %vm1035_vm12, %v3485_v0, -inf }
 0x76c   : > { %v2887_v1 = vpop.f32.mrb[12].mxu1 }
 0x76d   : > { %v1465_v2 = vpop.f32.mrb[13].mxu1  ;;  %v1485_v7 = vsel %vm1042_vm13, %v2887_v1, -inf }
 0x76e   : > { %v2888_v3 = vpop.f32.mrb[14].mxu1  ;;  %v1479_v4 = vsel %vm1035_vm12, %v1465_v2, -inf }
 0x76f   : > { %1480 = vmax.xlane.f32.xlu0 %v1479_v4  ;;  %v1468_v5 = vpop.f32.mrb[15].mxu1 }
 0x770   : > { %v1482_v6 = vsel %vm1035_vm12, %v1468_v5, -inf }
 0x771   : > { %1483 = vmax.xlane.f32.xlu1 %v1482_v6 }
 0x773   : > { %1486 = vmax.xlane.f32.xlu0 %v1485_v7 }
 0x7fc   : > { %v1481_v8 = vpop.xlane.xlu0 %1480 }
 0x7fd   : > { %v1488_v9 = vsub.f32 %v1465_v2, %v1481_v8 }
 0x7fe   : > { %v1484_v10 = vpop.xlane.xlu1 %1483 }
 0x7ff   : > { %v1491_v11 = vmul.f32 1.442695, %v1488_v9  ;;  %v1489_v12 = vsub.f32 %v1468_v5, %v1484_v10 }
 0x800   : > { %v1487_v13 = vpop.xlane.xlu0 %1486 }
 0x801   : > { %3123 = vpow2.f32 %v1491_v11  ;;  %v1493_v14 = vmul.f32 1.442695, %v1489_v12  ;;  %v1490_v15 = vsub.f32 %v2887_v1, %v1487_v13 }
 0x803   : > { %3125 = vpow2.f32 %v1493_v14  ;;  %v1495_v16 = vmul.f32 1.442695, %v1490_v15 }
 0x805   : > { %3127 = vpow2.f32 %v1495_v16 }
 0x80b   : > { %v3124_v17 = vpop.eup %3123 }
 0x80c   : > { %v1497_v18 = vsel %vm1035_vm12, %v3124_v17, 0.0 }
 0x80d   : > { %v3126_v19 = vpop.eup %3125  ;;  %1498 = vadd.xlane.f32.xlu0 %v1497_v18 }
 0x80e   : > { %v1500_v22 = vsel %vm1035_vm12, %v3126_v19, 0.0 }
 0x80f   : > { %v3128_v20 = vpop.eup %3127 }
 0x810   : > { %v1503_v21 = vsel %vm1042_vm13, %v3128_v20, 0.0 }
 0x811   : > { %1504 = vadd.xlane.f32.xlu1 %v1503_v21  ;;  %1501 = vadd.xlane.f32.xlu0 %v1500_v22 }
 0x822   : > { %1524 = vrot.lane.b32.xlu1 %v3045_v24, %s3238_s23 }
 0x826   : > { %1640 = vrot.lane.b32.xlu1 %v3046_v25, %s3239_s24 }
 0x827   : > { %1522 = vrot.lane.b32.xlu0 %v3047_v26, %s3238_s23 }
 0x82a   : > { %1642 = vrot.lane.b32.xlu1 %v3048_v27, %s3239_s24 }
 0x82b   : > { %1628 = vrot.lane.b32.xlu0 %v3049_v28, %s3239_s24 }
 0x82e   : > { %1630 = vrot.lane.b32.xlu1 %v3050_v29, %s3239_s24 }
 0x84a   : > { %1255 = vmax.xlane.f32.xlu0 %v1254_v30 }
 0x84e   : > { %1261 = vmax.xlane.f32.xlu0 %v1260_v31 }
 0x852   : > { %1258 = vmax.xlane.f32.xlu1 %v1257_v32 }
 0x89a   : > { %v1499_v33 = vpop.xlane.xlu0 %1498 }
 0x89b   : > { %3129 = vrcp.f32 %v1499_v33 }
 0x89e   : > { %v1502_v34 = vpop.xlane.xlu0 %1501  ;;  %v1505_v35 = vpop.xlane.xlu1 %1504 }
 0x89f   : > { %3131 = vrcp.f32 %v1502_v34 }
 0x8a0   : > { %3133 = vrcp.f32 %v1505_v35 }
 0x8a2   : > { %v1523_v36 = vpop.permute.xlu0 %1522  ;;  %v1525_v37 = vpop.permute.xlu1 %1524 }
 0x8a3   : > { %v1534_v39 = vand.u32 %v1525_v37, %v3443_v47  ;;  %2889 = vmatprep.subr.bf16.mxu1 %v1523_v36 }
 0x8a4   : > { %2890 = vmatpush3.bf16.msra.mxu1 %v1523_v36 }
 0x8a5   : > { %2891 = vmatprep.subr.bf16.mxu1 %v1534_v39  ;;  %v3130_v40 = vpop.eup %3129 }
 0x8a6   : > { %v1641_v41 = vpop.permute.xlu1 %1640  ;;  %v1509_v44 = vmul.f32 %v3130_v40, %v3124_v17  ;;  %v1629_v50 = vpop.permute.xlu0 %1628 }
 0x8a7   : > { %v1651_v51 = vsel %vm974_vm11, %v1641_v41, 0 }
 0x8a8   : > { %2892 = vmatpush3.bf16.msra.mxu1 %v1534_v39 }
 0x8a9   : > { %v3132_v42 = vpop.eup %3131  ;;  %2939 = vmatprep.subr.msk.bf16.mxu1 %vm974_vm11, %v1641_v41 }
 0x8aa   : > { %v3134_v43 = vpop.eup %3133  ;;  %v1510_v45 = vmul.f32 %v3132_v42, %v3126_v19  ;;  %v1643_v52 = vpop.permute.xlu1 %1642  ;;  %v3051_v42 = vld [vmem:[#allocation3 + $0x20] ss:$0 sps:$4 sm:$0x11]  }
 0x8ab   : > { %v1511_v46 = vmul.f32 %v3134_v43, %v3128_v20  ;;  %v1654_v54 = vsel %vm974_vm11, %v1643_v52, 0  ;;  %v3052_v43 = vld [vmem:[#allocation3 + $0x8] ss:$12 sps:$4 sm:$0xff]  }
 0x8ac   : > { %v1512_v48 = vpack.c.bf16 %v1510_v45, %v1509_v44  ;;  %v3053_v44 = vld [vmem:[#allocation3 + $0x8] ss:$12 sps:$4 sm:$0xff]   ;;  %v3054_v45 = vld [vmem:[#allocation3 + $0x20] ss:$0 sps:$4 sm:$0x11]  }
 0x8ad   : > { %v1513_v49 = vpack.c.bf16 %v1511_v46, %v1511_v46 }
 0x8ae   : > { %2893 = vmatprep.mubr.msk.bf16.mxu1 %vm1035_vm12, %v1512_v48  ;;  %v1631_v55 = vpop.permute.xlu1 %1630 }
 0x8af   : > { %2894 = vmatmul.mubr.msk.bf16.vlgmr.msra.gmra.mrb[16].mxu1 %vm1035_vm12, %v1513_v49 }
 0x8b0   : > { %2901 = vmatprep.mubr.msk.bf16.mxu1 %vm974_vm11, %v1629_v50 }
 0x8b1   : > { %2898 = vmatpush3.bf16.xpose.msra.mxu1 %v1651_v51 }
 0x8b2   : > { %2940 = vmatprep.subr.msk.bf16.mxu1 %vm974_vm11, %v1643_v52 }
 0x8b9   : > { %2900 = vmatpush3.bf16.xpose.msra.mxu1 %v1654_v54 }
 0x8c0   : > { %2902 = vmatmul.mubr.msk.bf16.vlgmr.msra.gmra.mrb[20].mxu1 %vm974_vm11, %v1631_v55  ;;  %vm1831_vm11 = vcmask 1041152  }
 0x8c1   : > { %2158 = vmatprep.mubr.bf16.mxu1 %v3236_v38 }
 0x8d7   : > { %v1256_v58 = vpop.xlane.xlu0 %1255 }
 0x8d8   : > { %v1263_v3 = vsub.f32 %v3483_v62, %v1256_v58 }
 0x8da   : > { %v1266_v5 = vmul.f32 1.442695, %v1263_v3 }
 0x8db   : > { %v1262_v4 = vpop.xlane.xlu0 %1261 }
 0x8dc   : > { %v1265_v6 = vsub.f32 %v3481_v61, %v1262_v4 }
 0x8de   : > { %v1270_v7 = vmul.f32 1.442695, %v1265_v6 }
 0x8df   : > { %v1259_v56 = vpop.xlane.xlu1 %1258 }
 0x8e0   : > { %v1264_v59 = vsub.f32 %v3485_v0, %v1259_v56 }
 0x8e2   : > { %v1268_v2 = vmul.f32 1.442695, %v1264_v59 }
 0x8e4   : > { %3135 = vpow2.f32 %v1268_v2 }
 0x8e5   : > { %3137 = vpow2.f32 %v1266_v5 }
 0x8e6   : > { %3139 = vpow2.f32 %v1270_v7 }
 0x8ee   : > { %v3136_v10 = vpop.eup %3135 }
 0x8ef   : > { %v1275_v62 = vsel %vm1035_vm12, %v3136_v10, 0.0  ;;  %v3138_v61 = vpop.eup %3137 }
 0x8f0   : > { %v1272_v15 = vsel %vm1035_vm12, %v3138_v61, 0.0  ;;  %v3140_v16 = vpop.eup %3139 }
 0x8f1   : > { %v1278_v17 = vsel %vm1042_vm13, %v3140_v16, 0.0 }
 0x982   : > { %v3515_v57 = vpop.f32.mrb[16].mxu1 }
 0x983   : > { %v3518_v60 = vpop.f32.mrb[17].mxu1  ;;  %v2723_v46 = vpack.c.bf16 %v3515_v57, %v3515_v57 }
 0x984   : > { %v2896_v63 = vpop.f32.mrb[18].mxu1 }
 0x985   : > { %v3520_v1 = vpop.f32.mrb[19].mxu1 }
 0x993   : > { %v2903_v8 = vpop.f32.mrb[20].mxu1 }
 0x994   : > { %v1690_v9 = vpop.f32.mrb[21].mxu1  ;;  %v1710_v0 = vsel %vm1042_vm13, %v2903_v8, -inf }
 0x995   : > { %1711 = vmax.xlane.f32.xlu1 %v1710_v0  ;;  %v2904_v11 = vpop.f32.mrb[22].mxu1  ;;  %v1704_v12 = vsel %vm1035_vm12, %v1690_v9, -inf }
 0x996   : > { %1705 = vmax.xlane.f32.xlu0 %v1704_v12  ;;  %v1693_v13 = vpop.f32.mrb[23].mxu1  ;;  %v3057_v12 = vld [vmem:[%s3330_s26 + $0x10] sm:$0xff]  }
 0x997   : > { %v1707_v14 = vsel %vm1035_vm12, %v1693_v13, -inf }
 0x999   : > { %1276 = vadd.xlane.f32.xlu1 %v1275_v62 }
 0x99a   : > { %1708 = vmax.xlane.f32.xlu0 %v1707_v14 }
 0x99e   : > { %1273 = vadd.xlane.f32.xlu0 %v1272_v15 }
 0x9a2   : > { %1279 = vadd.xlane.f32.xlu0 %v1278_v17 }
 0xa22   : > { %v1712_v18 = vpop.xlane.xlu1 %1711 }
 0xa23   : > { %v1715_v19 = vsub.f32 %v2903_v8, %v1712_v18  ;;  %v1706_v20 = vpop.xlane.xlu0 %1705  ;;  %v2722_v18 = vpack.c.bf16 %v3520_v1, %v3520_v1 }
 0xa24   : > { %v1713_v21 = vsub.f32 %v1690_v9, %v1706_v20  ;;  %v3059_v20 = vld [vmem:[%s3330_s26 + $0x20] sm:$0xff]  }
 0xa25   : > { %v1720_v22 = vmul.f32 1.442695, %v1715_v19 }
 0xa26   : > { %v1716_v24 = vmul.f32 1.442695, %v1713_v21  ;;  %v1277_v26 = vpop.xlane.xlu1 %1276  ;;  %v2721_v21 = vpack.c.bf16 %v3518_v60, %v3518_v60  ;;  %v3061_v60 = vld [vmem:[%s3330_s26 + $0x30] sm:$0xff]  }
 0xa27   : > { %3141 = vpow2.f32 %v1720_v22  ;;  %v1709_v25 = vpop.xlane.xlu0 %1708 }
 0xa28   : > { %v1714_v27 = vsub.f32 %v1693_v13, %v1709_v25  ;;  %3143 = vpow2.f32 %v1716_v24 }
 0xa29   : > { %3145 = vrcp.f32 %v1277_v26 }
 0xa2a   : > { %v1718_v28 = vmul.f32 1.442695, %v1714_v27  ;;  %v3060_v27 = vld [vmem:[%s3330_s26 + $0x28] sm:$0xff]  }
 0xa2b   : > { %v1274_v29 = vpop.xlane.xlu0 %1273 }
 0xa2c   : > { %3147 = vpow2.f32 %v1718_v28 }
 0xa2d   : > { %3149 = vrcp.f32 %v1274_v29  ;;  %v3063_v29 = vld [vmem:[%s3330_s26 + $0x38] sm:$0xff]  }
 0xa2f   : > { %v1280_v48 = vpop.xlane.xlu0 %1279 }
 0xa30   : > { %3151 = vrcp.f32 %v1280_v48 }
 0xa31   : > { %v3142_v30 = vpop.eup %3141 }
 0xa32   : > { %v1728_v31 = vsel %vm1042_vm13, %v3142_v30, 0.0  ;;  %v3144_v32 = vpop.eup %3143 }
 0xa33   : > { %1729 = vadd.xlane.f32.xlu1 %v1728_v31  ;;  %v3146_v33 = vpop.eup %3145  ;;  %v1722_v35 = vsel %vm1035_vm12, %v3144_v32, 0.0  ;;  %v1383_v31 = vld [vmem:[#allocation4 + $0x8] sm:$0x1] }
 0xa34   : > { %v1285_v40 = vmul.f32 %v3146_v33, %v3136_v10  ;;  %v3055_v10 = vld [vmem:[%s3330_s26] sm:$0xff]  }
 0xa36   : > { %v3148_v34 = vpop.eup %3147 }
 0xa37   : > { %v3150_v36 = vpop.eup %3149  ;;  %1723 = vadd.xlane.f32.xlu1 %v1722_v35  ;;  %v1725_v37 = vsel %vm1035_vm12, %v3148_v34, 0.0 }
 0xa38   : > { %1726 = vadd.xlane.f32.xlu0 %v1725_v37  ;;  %v1284_v39 = vmul.f32 %v3150_v36, %v3138_v61 }
 0xa3a   : > { %v1287_v41 = vpack.c.bf16 %v1285_v40, %v1284_v39  ;;  %v3152_v54 = vpop.eup %3151 }
 0xa3b   : > { %v1286_v58 = vmul.f32 %v3152_v54, %v3140_v16  ;;  %v3058_v16 = vld [vmem:[%s3330_s26 + $0x18] sm:$0xff]  }
 0xa3c   : > { %2877 = vmatprep.mubr.msk.bf16.mxu0 %vm1035_vm12, %v1287_v41 }
 0xa3d   : > { %v1288_v3 = vpack.c.bf16 %v1286_v58, %v1286_v58 }
 0xa48   : > { %1299 = vrot.lane.b32.xlu1 %v3051_v42, %s3237_s17 }
 0xa4c   : > { %1747 = vrot.lane.b32.xlu1 %v3052_v43, %s3239_s24 }
 0xa4e   : > { %1297 = vrot.lane.b32.xlu0 %v3053_v44, %s3237_s17 }
 0xa50   : > { %1749 = vrot.lane.b32.xlu1 %v3054_v45, %s3239_s24 }
 0xa54   : > { %1598 = vrot.lane.b32.xlu1 %v2723_v46, %s3238_s23 }
 0xac0   : > { %v1730_v49 = vpop.xlane.xlu1 %1729 }
 0xac4   : > { %v1724_v50 = vpop.xlane.xlu1 %1723 }
 0xac5   : > { %3153 = vrcp.f32 %v1724_v50  ;;  %v1727_v51 = vpop.xlane.xlu0 %1726 }
 0xac6   : > { %3155 = vrcp.f32 %v1727_v51  ;;  %v3571_v51 = vld [vmem:[%s3350_s19] sm:$0xff] }
 0xac7   : > { %3157 = vrcp.f32 %v1730_v49  ;;  %v1966_v49 = vsub.s32 3, %v3419_v53 }
 0xac8   : > { %v1300_v52 = vpop.permute.xlu1 %1299 }
 0xac9   : > { %v1309_v55 = vand.u32 %v1300_v52, %v3443_v47  ;;  %v1298_v56 = vpop.permute.xlu0 %1297  ;;  %v1967_v52 = vrot.slane %v3571_v51, %v1966_v49 }
 0xaca   : > { %2873 = vmatprep.subr.bf16.mxu0 %v1298_v56 }
 0xacb   : > { %2874 = vmatpush3.bf16.msra.mxu0 %v1298_v56 }
 0xacc   : > { %2875 = vmatprep.subr.bf16.mxu0 %v1309_v55  ;;  %v1748_v57 = vpop.permute.xlu1 %1747 }
 0xacf   : > { %v3154_v59 = vpop.eup %3153  ;;  %2876 = vmatpush3.bf16.msra.mxu0 %v1309_v55  ;;  %v3190_v55 = vld [vmem:[#allocation2] sm:$0xff] }
 0xad0   : > { %v3156_v63 = vpop.eup %3155  ;;  %2905 = vmatprep.subr.bf16.mxu0 %v1748_v57  ;;  %v1750_v2 = vpop.permute.xlu1 %1749  ;;  %v1734_v4 = vmul.f32 %v3154_v59, %v3144_v32 }
 0xad1   : > { %v3158_v5 = vpop.eup %3157  ;;  %v1759_v6 = vand.u32 %v1750_v2, %v3443_v47  ;;  %v1735_v7 = vmul.f32 %v3156_v63, %v3148_v34  ;;  %v3056_v47 = vld [vmem:[%s3330_s26 + $0x8] sm:$0xff]  }
 0xad2   : > { %2878 = vmatmul.mubr.msk.bf16.vlgmr.msra.gmra.mrb[12].mxu0 %vm1035_vm12, %v1288_v3  ;;  %v1736_v9 = vmul.f32 %v3158_v5, %v3142_v30  ;;  %v3192_v3 = vld [vmem:[#allocation2 + $0x8] sm:$0xff] }
 0xad3   : > { %2906 = vmatpush3.bf16.msra.mxu0 %v1748_v57  ;;  %v1737_v8 = vpack.c.bf16 %v1735_v7, %v1734_v4  ;;  %v3191_v57 = vld [vmem:[#allocation2 + $0x10] sm:$0x1] }
 0xad4   : > { %2907 = vmatprep.subr.bf16.mxu0 %v1759_v6  ;;  %v1738_v0 = vpack.c.bf16 %v1736_v9, %v1736_v9  ;;  %v1599_v30 = vpop.permute.xlu1 %1598  ;;  %v3067_v9 = vld [vmem:[%s3335_s28 + $0x4] ss:$8 sps:$4 sm:$0xff]  }
 0xad5   : > { %2909 = vmatprep.mubr.msk.bf16.mxu0 %vm1035_vm12, %v1737_v8  ;;  %v3065_v8 = vld [vmem:[%s3335_s28] ss:$8 sps:$4 sm:$0xff]   ;;  %2126 = vmatprep.subr.bf16.mxu1 %v3067_v9 }
 0xad6   : > { %2127 = vmatpush1.bf16.msra.mxu1 %v3065_v8  ;;  %v3090_v8 = vld [vmem:[%s3340_s16] sm:$0xff]   ;;  %v3091_v9 = vld [vmem:[%s3340_s16 + $0x48] sm:$0xff]  }
 0xad7   : > { %2908 = vmatpush3.bf16.msra.mxu0 %v1759_v6 }
 0xad8   : > { %2913 = vmatprep.subr.bf16.mxu0 %v3055_v10 }
 0xada   : > { %2910 = vmatmul.mubr.msk.bf16.vlgmr.msra.gmra.mrb[16].mxu0 %vm1035_vm12, %v1738_v0  ;;  %vm1832_vm12 = vmand %vm1831_vm11, %vm937_vm5  ;;  %v3070_v0 = vld [vmem:[%s3335_s28 + $0x14] ss:$8 sps:$4 sm:$0xff]  }
 0xadb   : > { %2914 = vmatpush3.bf16.msra.mxu0 %v3055_v10  ;;  %v3068_v10 = vld [vmem:[%s3335_s28 + $0x10] ss:$8 sps:$4 sm:$0xff]   ;;  %2128 = vmatprep.subr.bf16.mxu1 %v3070_v0  ;;  %v3092_v0 = vld [vmem:[%s3340_s16 + $0x8] sm:$0xff]  }
 0xadc   : > { %2915 = vmatprep.subr.bf16.mxu0 %v3056_v47  ;;  %2129 = vmatpush1.bf16.msra.mxu1 %v3068_v10  ;;  %v3093_v10 = vld [vmem:[%s3340_s16 + $0x50] sm:$0xff]  }
 0xadf   : > { %2916 = vmatpush3.bf16.msra.mxu0 %v3056_v47 }
 0xae0   : > { %2917 = vmatprep.subr.bf16.mxu0 %v3057_v12 }
 0xae3   : > { %2918 = vmatpush3.bf16.msra.mxu0 %v3057_v12 }
 0xae4   : > { %2919 = vmatprep.subr.bf16.mxu0 %v3058_v16 }
 0xae7   : > { %2920 = vmatpush3.bf16.msra.mxu0 %v3058_v16 }
 0xae8   : > { %2921 = vmatprep.subr.bf16.mxu0 %v3059_v20 }
 0xaeb   : > { %2922 = vmatpush3.bf16.msra.mxu0 %v3059_v20 }
 0xaec   : > { %2923 = vmatprep.subr.bf16.mxu0 %v3060_v27 }
 0xaef   : > { %2924 = vmatpush3.bf16.msra.mxu0 %v3060_v27  ;;  %v3077_v27 = vld [vmem:[%s3335_s28 + $0x40] ss:$8 sps:$4 sm:$0xff]  }
 0xaf0   : > { %2925 = vmatprep.subr.bf16.mxu0 %v3061_v60 }
 0xaf3   : > { %2926 = vmatpush3.bf16.msra.mxu0 %v3061_v60  ;;  %v3080_v60 = vld [vmem:[%s3335_s28 + $0x50] ss:$8 sps:$4 sm:$0xff]  }
 0xaf4   : > { %2927 = vmatprep.subr.bf16.mxu0 %v3063_v29 }
 0xaf7   : > { %2928 = vmatpush3.bf16.msra.mxu0 %v3063_v29  ;;  %v3083_v29 = vld [vmem:[%s3335_s28 + $0x60] ss:$8 sps:$4 sm:$0xff]  }
 0xba5   : > { %v2879_v11 = vpop.f32.mrb[12].mxu0 }
 0xba6   : > { %v2720_v13 = vpack.c.bf16 %v2879_v11, %v2879_v11  ;;  %v1345_v62 = vpop.f32.mrb[13].mxu0 }
 0xba7   : > { %v2880_v14 = vpop.f32.mrb[14].mxu0  ;;  %v2718_v17 = vpack.c.bf16 %v1345_v62, %v1345_v62 }
 0xba8   : > { %1373 = vrot.lane.b32.xlu0 %v2720_v13, %s3239_s24  ;;  %v1348_v61 = vpop.f32.mrb[15].mxu0 }
 0xba9   : > { %v2719_v15 = vpack.c.bf16 %v1348_v61, %v1348_v61 }
 0xbab   : > { %1371 = vrot.lane.b32.xlu1 %v2719_v15, %s3239_s24 }
 0xbac   : > { %1369 = vrot.lane.b32.xlu0 %v2718_v17, %s3239_s24 }
 0xbad   : > { %v2911_v19 = vpop.f32.mrb[16].mxu0 }
 0xbae   : > { %v1795_v22 = vpop.f32.mrb[17].mxu0  ;;  %v2726_v28 = vpack.c.bf16 %v2911_v19, %v2911_v19 }
 0xbaf   : > { %1596 = vrot.lane.b32.xlu1 %v2722_v18, %s3238_s23  ;;  %v2912_v24 = vpop.f32.mrb[18].mxu0  ;;  %v2724_v1 = vpack.c.bf16 %v1795_v22, %v1795_v22  ;;  %v3073_v22 = vld [vmem:[%s3335_s28 + $0x24] ss:$8 sps:$4 sm:$0xff]  }
 0xbb0   : > { %1594 = vrot.lane.b32.xlu0 %v2721_v21, %s3238_s23  ;;  %v1798_v25 = vpop.f32.mrb[19].mxu0  ;;  %v3071_v21 = vld [vmem:[%s3335_s28 + $0x20] ss:$8 sps:$4 sm:$0xff]   ;;  %2130 = vmatprep.subr.bf16.mxu1 %v3073_v22  ;;  %v3076_v24 = vld [vmem:[%s3335_s28 + $0x34] ss:$8 sps:$4 sm:$0xff]  }
 0xbb1   : > { %v2725_v26 = vpack.c.bf16 %v1798_v25, %v1798_v25  ;;  %2131 = vmatpush1.bf16.msra.mxu1 %v3071_v21  ;;  %v3074_v25 = vld [vmem:[%s3335_s28 + $0x30] ss:$8 sps:$4 sm:$0xff]  }
 0xbb2   : > { %2132 = vmatprep.subr.bf16.mxu1 %v3076_v24 }
 0xbb3   : > { %1821 = vrot.lane.b32.xlu1 %v2725_v26, %s3237_s17  ;;  %v3079_v26 = vld [vmem:[%s3335_s28 + $0x44] ss:$8 sps:$4 sm:$0xff]  }
 0xbb4   : > { %1819 = vrot.lane.b32.xlu0 %v2724_v1, %s3237_s17  ;;  %v3082_v1 = vld [vmem:[%s3335_s28 + $0x54] ss:$8 sps:$4 sm:$0xff]  }
 0xbb5   : > { %2133 = vmatpush1.bf16.msra.mxu1 %v3074_v25 }
 0xbb6   : > { %2134 = vmatprep.subr.bf16.mxu1 %v3079_v26 }
 0xbb8   : > { %1823 = vrot.lane.b32.xlu0 %v2726_v28, %s3237_s17  ;;  %v3085_v28 = vld [vmem:[%s3335_s28 + $0x64] ss:$8 sps:$4 sm:$0xff]  }
 0xbb9   : > { %2135 = vmatpush1.bf16.msra.mxu1 %v3077_v27 }
 0xbba   : > { %2136 = vmatprep.subr.bf16.mxu1 %v3082_v1 }
 0xbbd   : > { %2137 = vmatpush1.bf16.msra.mxu1 %v3080_v60 }
 0xbbe   : > { %2138 = vmatprep.subr.bf16.mxu1 %v3085_v28 }
 0xbc1   : > { %2139 = vmatpush1.bf16.msra.mxu1 %v3083_v29 }
 0xc1a   : > { %v1374_v32 = vpop.permute.xlu0 %1373 }
 0xc1b   : > { %v1384_v33 = vsel %vm1382_vm2, %v1374_v32, %v1383_v31  ;;  %v3086_v31 = vld [vmem:[%s3335_s28 + $0x70] ss:$8 sps:$4 sm:$0xff]  }
 0xc1c   : > { %1385 = vst [vmem:[#allocation4 + $0x8] sm:$0x1] %v1384_v33 }
 0xc1d   : > { %v1372_v34 = vpop.permute.xlu1 %1371 }
 0xc1e   : > { %1380 = vst.msk [vmem:[#allocation4 + $0x4] sm:$0xf] %vm1378_vm3, %v1372_v34  ;;  %v1370_v35 = vpop.permute.xlu0 %1369 }
 0xc1f   : > { %1379 = vst.msk [vmem:[#allocation4] sm:$0xf] %vm1378_vm3, %v1370_v35 }
 0xc21   : > { %v1597_v36 = vpop.permute.xlu1 %1596 }
 0xc22   : > { %1605 = vst.msk [vmem:[#allocation4 + $0x4] sm:$0xf] %vm1603_vm8, %v1597_v36  ;;  %v1595_v37 = vpop.permute.xlu0 %1594 }
 0xc23   : > { %v1608_v39 = vld [vmem:[#allocation4 + $0x8] sm:$0x1]  ;;  %1604 = vst.msk [vmem:[#allocation4] sm:$0xf] %vm1603_vm8, %v1595_v37 }
 0xc24   : > { %v1609_v40 = vsel %vm1607_vm9, %v1599_v30, %v1608_v39  ;;  %v3088_v30 = vld [vmem:[%s3335_s28 + $0x74] ss:$8 sps:$4 sm:$0xff]  }
 0xc25   : > { %1610 = vst [vmem:[#allocation4 + $0x8] sm:$0x1] %v1609_v40  ;;  %v1822_v41 = vpop.permute.xlu1 %1821  ;;  %2140 = vmatprep.subr.bf16.mxu1 %v3088_v30 }
 0xc26   : > { %1830 = vst.msk [vmem:[#allocation4 + $0x4] sm:$0xf] %vm1828_vm10, %v1822_v41  ;;  %v1820_v42 = vpop.permute.xlu0 %1819  ;;  %2141 = vmatpush1.bf16.msra.mxu1 %v3086_v31 }
 0xc27   : > { %1829 = vst.msk [vmem:[#allocation4] sm:$0xf] %vm1828_vm10, %v1820_v42  ;;  %v2008_v42 = vsub.s32 4, %v3419_v53 }
 0xc2a   : > { %v1824_v43 = vpop.permute.xlu0 %1823 }
 0xc2c   : > { %v1833_v44 = vld [vmem:[#allocation4 + $0x8] sm:$0x1] }
 0xc2d   : > { %v1834_v45 = vsel %vm1832_vm12, %v1824_v43, %v1833_v44  ;;  %v2009_v43 = vrot.slane %v3571_v51, %v2008_v42  ;;  %v2015_v44 = vsub.s32 5, %v3419_v53 }
 0xc2e   : > { %1835 = vst [vmem:[#allocation4 + $0x8] sm:$0x1] %v1834_v45  ;;  %v3062_v46 = vld [vmem:[#allocation4] sm:$0xff]  }
 0xc2f   : > { %2929 = vmatprep.mubr.bf16.mxu0 %v3062_v46 }
 0xc35   : > { %v3064_v48 = vld [vmem:[#allocation4 + $0x8] ss:$0 sps:$4 sm:$0x11]  }
 0xc36   : > { %2930 = vmatmul.mubr.bf16.vlgmr.msra.gmra.mrb[20].mxu0 %v3064_v48 }
 0xd09   : > { %v2931_v50 = vpop.f32.mrb[20].mxu0 }
 0xd0a   : > { %v1947_v54 = vpop.f32.mrb[21].mxu0  ;;  %v1963_v59 = vadd.f32 %v3191_v57, %v2931_v50 }
 0xd0b   : > { %v1961_v56 = vadd.f32 %v3190_v55, %v1947_v54  ;;  %v2932_v58 = vpop.f32.mrb[22].mxu0 }
 0xd0c   : > { %v1950_v63 = vpop.f32.mrb[23].mxu0  ;;  %v3579_v6 = vadd.f32 %v1967_v52, %v1963_v59 }
 0xd0d   : > { %v3574_v2 = vadd.f32 %v1967_v52, %v1961_v56  ;;  %v1962_v4 = vadd.f32 %v3192_v3, %v1950_v63 }
 0xd0e   : > { %v1975_v7 = vsel %vm579_vm4, %v3579_v6, 0.0 }
 0xd0f   : > { %v3576_v5 = vadd.f32 %v1967_v52, %v1962_v4  ;;  %1971 = vadd.xlane.f32.xlu1 %v3574_v2  ;;  %v2016_v52 = vrot.slane %v3571_v51, %v2015_v44 }
 0xd11   : > { %1973 = vadd.xlane.f32.xlu0 %v3576_v5 }
 0xd15   : > { %1976 = vadd.xlane.f32.xlu0 %v1975_v7  ;;  %v3089_v7 = vld [vmem:[%s3340_s16 + $0x40] sm:$0xff]  }
 0xd16   : > { %2791 = vmatprep.subr.bf16.mxu0 %v3089_v7 }
 0xd17   : > { %2792 = vmatpush3.bf16.msra.mxu0 %v3090_v8 }
 0xd18   : > { %2793 = vmatprep.subr.bf16.mxu0 %v3091_v9 }
 0xd1b   : > { %2794 = vmatpush3.bf16.msra.mxu0 %v3092_v0 }
 0xd1c   : > { %2795 = vmatprep.subr.bf16.mxu0 %v3093_v10 }
 0xd9c   : > { %v1972_v11 = vpop.xlane.xlu1 %1971 }
 0xd9d   : > { %v1978_v47 = vmul.f32 0.0078125, %v1972_v11  ;;  %v3095_v11 = vld [vmem:[%s3340_s16 + $0x58] sm:$0xff]  }
 0xd9e   : > { %v1974_v12 = vpop.xlane.xlu0 %1973 }
 0xd9f   : > { %v1981_v13 = vsub.f32 %v3574_v2, %v1978_v47  ;;  %v1979_v62 = vmul.f32 0.0078125, %v1974_v12  ;;  %v3096_v47 = vld [vmem:[%s3340_s16 + $0x18] sm:$0xff]   ;;  %v3097_v12 = vld [vmem:[%s3340_s16 + $0x60] sm:$0xff]  }
 0xda1   : > { %v1982_v14 = vsub.f32 %v3576_v5, %v1979_v62  ;;  %v1984_v61 = vmul.f32 %v1981_v13, %v1981_v13  ;;  %v3099_v62 = vld [vmem:[%s3340_s16 + $0x68] sm:$0xff]  }
 0xda2   : > { %v1977_v15 = vpop.xlane.xlu0 %1976 }
 0xda3   : > { %v1980_v16 = vmul.f32 0.0078125, %v1977_v15  ;;  %1987 = vadd.xlane.f32.xlu0 %v1984_v61  ;;  %v1985_v17 = vmul.f32 %v1982_v14, %v1982_v14  ;;  %v3101_v61 = vld [vmem:[%s3340_s16 + $0x70] sm:$0xff]  }
 0xda4   : > { %v3102_v15 = vld [vmem:[%s3340_s16 + $0x30] sm:$0xff]  }
 0xda5   : > { %v1983_v18 = vsub.f32 %v3579_v6, %v1980_v16  ;;  %1989 = vadd.xlane.f32.xlu1 %v1985_v17  ;;  %v3103_v16 = vld [vmem:[%s3340_s16 + $0x78] sm:$0xff]  }
 0xda6   : > { %v3104_v17 = vld [vmem:[%s3340_s16 + $0x38] sm:$0xff]  }
 0xda7   : > { %v1986_v19 = vmul.f32 %v1983_v18, %v1983_v18 }
 0xda9   : > { %v1991_v20 = vsel %vm579_vm4, %v1986_v19, 0.0 }
 0xdaa   : > { %1992 = vadd.xlane.f32.xlu0 %v1991_v20  ;;  %v3193_v20 = vld [vmem:[%s3350_s19 + $0x8] sm:$0xff] }
 0xe30   : > { %v1988_v32 = vpop.xlane.xlu0 %1987 }
 0xe31   : > { %v1994_v33 = vmul.f32 0.0078125, %v1988_v32 }
 0xe32   : > { %v1990_v34 = vpop.xlane.xlu1 %1989 }
 0xe33   : > { %v1997_v35 = vadd.f32 1e-05, %v1994_v33  ;;  %v1995_v36 = vmul.f32 0.0078125, %v1990_v34 }
 0xe35   : > { %3159 = vrsqrt.f32 %v1997_v35  ;;  %v1998_v37 = vadd.f32 1e-05, %v1995_v36 }
 0xe37   : > { %3161 = vrsqrt.f32 %v1998_v37  ;;  %v1993_v39 = vpop.xlane.xlu0 %1992 }
 0xe38   : > { %v1996_v40 = vmul.f32 0.0078125, %v1993_v39 }
 0xe3a   : > { %v1999_v41 = vadd.f32 1e-05, %v1996_v40 }
 0xe3c   : > { %3163 = vrsqrt.f32 %v1999_v41 }
 0xe3f   : > { %v3160_v45 = vpop.eup %3159 }
 0xe40   : > { %v2003_v46 = vmul.f32 %v3160_v45, %v1981_v13  ;;  %v3098_v13 = vld [vmem:[%s3340_s16 + $0x20] sm:$0xff]  }
 0xe41   : > { %v3162_v48 = vpop.eup %3161 }
 0xe42   : > { %v2004_v49 = vmul.f32 %v3162_v48, %v1982_v14  ;;  %v2010_v50 = vmul.f32 %v2009_v43, %v2003_v46  ;;  %v3100_v14 = vld [vmem:[%s3340_s16 + $0x28] sm:$0xff]  }
 0xe44   : > { %v2011_v54 = vmul.f32 %v2009_v43, %v2004_v49  ;;  %v2017_v56 = vadd.f32 %v2016_v52, %v2010_v50 }
 0xe46   : > { %v3164_v55 = vpop.eup %3163  ;;  %v2018_v58 = vadd.f32 %v2016_v52, %v2011_v54 }
 0xe47   : > { %v2005_v57 = vmul.f32 %v3164_v55, %v1983_v18  ;;  %v2040_v18 = vsub.s32 6, %v3419_v53 }
 0xe48   : > { %v2036_v59 = vpack.c.bf16 %v2018_v58, %v2017_v56 }
 0xe49   : > { %v2012_v63 = vmul.f32 %v2009_v43, %v2005_v57  ;;  %v2041_v19 = vrot.slane %v3571_v51, %v2040_v18  ;;  %v2045_v21 = vrot.slane %v3193_v20, %v2040_v18  ;;  %v2398_v18 = vsub.s32 7, %v3419_v53 }
 0xe4a   : > { %2159 = vmatmul.mubr.bf16.vlgmr.msra.gmra.mrb[24].mxu1 %v2036_v59 }
 0xe4b   : > { %2168 = vmatprep.mubr.bf16.mxu1 %v3236_v38  ;;  %v2019_v3 = vadd.f32 %v2016_v52, %v2012_v63  ;;  %v3094_v38 = vld [vmem:[%s3340_s16 + $0x10] sm:$0xff]  }
 0xe4c   : > { %2796 = vmatpush3.bf16.msra.mxu0 %v3094_v38 }
 0xe4d   : > { %v2037_v4 = vpack.c.bf16 %v2019_v3, %v2019_v3  ;;  %2797 = vmatprep.subr.bf16.mxu0 %v3095_v11 }
 0xe50   : > { %2798 = vmatpush3.bf16.msra.mxu0 %v3096_v47 }
 0xe51   : > { %2799 = vmatprep.subr.bf16.mxu0 %v3097_v12 }
 0xe52   : > { %2169 = vmatmul.mubr.bf16.gmra.mrb[28].mxu1 %v2037_v4 }
 0xe54   : > { %2800 = vmatpush3.bf16.msra.mxu0 %v3098_v13 }
 0xe55   : > { %2801 = vmatprep.subr.bf16.mxu0 %v3099_v62 }
 0xe58   : > { %2802 = vmatpush3.bf16.msra.mxu0 %v3100_v14 }
 0xe59   : > { %2803 = vmatprep.subr.bf16.mxu0 %v3101_v61 }
 0xe5c   : > { %2804 = vmatpush3.bf16.msra.mxu0 %v3102_v15 }
 0xe5d   : > { %2805 = vmatprep.subr.bf16.mxu0 %v3103_v16 }
 0xe60   : > { %2806 = vmatpush3.bf16.msra.mxu0 %v3104_v17 }
 0xf1d   : > { %v2160_v22 = vpop.f32.mrb[24].mxu1 }
 0xf1e   : > { %v2161_v24 = vadd.f32 %v2160_v22, %v2041_v19  ;;  %v2162_v25 = vpop.f32.mrb[25].mxu1  ;;  %v2399_v22 = vrot.slane %v3571_v51, %v2398_v18 }
 0xf1f   : > { %v2163_v26 = vadd.f32 %v2162_v25, %v2045_v21  ;;  %v2164_v27 = vpop.f32.mrb[26].mxu1 }
 0xf20   : > { %v2177_v1 = vmul.f32 -1.702, %v2161_v24  ;;  %v2165_v60 = vadd.f32 %v2164_v27, %v2041_v19  ;;  %v2166_v28 = vpop.f32.mrb[27].mxu1 }
 0xf21   : > { %v2178_v29 = vmul.f32 -1.702, %v2163_v26  ;;  %v2167_v30 = vadd.f32 %v2166_v28, %v2045_v21 }
 0xf22   : > { %v2183_v31 = vmul.f32 1.442695, %v2177_v1  ;;  %v2179_v32 = vmul.f32 -1.702, %v2165_v60 }
 0xf23   : > { %v2185_v33 = vmul.f32 1.442695, %v2178_v29  ;;  %v2180_v34 = vmul.f32 -1.702, %v2167_v30 }
 0xf24   : > { %3165 = vpow2.f32 %v2183_v31  ;;  %v2187_v35 = vmul.f32 1.442695, %v2179_v32 }
 0xf25   : > { %3167 = vpow2.f32 %v2185_v33  ;;  %v2189_v36 = vmul.f32 1.442695, %v2180_v34  ;;  %v2170_v37 = vpop.f32.mrb[28].mxu1 }
 0xf26   : > { %3169 = vpow2.f32 %v2187_v35  ;;  %v2171_v39 = vadd.f32 %v2170_v37, %v2041_v19  ;;  %v2172_v40 = vpop.f32.mrb[29].mxu1 }
 0xf27   : > { %3171 = vpow2.f32 %v2189_v36  ;;  %v2173_v41 = vadd.f32 %v2172_v40, %v2045_v21  ;;  %v2174_v42 = vpop.f32.mrb[30].mxu1 }
 0xf28   : > { %v2181_v43 = vmul.f32 -1.702, %v2171_v39  ;;  %v2175_v44 = vpop.f32.mrb[31].mxu1 }
 0xf29   : > { %v2182_v45 = vmul.f32 -1.702, %v2173_v41 }
 0xf2a   : > { %v2191_v46 = vmul.f32 1.442695, %v2181_v43 }
 0xf2b   : > { %v2193_v48 = vmul.f32 1.442695, %v2182_v45 }
 0xf2c   : > { %3173 = vpow2.f32 %v2191_v46 }
 0xf2d   : > { %3175 = vpow2.f32 %v2193_v48 }
 0xf2e   : > { %v3166_v49 = vpop.eup %3165 }
 0xf2f   : > { %v3168_v50 = vpop.eup %3167  ;;  %v2195_v52 = vadd.f32 1.0, %v3166_v49 }
 0xf30   : > { %v3170_v54 = vpop.eup %3169  ;;  %v2196_v55 = vadd.f32 1.0, %v3168_v50 }
 0xf31   : > { %v3172_v56 = vpop.eup %3171  ;;  %3177 = vrcp.f32 %v2195_v52  ;;  %v2197_v58 = vadd.f32 1.0, %v3170_v54 }
 0xf32   : > { %3179 = vrcp.f32 %v2196_v55  ;;  %v2198_v57 = vadd.f32 1.0, %v3172_v56 }
 0xf33   : > { %3181 = vrcp.f32 %v2197_v58 }
 0xf34   : > { %3183 = vrcp.f32 %v2198_v57 }
 0xf36   : > { %v3174_v59 = vpop.eup %3173 }
 0xf37   : > { %v3176_v63 = vpop.eup %3175  ;;  %v2199_v3 = vadd.f32 1.0, %v3174_v59 }
 0xf38   : > { %v2200_v4 = vadd.f32 1.0, %v3176_v63 }
 0xf39   : > { %3185 = vrcp.f32 %v2199_v3 }
 0xf3a   : > { %3187 = vrcp.f32 %v2200_v4 }
 0xf3b   : > { %v3178_v7 = vpop.eup %3177 }
 0xf3c   : > { %v3180_v8 = vpop.eup %3179  ;;  %v2202_v10 = vmul.f32 %v3178_v7, %v2161_v24 }
 0xf3d   : > { %v3182_v9 = vpop.eup %3181  ;;  %v2204_v11 = vmul.f32 %v3180_v8, %v2163_v26 }
 0xf3e   : > { %v3184_v0 = vpop.eup %3183  ;;  %v2206_v38 = vmul.f32 %v3182_v9, %v2165_v60 }
 0xf3f   : > { %v2208_v47 = vmul.f32 %v3184_v0, %v2167_v30 }
 0xf40   : > { %v2245_v12 = vpack.c.bf16 %v2206_v38, %v2202_v10 }
 0xf41   : > { %v2246_v13 = vpack.c.bf16 %v2208_v47, %v2204_v11 }
 0xf43   : > { %v3186_v62 = vpop.eup %3185  ;;  %2377 = vmatprep.mubr.bf16.mxu0 %v2246_v13 }
 0xf44   : > { %v3188_v14 = vpop.eup %3187  ;;  %2378 = vmatmul.mubr.bf16.vlgmr.msra.gmra.mrb[24].mxu0 %v2245_v12  ;;  %v2210_v15 = vmul.f32 %v3186_v62, %v2171_v39 }
 0xf45   : > { %v2212_v61 = vmul.f32 %v3188_v14, %v2173_v41 }
 0xf46   : > { %v2247_v17 = vpack.c.bf16 %v2210_v15, %v2210_v15 }
 0xf47   : > { %v2248_v16 = vpack.c.bf16 %v2212_v61, %v2212_v61 }
 0xf49   : > { %2385 = vmatprep.mubr.bf16.mxu0 %v2248_v16 }
 0xf4c   : > { %2386 = vmatmul.mubr.bf16.gmra.mrb[28].mxu0 %v2247_v17 }
0x1017   : > { %v2807_v19 = vpop.f32.mrb[24].mxu0 }
0x1018   : > { %v2808_v20 = vpop.f32.mrb[25].mxu0 }
0x1019   : > { %v2809_v21 = vadd.f32 %v2808_v20, %v2807_v19  ;;  %v2810_v24 = vpop.f32.mrb[26].mxu0 }
0x101a   : > { %v2811_v25 = vpop.f32.mrb[27].mxu0 }
0x101b   : > { %v2393_v26 = vadd.f32 %v2809_v21, %v3574_v2  ;;  %v2812_v27 = vadd.f32 %v2811_v25, %v2810_v24 }
0x101d   : > { %v2400_v1 = vadd.f32 %v2399_v22, %v2393_v26  ;;  %v2394_v60 = vadd.f32 %v2812_v27, %v3576_v5  ;;  %v2425_v5 = vld [vmem:[%s3345_s18 + $0x8] sm:$0x1] (!%p2699_p8) }
0x101f   : > { %2403 = vst [vmem:[#allocation2] sm:$0xff] %v2400_v1  ;;  %v2401_v28 = vadd.f32 %v2399_v22, %v2394_v60  ;;  %v2813_v29 = vpop.f32.mrb[28].mxu0 }
0x1020   : > { %v2814_v30 = vpop.f32.mrb[29].mxu0 }
0x1021   : > { %2404 = vst [vmem:[#allocation2 + $0x8] sm:$0xff] %v2401_v28  ;;  %v2815_v31 = vadd.f32 %v2814_v30, %v2813_v29  ;;  %v2816_v53 = vpop.f32.mrb[30].mxu0  ;;  %2409 = sbr.rel (%p2699_p8) target bundleno = 4139 (0x102b), region = 60  ;;  %v2733_v51 = vpack.c.bf16 (!%p2699_p8), %v2401_v28, %v2400_v1 }
0x1022   : > { %v2817_v32 = vpop.f32.mrb[31].mxu0 }
0x1023   : > { %v2395_v33 = vadd.f32 %v2815_v31, %v3579_v6  ;;  %2734 = vst [vmem:[%s3345_s18] sm:$0xff] (!%p2699_p8), %v2733_v51  }
0x1025   : > { %v2402_v34 = vadd.f32 %v2399_v22, %v2395_v33 }
0x1027   : > { %2405 = vst [vmem:[#allocation2 + $0x10] sm:$0x1] %v2402_v34  ;;  %v2729_v2 = vpack.c.bf16 (!%p2699_p8), %v2402_v34, %v2402_v34 }
0x1029   : > { %v2426_v35 = vsel %vm3433_vm6, %v2729_v2, %v2425_v5 }
0x102a   : > { %2427 = vst [vmem:[%s3345_s18 + $0x8] sm:$0x1] %v2426_v35 }
0x102b PF: > { %s18_s9 = sadd.s32 1, %s3232_s9   ;;  %s3671_s28 = sld [smem:[#allocation5_spill]] }
0x102c   : > { %p15_p9 = scmp.ge.s32.totalorder %s18_s9, 6   ;;  %s3672_s26 = sld [smem:[#allocation6_spill]] }
0x102d   : > { %s3673_s30 = sld [smem:[#allocation7_spill]]  ;;  %s3674_s27 = smov %s3224_s29 }
0x102e   :  { %17 = sbr.rel (!%p15_p9) target bundleno = 3 (0x3), region = 105 }
0x1032   : > { %s3675_s29 = smov %s3672_s26 }

// kernel: clip_image_wrapper_forward.3
= control target key start
LH: loop header
LB: loop body
LE: loop exit
PB: predicated region body
PF: predicated region fallthrough
CT: control target
= control target key end

     0   :  { %s5178_s0 = inlined_call_operand.vmem [shape: bf16[2,17,128], index: 0, kind: input, shape index: {}]   ;;  %s5179_s1 = inlined_call_operand.vmem [shape: f32[16,128], index: 1, kind: input, shape index: {}]   ;;  %s5180_s2 = inlined_call_operand.vmem [shape: bf16[128,128], index: 2, kind: input, shape index: {}]   ;;  %s5181_s3 = inlined_call_operand.vmem [shape: bf16[128,128], index: 3, kind: input, shape index: {}]   ;;  %s5182_s4 = inlined_call_operand.vmem [shape: f32[4,128], index: 4, kind: input, shape index: {}]   ;;  %s5183_s5 = inlined_call_operand.vmem [shape: bf16[2,128,128], index: 5, kind: input, shape index: {}]   ;;  %s5184_s6 = inlined_call_operand.vmem [shape: bf16[2,128,256], index: 6, kind: input, shape index: {}]   ;;  %s5185_s7 = inlined_call_operand.vmem [shape: bf16[2,128,128], index: 7, kind: input, shape index: {}]   ;;  %s5186_s8 = inlined_call_operand.vmem [shape: bf16[2,128,512], index: 8, kind: input, shape index: {}]   ;;  %s5187_s9 = inlined_call_operand.vmem [shape: bf16[2,512,128], index: 9, kind: input, shape index: {}]   ;;  %s5188_s10 = inlined_call_operand.vmem [shape: f32[2,8,128], index: 10, kind: input, shape index: {}]   ;;  %s5189_s11 = inlined_call_operand.hbm [shape: f32[2,16,128], index: 11, kind: output, shape index: {}]  }
   0x1   :  { %5203 = sst [smem:[#allocation21_spill]] %s5178_s0 }
   0x2   :  { %5204 = sst [smem:[#allocation22_spill]] %s5182_s4 }
   0x3   :  { %5205 = sst [smem:[#allocation23_spill]] %s5189_s11 }
   0x4   :  { %16 = vsyncpa [#allocation8], 0 }
   0x5   :  { %18 = vsyncpa [#allocation8 + $0x1], 0  ;;  %s4446_s17 = smov 0   ;;  %s4448_s18 = smov 0  }
   0x6   :  { %s4450_s19 = smov 0   ;;  %s4452_s20 = smov 0  }
   0x7   :  { %s4454_s21 = smov 0   ;;  %s4456_s22 = smov 0  }
   0x8   :  { %s4458_s23 = smov 0   ;;  %s4460_s24 = smov 0  }
   0x9 LB: > { %5206 = sst [smem:[#allocation10_spill]] %s4345_s17  ;;  %s3430_s25 = sadd.s32 4294967295, %s4373_s24   ;;  %s4373_s24 = sphi %s4460_s24, %s24_s24   ;;  %s4369_s23 = sphi %s4458_s23, %s5234_s23   ;;  %s4365_s22 = sphi %s4456_s22, %s5233_s22   ;;  %s4361_s21 = sphi %s4454_s21, %s5232_s21   ;;  %s4357_s20 = sphi %s4452_s20, %s5231_s20   ;;  %s4353_s19 = sphi %s4450_s19, %s5230_s19   ;;  %s4349_s18 = sphi %s4448_s18, %s5229_s18   ;;  %s4345_s17 = sphi %s4446_s17, %s5228_s17  }
   0xa   : > { %5207 = sst [smem:[#allocation11_spill]] %s4349_s18  ;;  %s3431_s26 = sadd.s32 4294967294, %s4373_s24  }
   0xb   : > { %5208 = sst [smem:[#allocation12_spill]] %s4353_s19  ;;  %s33_s27 = sadd.s32 1, %s4365_s22 }
   0xc   : > { %5209 = sst [smem:[#allocation13_spill]] %s4365_s22  ;;  %p34_p0 = scmp.ge.s32.totalorder %s33_s27, 2 }
   0xd   : > { %5210 = sst [smem:[#allocation14_spill]] %s4369_s23  ;;  %s36_s28 = sadd.s32 1, %s4369_s23 }
   0xe   : > { %5211 = sst [smem:[#allocation15_spill]] %s4373_s24  ;;  %p319_p1 = scmp.ne.s32.totalorder %s4353_s19, %s4349_s18 }
   0xf   : > { %p320_p2 = scmp.eq.s32.totalorder %s3430_s25, 3  ;;  %s5236_s27 = smov (%p34_p0, %s33_s27), 0 }
  0x10   : > { %5212 = sst [smem:[#allocation16_spill]] %s5236_s27  ;;  %s5238_s28 = smov (!%p34_p0, %s36_s28), %s4369_s23 }
  0x11   : > { %p4495_p3 = por %p320_p2, %p319_p1  ;;  %p325_p4 = scmp.ne.s32.totalorder %s4349_s18, %s4345_s17 }
  0x12   : > { %p38_p5 = scmp.ge.s32.totalorder %s5238_s28, 2  ;;  %p326_p6 = scmp.eq.s32.totalorder %s3431_s26, 3 }
  0x13   : > { %s5213_s29 = scalar_select %p4495_p3, 1, 0 }
  0x14   : > { %p3434_p7 = scmp.ge.s32.totalorder %s4373_s24, 1  ;;  %p411_p8 = scmp.lt.s32.totalorder %s4373_s24, 5 }
  0x15   : > { %5214 = sst [smem:[#allocation17_spill]] %s5213_s29  ;;  %s5240_s28 = smov (%p38_p5, %s5238_s28), 0 }
  0x16   : > { %5215 = sst [smem:[#allocation18_spill]] %s5240_s28  ;;  %p4505_p9 = por %p326_p6, %p325_p4 }
  0x17   : > { %p412_p10 = pnand %p3434_p7, %p411_p8  ;;  %s306_s12 = ssub.s32 %s4369_s23, %s5240_s28 }
  0x18   : > { %s5216_s30 = scalar_select %p4505_p9, 1, 0 }
  0x19   : > { %s309_s13 = sadd.s32 1, %s4353_s19  ;;  %p307_p11 = scmp.eq.s32.totalorder %s306_s12, 0 }
  0x1a   : > { %5217 = sst [smem:[#allocation19_spill]] %s5216_s30  ;;  %415 = sbr.rel (%p412_p10) target bundleno = 4366 (0x110e), region = 64 }
  0x1b   : > { %s4513_s14 = scalar_select %p307_p11, %s4353_s19, %s309_s13  }
  0x1c   : > { %s5198_s15 = sand.u32 (!%p412_p10), 1, %s4349_s18   ;;  %p480_p12 = scmp.lt.s32.totalorder (!%p412_p10), %s4361_s21, 1 }
  0x1d   : > { %5218 = sst [smem:[#allocation20_spill]] %s4513_s14  ;;  %s3435_s26 = sshll.u32 (!%p412_p10), %s5198_s15, 4 }
  0x1e   : > { %s5219_s4 = sld [smem:[#allocation22_spill]] (!%p412_p10)  ;;  %p485_p13 = scmp.lt.s32.totalorder (!%p412_p10), %s4357_s20, 1 }
  0x1f   : > { %s5220_s0 = sld [smem:[#allocation21_spill]] (!%p412_p10)  ;;  %p3448_p0 = scmp.ne.s32.totalorder (!%p412_p10), %s4357_s20, 0 }
  0x21   : > { %s481_s12 = scalar_select %p480_p12, %s4361_s21, 1 }
  0x22   : > { %s486_s13 = scalar_select %p485_p13, %s4357_s20, 1 }
  0x23   : > { %s3958_s28 = smul.u32 12, %s481_s12  ;;  %v520_v1 = vld [vmem:[%s5179_s1] sm:$0xff] (!%p3448_p0)  ;;  %v521_v2 = vld [vmem:[%s5179_s1 + $0x8] sm:$0xff] (!%p3448_p0)  ;;  %v4042_v5 = vld [vmem:[%s5180_s2 + $0x10] sm:$0xff] (!%p3448_p0)   ;;  %v543_v13 = vlaneseq (!%p3448_p0) }
  0x24   : > { %v4520_v0 = vld [vmem:[%s5219_s4] sm:$0xf]  ;;  %s3620_s27 = sshll.u32 %s486_s13, 6  ;;  %s3621_s23 = sshll.u32 %s486_s13, 7  ;;  %522 = vst [vmem:[#allocation2] sm:$0xff] (!%p3448_p0), %v520_v1  ;;  %523 = vst [vmem:[#allocation2 + $0x8] sm:$0xff] (!%p3448_p0), %v521_v2 }
  0x25   : > { %s4530_s19 = scalar_lea.vmem %s5220_s0, %s3958_s28  ;;  %s4535_s24 = scalar_lea.vmem %s5183_s5, %s3620_s27  ;;  %v4040_v3 = vld [vmem:[%s5180_s2] sm:$0xff] (!%p3448_p0)   ;;  %v4041_v4 = vld [vmem:[%s5180_s2 + $0x8] sm:$0xff] (!%p3448_p0)   ;;  %v4043_v6 = vld [vmem:[%s5180_s2 + $0x18] sm:$0xff] (!%p3448_p0)   ;;  %v544_v14 = vshrl.u32 (!%p3448_p0), %v543_v13, 7 }
  0x26   : > { %s4540_s15 = scalar_lea.vmem %s5184_s6, %s3621_s23  ;;  %s4545_s12 = scalar_lea.vmem %s5185_s7, %s3620_s27  ;;  %3750 = vmatprep.subr.bf16.mxu0 (!%p3448_p0), %v4040_v3  ;;  %v4048_v7 = vld [vmem:[%s4530_s19] sm:$0xff] (!%p3448_p0)   ;;  %v4045_v9 = vld [vmem:[%s5180_s2 + $0x28] sm:$0xff] (!%p3448_p0)   ;;  %v4046_v10 = vld [vmem:[%s5180_s2 + $0x30] sm:$0xff] (!%p3448_p0)  }
  0x27   : > { %s3623_s29 = sshll.u32 %s486_s13, 8  ;;  %s3447_s18 = sshll.u32 %s486_s13, 3  ;;  %3751 = vmatpush3.bf16.msra.mxu0 (!%p3448_p0), %v4040_v3  ;;  %3766 = vmatprep.mubr.bf16.mxu0 (!%p3448_p0), %v4048_v7  ;;  %v4044_v8 = vld [vmem:[%s5180_s2 + $0x20] sm:$0xff] (!%p3448_p0)   ;;  %v4047_v11 = vld [vmem:[%s5180_s2 + $0x38] sm:$0xff] (!%p3448_p0)   ;;  %v545_v15 = vsub.s32 (!%p3448_p0), 0, %v544_v14 }
  0x28   : > { %s4550_s14 = scalar_lea.vmem %s5186_s8, %s3623_s29  ;;  %s4555_s0 = scalar_lea.vmem %s5187_s9, %s3623_s29  ;;  %3752 = vmatprep.subr.bf16.mxu0 (!%p3448_p0), %v4041_v4  ;;  %v4049_v12 = vld [vmem:[%s4530_s19 + $0x8] ss:$0 sps:$4 sm:$0x11] (!%p3448_p0)  }
  0x29   : > { %s4560_s25 = scalar_lea.vmem %s5188_s10, %s3447_s18  ;;  %s4562_s4 = scalar_lea.vmem [#allocation7], %s3435_s26  ;;  %v546_v16 = vrot.slane (!%p3448_p0), %v4520_v0, %v545_v15 }
  0x2a   : > { %519 = sbr.rel (%p3448_p0) target bundleno = 288 (0x120), region = 68 }
  0x2b   : > { %3753 = vmatpush3.bf16.msra.mxu0 (!%p3448_p0), %v4041_v4 }
  0x2c   : > { %3754 = vmatprep.subr.bf16.mxu0 (!%p3448_p0), %v4042_v5 }
  0x2f   : > { %3755 = vmatpush3.bf16.msra.mxu0 (!%p3448_p0), %v4042_v5 }
  0x30   : > { %3756 = vmatprep.subr.bf16.mxu0 (!%p3448_p0), %v4043_v6 }
  0x33   : > { %3757 = vmatpush3.bf16.msra.mxu0 %v4043_v6 }
  0x34   : > { %3758 = vmatprep.subr.bf16.mxu0 %v4044_v8 }
  0x37   : > { %3759 = vmatpush3.bf16.msra.mxu0 %v4044_v8 }
  0x38   : > { %3760 = vmatprep.subr.bf16.mxu0 %v4045_v9 }
  0x3b   : > { %3761 = vmatpush3.bf16.msra.mxu0 %v4045_v9 }
  0x3c   : > { %3762 = vmatprep.subr.bf16.mxu0 %v4046_v10 }
  0x3f   : > { %3763 = vmatpush3.bf16.msra.mxu0 %v4046_v10 }
  0x40   : > { %3764 = vmatprep.subr.bf16.mxu0 %v4047_v11 }
  0x43   : > { %3765 = vmatpush3.bf16.msra.mxu0 %v4047_v11 }
  0x46   : > { %3767 = vmatmul.mubr.bf16.vlgmr.msra.gmra.mrb[0].mxu0 %v4049_v12 }
 0x119   : > { %v3768_v17 = vpop.f32.mrb[0].mxu0 }
 0x11a   : > { %v648_v18 = vadd.f32 %v3768_v17, %v546_v16  ;;  %v639_v19 = vpop.f32.mrb[1].mxu0 }
 0x11b   : > { %v640_v20 = vadd.f32 %v639_v19, %v546_v16  ;;  %v3769_v21 = vpop.f32.mrb[2].mxu0 }
 0x11c   : > { %655 = vst [vmem:[#allocation3 + $0x10] sm:$0x1] %v648_v18  ;;  %v642_v22 = vpop.f32.mrb[3].mxu0 }
 0x11d   : > { %653 = vst [vmem:[#allocation3] sm:$0xff] %v640_v20  ;;  %v643_v23 = vadd.f32 %v642_v22, %v546_v16 }
 0x11f   : > { %654 = vst [vmem:[#allocation3 + $0x8] sm:$0xff] %v643_v23 }
 0x120 PF: > { %v657_v24 = vld [vmem:[#allocation2] sm:$0xff]  ;;  %v658_v26 = vld [vmem:[#allocation2 + $0x8] sm:$0xff]  ;;  %v4375_v29 = vmov 0   ;;  %vm666_vm0 = vcmask 1040384   ;;  %v4376_v34 = vmov 0.0   ;;  %v4055_v57 = vld [vmem:[%s4535_s24 + $0x10] sm:$0xff]   ;;  %v699_v21 = vlaneseq }
 0x121   : > { %713 = vadd.xlane.f32.xlu0 %v657_v24  ;;  %984 = vmatprep.mubr.bf16.mxu1 %v4375_v29  ;;  %v4050_v31 = vld [vmem:[%s4535_s24] sm:$0xff]   ;;  %v4051_v32 = vld [vmem:[%s4535_s24 + $0x8] sm:$0xff]   ;;  %v4636_v58 = vld [vmem:[%s4540_s15 + $0x14] ss:$8 sps:$4 sm:$0xff]   ;;  %vm4377_vm1 = vmmov 0   ;;  %vm1028_vm3 = vcmask 1044484  }
 0x122   : > { %v4603_v33 = vld [vmem:[%s4540_s15 + $0x4] ss:$8 sps:$4 sm:$0xff]   ;;  %3770 = vmatprep.subr.bf16.mxu0 %v4376_v34  ;;  %v4631_v56 = vld [vmem:[%s4540_s15] ss:$8 sps:$4 sm:$0xff]   ;;  %v4640_v59 = vld [vmem:[%s4540_s15 + $0x10] ss:$8 sps:$4 sm:$0xff]   ;;  %3786 = vmatprep.mubr.msk.bf16.mxu0 %vm4377_vm1, %v4376_v34 }
 0x123   : > { %v661_v28 = vld [vmem:[#allocation3 + $0x10] sm:$0x1]  ;;  %3771 = vmatpush3.bf16.msra.mxu0 %v4050_v31  ;;  %952 = vmatprep.subr.bf16.mxu1 %v4603_v33  ;;  %v4059_v60 = vld [vmem:[%s4535_s24 + $0x18] sm:$0xff]   ;;  %v4646_v61 = vld [vmem:[%s4540_s15 + $0x24] ss:$8 sps:$4 sm:$0xff]   ;;  %vm1194_vm8 = vcmask 261120  }
 0x124   : > { %v659_v25 = vld [vmem:[#allocation3] sm:$0xff]  ;;  %v667_v30 = vsel %vm666_vm0, %v661_v28, 0.0  ;;  %3772 = vmatprep.subr.bf16.mxu0 %v4376_v34  ;;  %953 = vmatpush1.bf16.msra.mxu1 %v4631_v56  ;;  %v4649_v62 = vld [vmem:[%s4540_s15 + $0x20] ss:$8 sps:$4 sm:$0xff]   ;;  %v4666_v4 = vld [vmem:[%s4540_s15 + $0x44] ss:$8 sps:$4 sm:$0xff]  }
 0x125   : > { %662 = vadd.xlane.f32.xlu1 %v659_v25  ;;  %715 = vadd.xlane.f32.xlu0 %v658_v26  ;;  %v4063_v63 = vld [vmem:[%s4535_s24 + $0x20] sm:$0xff]   ;;  %v4656_v1 = vld [vmem:[%s4540_s15 + $0x34] ss:$8 sps:$4 sm:$0xff]   ;;  %v4659_v2 = vld [vmem:[%s4540_s15 + $0x30] ss:$8 sps:$4 sm:$0xff]   ;;  %vm1289_vm9 = vcmask 138240  }
 0x126   : > { %v660_v27 = vld [vmem:[#allocation3 + $0x8] sm:$0xff]  ;;  %954 = vmatprep.subr.bf16.mxu1 %v4636_v58  ;;  %v4067_v3 = vld [vmem:[%s4535_s24 + $0x28] sm:$0xff]   ;;  %v4071_v7 = vld [vmem:[%s4535_s24 + $0x30] sm:$0xff]   ;;  %vm1026_vm2 = vsmask.f32 256  ;;  %vm1296_vm10 = vcmask 130048  }
 0x127   : > { %3773 = vmatpush3.bf16.msra.mxu0 %v4051_v32  ;;  %v4669_v5 = vld [vmem:[%s4540_s15 + $0x40] ss:$8 sps:$4 sm:$0xff]   ;;  %v4672_v6 = vld [vmem:[%s4540_s15 + $0x54] ss:$8 sps:$4 sm:$0xff]   ;;  %v4681_v8 = vld [vmem:[%s4540_s15 + $0x50] ss:$8 sps:$4 sm:$0xff]  }
 0x128   : > { %3774 = vmatprep.subr.bf16.mxu0 %v4376_v34  ;;  %955 = vmatpush1.bf16.msra.mxu1 %v4640_v59  ;;  %v4685_v9 = vld [vmem:[%s4540_s15 + $0x64] ss:$8 sps:$4 sm:$0xff]   ;;  %v4075_v10 = vld [vmem:[%s4535_s24 + $0x38] sm:$0xff]   ;;  %v4691_v11 = vld [vmem:[%s4540_s15 + $0x60] ss:$8 sps:$4 sm:$0xff]   ;;  %s4378_s19 = smov 96  }
 0x129   : > { %664 = vadd.xlane.f32.xlu1 %v660_v27  ;;  %668 = vadd.xlane.f32.xlu0 %v667_v30  ;;  %v4697_v12 = vld [vmem:[%s4540_s15 + $0x74] ss:$8 sps:$4 sm:$0xff]   ;;  %v4701_v13 = vld [vmem:[%s4540_s15 + $0x70] ss:$8 sps:$4 sm:$0xff]   ;;  %vm1029_vm4 = vsmask.f32 4352  ;;  %vm1027_vm5 = vmand %vm666_vm0, %vm1026_vm2 }
 0x12a   : > { %956 = vmatprep.subr.bf16.mxu1 %v4646_v61  ;;  %vm1030_vm6 = vmand %vm1028_vm3, %vm1029_vm4  ;;  %s4379_s24 = smov 64   ;;  %s4380_s15 = smov 32   ;;  %vm1720_vm11 = vcmask 523520   ;;  %vm2000_vm12 = vcmask 785920   ;;  %vm2280_vm13 = vcmask 1048320  }
 0x12b   : > { %3775 = vmatpush3.bf16.msra.mxu0 %v4055_v57  ;;  %vm1031_vm7 = vmor %vm1030_vm6, %vm1027_vm5  ;;  %p3606_p1 = scmp.ne.s32.totalorder %s4357_s20, 1 }
 0x12c   : > { %3776 = vmatprep.subr.bf16.mxu0 %v4376_v34  ;;  %957 = vmatpush1.bf16.msra.mxu1 %v4649_v62  ;;  %vm4382_vm14 = vmmov (!%p3606_p1), 0  }
 0x12d   : > { %958 = vmatprep.subr.bf16.mxu1 %v4656_v1 }
 0x12f   : > { %3777 = vmatpush3.bf16.msra.mxu0 %v4059_v60 }
 0x130   : > { %3778 = vmatprep.subr.bf16.mxu0 %v4376_v34  ;;  %959 = vmatpush1.bf16.msra.mxu1 %v4659_v2 }
 0x131   : > { %960 = vmatprep.subr.bf16.mxu1 %v4666_v4 }
 0x133   : > { %3779 = vmatpush3.bf16.msra.mxu0 %v4063_v63 }
 0x134   : > { %3780 = vmatprep.subr.bf16.mxu0 %v4376_v34  ;;  %961 = vmatpush1.bf16.msra.mxu1 %v4669_v5 }
 0x135   : > { %962 = vmatprep.subr.bf16.mxu1 %v4672_v6 }
 0x137   : > { %3781 = vmatpush3.bf16.msra.mxu0 %v4067_v3 }
 0x138   : > { %3782 = vmatprep.subr.bf16.mxu0 %v4376_v34  ;;  %963 = vmatpush1.bf16.msra.mxu1 %v4681_v8 }
 0x139   : > { %964 = vmatprep.subr.bf16.mxu1 %v4685_v9 }
 0x13b   : > { %3783 = vmatpush3.bf16.msra.mxu0 %v4071_v7 }
 0x13c   : > { %3784 = vmatprep.subr.bf16.mxu0 %v4376_v34  ;;  %965 = vmatpush1.bf16.msra.mxu1 %v4691_v11 }
 0x13d   : > { %966 = vmatprep.subr.bf16.mxu1 %v4697_v12 }
 0x13f   : > { %3785 = vmatpush3.bf16.msra.mxu0 %v4075_v10 }
 0x140   : > { %1131 = vmatprep.subr.bf16.mxu0 %v4603_v33  ;;  %967 = vmatpush1.bf16.msra.mxu1 %v4701_v13  ;;  %v656_v33 = vld [vmem:[%s4560_s25] sm:$0xff] }
 0x141   : > { %3790 = vmatprep.subr.bf16.mxu1 %v4376_v34 }
 0x1ae   : > { %v714_v35 = vpop.xlane.xlu0 %713 }
 0x1af   : > { %v717_v37 = vmul.f32 0.0078125, %v714_v35 }
 0x1b1   : > { %v4609_v39 = vsub.f32 %v657_v24, %v717_v37 }
 0x1b2   : > { %v663_v36 = vpop.xlane.xlu1 %662  ;;  %v716_v41 = vpop.xlane.xlu0 %715 }
 0x1b3   : > { %v671_v38 = vmul.f32 0.0078125, %v663_v36  ;;  %v718_v43 = vmul.f32 0.0078125, %v716_v41  ;;  %v721_v44 = vmul.f32 %v4609_v39, %v4609_v39 }
 0x1b5   : > { %v4611_v40 = vsub.f32 %v659_v25, %v671_v38  ;;  %v4615_v46 = vsub.f32 %v658_v26, %v718_v43  ;;  %723 = vadd.xlane.f32.xlu1 %v721_v44 }
 0x1b6   : > { %v665_v42 = vpop.xlane.xlu1 %664  ;;  %v669_v49 = vpop.xlane.xlu0 %668 }
 0x1b7   : > { %v672_v45 = vmul.f32 0.0078125, %v665_v42  ;;  %v677_v48 = vmul.f32 %v4611_v40, %v4611_v40  ;;  %v673_v50 = vmul.f32 0.0078125, %v669_v49  ;;  %v722_v51 = vmul.f32 %v4615_v46, %v4615_v46 }
 0x1b9   : > { %v4617_v47 = vsub.f32 %v660_v27, %v672_v45  ;;  %v4623_v52 = vsub.f32 %v661_v28, %v673_v50  ;;  %680 = vadd.xlane.f32.xlu1 %v677_v48  ;;  %725 = vadd.xlane.f32.xlu0 %v722_v51  ;;  %v4705_v27 = vshrl.u32 %v699_v21, 7 }
 0x1bb   : > { %v678_v53 = vmul.f32 %v4617_v47, %v4617_v47  ;;  %v679_v54 = vmul.f32 %v4623_v52, %v4623_v52  ;;  %v737_v32 = vsub.s32 2, %v4705_v27  ;;  %v701_v36 = vsub.s32 0, %v4705_v27 }
 0x1bc   : > { %v743_v41 = vsub.s32 3, %v4705_v27  ;;  %v708_v48 = vsub.s32 1, %v4705_v27 }
 0x1bd   : > { %682 = vadd.xlane.f32.xlu0 %v678_v53  ;;  %v684_v55 = vsel %vm666_vm0, %v679_v54, 0.0  ;;  %v738_v38 = vrot.slane %v656_v33, %v737_v32  ;;  %v702_v45 = vrot.slane %v656_v33, %v701_v36 }
 0x1be   : > { %685 = vadd.xlane.f32.xlu1 %v684_v55  ;;  %v744_v51 = vrot.slane %v656_v33, %v743_v41  ;;  %v709_v60 = vrot.slane %v656_v33, %v708_v48 }
 0x242   : > { %v724_v14 = vpop.xlane.xlu1 %723 }
 0x243   : > { %v727_v15 = vmul.f32 0.0078125, %v724_v14 }
 0x245   : > { %v729_v16 = vadd.f32 1e-05, %v727_v15 }
 0x246   : > { %v681_v17 = vpop.xlane.xlu1 %680  ;;  %v726_v18 = vpop.xlane.xlu0 %725 }
 0x247   : > { %4186 = vrsqrt.f32 %v729_v16  ;;  %v687_v19 = vmul.f32 0.0078125, %v681_v17  ;;  %v728_v20 = vmul.f32 0.0078125, %v726_v18 }
 0x249   : > { %v690_v22 = vadd.f32 1e-05, %v687_v19  ;;  %v730_v23 = vadd.f32 1e-05, %v728_v20 }
 0x24a   : > { %v683_v24 = vpop.xlane.xlu0 %682 }
 0x24b   : > { %4188 = vrsqrt.f32 %v690_v22  ;;  %v688_v25 = vmul.f32 0.0078125, %v683_v24  ;;  %v686_v26 = vpop.xlane.xlu1 %685 }
 0x24c   : > { %4190 = vrsqrt.f32 %v730_v23  ;;  %v689_v28 = vmul.f32 0.0078125, %v686_v26 }
 0x24d   : > { %v691_v30 = vadd.f32 1e-05, %v688_v25 }
 0x24e   : > { %v692_v31 = vadd.f32 1e-05, %v689_v28 }
 0x24f   : > { %4192 = vrsqrt.f32 %v691_v30 }
 0x250   : > { %4194 = vrsqrt.f32 %v692_v31 }
 0x251   : > { %v4187_v35 = vpop.eup %4186 }
 0x252   : > { %v733_v37 = vmul.f32 %v4187_v35, %v4609_v39 }
 0x254   : > { %v739_v50 = vmul.f32 %v738_v38, %v733_v37 }
 0x255   : > { %v4189_v42 = vpop.eup %4188 }
 0x256   : > { %v4191_v43 = vpop.eup %4190  ;;  %v696_v44 = vmul.f32 %v4189_v42, %v4611_v40  ;;  %v745_v63 = vadd.f32 %v744_v51, %v739_v50 }
 0x257   : > { %v734_v49 = vmul.f32 %v4191_v43, %v4615_v46 }
 0x258   : > { %v703_v57 = vmul.f32 %v702_v45, %v696_v44 }
 0x259   : > { %v4193_v53 = vpop.eup %4192  ;;  %v740_v39 = vmul.f32 %v738_v38, %v734_v49 }
 0x25a   : > { %v4195_v54 = vpop.eup %4194  ;;  %v697_v55 = vmul.f32 %v4193_v53, %v4617_v47  ;;  %v710_v46 = vadd.f32 %v709_v60, %v703_v57 }
 0x25b   : > { %v746_v40 = vadd.f32 %v744_v51, %v740_v39  ;;  %v698_v7 = vmul.f32 %v4195_v54, %v4623_v52 }
 0x25c   : > { %v704_v3 = vmul.f32 %v702_v45, %v697_v55 }
 0x25d   : > { %v763_v10 = vpack.c.bf16 %v746_v40, %v745_v63  ;;  %v705_v16 = vmul.f32 %v702_v45, %v698_v7 }
 0x25e   : > { %v711_v14 = vadd.f32 %v709_v60, %v704_v3 }
 0x25f   : > { %3787 = vmatmul.mubr.bf16.vlgmr.msra.gmra.mrb[0].mxu0 %v763_v10  ;;  %v712_v47 = vadd.f32 %v709_v60, %v705_v16 }
 0x260   : > { %1132 = vmatpush1.bf16.msra.mxu0 %v4631_v56  ;;  %v870_v15 = vpack.c.bf16 %v711_v14, %v710_v46  ;;  %1163 = vmatprep.mubr.bf16.mxu0 %v4375_v29 }
 0x261   : > { %1133 = vmatprep.subr.bf16.mxu0 %v4636_v58  ;;  %v871_v52 = vpack.c.bf16 %v712_v47, %v712_v47 }
 0x262   : > { %985 = vmatmul.mubr.bf16.vlgmr.msra.gmra.mrb[0].mxu1 %v870_v15 }
 0x263   : > { %994 = vmatprep.mubr.bf16.mxu1 %v4375_v29 }
 0x264   : > { %1134 = vmatpush1.bf16.msra.mxu0 %v4640_v59 }
 0x265   : > { %1135 = vmatprep.subr.bf16.mxu0 %v4646_v61 }
 0x268   : > { %1136 = vmatpush1.bf16.msra.mxu0 %v4649_v62 }
 0x269   : > { %1137 = vmatprep.subr.bf16.mxu0 %v4656_v1 }
 0x26a   : > { %995 = vmatmul.mubr.bf16.gmra.mrb[4].mxu1 %v871_v52 }
 0x26b   : > { %3794 = vmatprep.mubr.msk.bf16.mxu1 %vm4377_vm1, %v4376_v34 }
 0x26c   : > { %1138 = vmatpush1.bf16.msra.mxu0 %v4659_v2 }
 0x26d   : > { %1139 = vmatprep.subr.bf16.mxu0 %v4666_v4 }
 0x270   : > { %1140 = vmatpush1.bf16.msra.mxu0 %v4669_v5 }
 0x271   : > { %1141 = vmatprep.subr.bf16.mxu0 %v4672_v6 }
 0x274   : > { %1142 = vmatpush1.bf16.msra.mxu0 %v4681_v8 }
 0x275   : > { %1143 = vmatprep.subr.bf16.mxu0 %v4685_v9 }
 0x278   : > { %1144 = vmatpush1.bf16.msra.mxu0 %v4691_v11 }
 0x279   : > { %1145 = vmatprep.subr.bf16.mxu0 %v4697_v12  ;;  %v1032_v12 = vld [vmem:[#allocation4 + $0x10] sm:$0x11] }
 0x27c   : > { %1146 = vmatpush1.bf16.msra.mxu0 %v4701_v13 }
 0x27d   : > { %3798 = vmatprep.subr.bf16.mxu0 %v4376_v34 }
 0x27f   : > { %1164 = vmatmul.mubr.bf16.vlgmr.msra.gmra.mrb[4].mxu0 %v763_v10 }
 0x280   : > { %3800 = vmatprep.mubr.msk.bf16.mxu0 %vm4377_vm1, %v4376_v34 }
 0x332   : > { %v846_v56 = vpop.f32.mrb[0].mxu0 }
 0x333   : > { %v3788_v58 = vpop.f32.mrb[1].mxu0 }
 0x334   : > { %v849_v59 = vpop.f32.mrb[2].mxu0 }
 0x335   : > { %v4745_v61 = vpack.c.bf16 %v849_v59, %v846_v56  ;;  %v3789_v62 = vpop.f32.mrb[3].mxu0  ;;  %v986_v1 = vpop.f32.mrb[0].mxu1 }
 0x336   : > { %v988_v2 = vpop.f32.mrb[1].mxu1 }
 0x337   : > { %v3625_v4 = vpack.c.bf16 %v988_v2, %v986_v1  ;;  %v990_v5 = vpop.f32.mrb[2].mxu1 }
 0x338   : > { %v992_v6 = vpop.f32.mrb[3].mxu1 }
 0x339   : > { %1023 = vst [vmem:[#allocation4] sm:$0xff] %v3625_v4  ;;  %v3626_v8 = vpack.c.bf16 %v992_v6, %v990_v5 }
 0x33b   : > { %1024 = vst [vmem:[#allocation4 + $0x8] sm:$0xff] %v3626_v8 }
 0x33d   : > { %v996_v9 = vpop.f32.mrb[4].mxu1 }
 0x33e   : > { %v998_v11 = vpop.f32.mrb[5].mxu1 }
 0x33f   : > { %v3627_v13 = vpack.c.bf16 %v998_v11, %v996_v9  ;;  %v1000_v17 = vpop.f32.mrb[6].mxu1 }
 0x340   : > { %v1001_v18 = vpop.f32.mrb[7].mxu1  ;;  %v4798_v17 = vsel %vm666_vm0, 65535, %v4375_v29 }
 0x341   : > { %v1033_v19 = vsel %vm1031_vm7, %v3627_v13, %v1032_v12 }
 0x342   : > { %1034 = vst [vmem:[#allocation4 + $0x10] sm:$0x11] %v1033_v19  ;;  %v4082_v20 = vld [vmem:[#allocation4] ss:$8 sps:$4 sm:$0xff]   ;;  %v4086_v12 = vld [vmem:[#allocation4 + $0x4] ss:$8 sps:$4 sm:$0xff]  }
 0x343   : > { %v1199_v21 = vsel %vm1194_vm8, %v4082_v20, 0  ;;  %v4085_v54 = vld [vmem:[#allocation4] ss:$8 sps:$4 sm:$0xff]  }
 0x344   : > { %3791 = vmatpush3.bf16.xpose.msra.mxu1 %v1199_v21 }
 0x345   : > { %3792 = vmatprep.subr.bf16.mxu1 %v4376_v34 }
 0x349   : > { %v4083_v22 = vld [vmem:[#allocation4 + $0x10] ss:$0 sps:$4 sm:$0x11]   ;;  %v4087_v13 = vld [vmem:[#allocation4 + $0x14] ss:$0 sps:$4 sm:$0x11]  }
 0x34a   : > { %v1202_v23 = vsel %vm1194_vm8, %v4083_v22, 0  ;;  %v4084_v39 = vld [vmem:[#allocation4 + $0x10] ss:$0 sps:$4 sm:$0x11]   ;;  %v1392_v18 = vand.u32 %v4087_v13, %v4798_v17 }
 0x34c   : > { %3793 = vmatpush3.bf16.xpose.msra.mxu1 %v1202_v23 }
 0x34d   : > { %3804 = vmatprep.subr.bf16.mxu1 %v4376_v34 }
 0x352   : > { %v1165_v24 = vpop.f32.mrb[4].mxu0 }
 0x353   : > { %v1167_v25 = vpop.f32.mrb[5].mxu0  ;;  %3795 = vmatmul.mubr.msk.bf16.vlgmr.msra.gmra.mrb[8].mxu1 %vm1194_vm8, %v4745_v61 }
 0x354   : > { %v1169_v26 = vpop.f32.mrb[6].mxu0  ;;  %3806 = vmatprep.mubr.msk.bf16.mxu1 %vm4377_vm1, %v4376_v34 }
 0x355   : > { %v4754_v28 = vpack.c.bf16 %v1169_v26, %v1165_v24  ;;  %v1171_v30 = vpop.f32.mrb[7].mxu0 }
 0x356   : > { %v4758_v31 = vpack.c.bf16 %v1171_v30, %v1167_v25 }
 0x357   : > { %v1246_v33 = vsel %vm1194_vm8, %v4754_v28, 0 }
 0x358   : > { %3799 = vmatpush3.bf16.xpose.msra.mxu0 %v1246_v33  ;;  %3805 = vmatpush3.bf16.msra.mxu1 %v4758_v31 }
 0x359   : > { %3818 = vmatprep.subr.bf16.mxu0 %v4376_v34  ;;  %3810 = vmatprep.subr.bf16.mxu1 %v4376_v34 }
 0x35f   : > { %3801 = vmatmul.mubr.msk.bf16.vlgmr.msra.gmra.mrb[8].mxu0 %vm1194_vm8, %v4745_v61 }
 0x360   : > { %3822 = vmatprep.mubr.msk.bf16.mxu0 %vm4377_vm1, %v4376_v34 }
 0x426   : > { %v1238_v35 = vpop.f32.mrb[8].mxu1 }
 0x427   : > { %v3796_v36 = vpop.f32.mrb[9].mxu1  ;;  %v1290_v37 = vsel %vm1289_vm9, %v1238_v35, -inf }
 0x428   : > { %1291 = vmax.xlane.f32.xlu0 %v1290_v37  ;;  %v1241_v38 = vpop.f32.mrb[10].mxu1  ;;  %v4088_v36 = vld [vmem:[#allocation4 + $0x4] ss:$8 sps:$4 sm:$0xff]  }
 0x429   : > { %v3797_v42 = vpop.f32.mrb[11].mxu1  ;;  %v1293_v43 = vsel %vm1289_vm9, %v1241_v38, -inf }
 0x42a   : > { %1294 = vmax.xlane.f32.xlu1 %v1293_v43  ;;  %v4089_v43 = vld [vmem:[#allocation4 + $0x14] ss:$0 sps:$4 sm:$0x11]  }
 0x432   : > { %v1282_v44 = vpop.f32.mrb[8].mxu0 }
 0x433   : > { %v3802_v45 = vpop.f32.mrb[9].mxu0  ;;  %v1297_v49 = vsel %vm1296_vm10, %v1282_v44, -inf }
 0x434   : > { %v1285_v50 = vpop.f32.mrb[10].mxu0  ;;  %1298 = vmax.xlane.f32.xlu0 %v1297_v49 }
 0x435   : > { %v3803_v51 = vpop.f32.mrb[11].mxu0  ;;  %v1300_v53 = vsel %vm1296_vm10, %v1285_v50, -inf }
 0x436   : > { %1301 = vmax.xlane.f32.xlu1 %v1300_v53  ;;  %v4091_v51 = vld [vmem:[#allocation4 + $0x10] ss:$0 sps:$4 sm:$0x11]  }
 0x447   : > { %1462 = vrot.lane.b32.xlu1 %v4084_v39, %s4378_s19 }
 0x44a   : > { %1460 = vrot.lane.b32.xlu0 %v4085_v54, %s4378_s19 }
 0x44b   : > { %1515 = vrot.lane.b32.xlu1 %v4754_v28, %s4378_s19 }
 0x44f   : > { %1450 = vrot.lane.b32.xlu1 %v4745_v61, %s4378_s19 }
 0x4b5   : > { %v1292_v55 = vpop.xlane.xlu0 %1291 }
 0x4b7   : > { %v1295_v57 = vpop.xlane.xlu1 %1294 }
 0x4c1   : > { %v1299_v60 = vpop.xlane.xlu0 %1298 }
 0x4c2   : > { %v1303_v63 = vmax.f32 %v1292_v55, %v1299_v60 }
 0x4c3   : > { %v1302_v40 = vpop.xlane.xlu1 %1301 }
 0x4c4   : > { %v1305_v3 = vsub.f32 %v1238_v35, %v1303_v63  ;;  %v1311_v7 = vsub.f32 %v1282_v44, %v1303_v63  ;;  %v1304_v10 = vmax.f32 %v1295_v57, %v1302_v40 }
 0x4c5   : > { %v1461_v46 = vpop.permute.xlu0 %1460 }
 0x4c6   : > { %v1307_v14 = vmul.f32 1.442695, %v1305_v3  ;;  %v1313_v15 = vmul.f32 1.442695, %v1311_v7  ;;  %v1306_v16 = vsub.f32 %v1241_v38, %v1304_v10  ;;  %v1312_v47 = vsub.f32 %v1285_v50, %v1304_v10  ;;  %v4090_v50 = vld [vmem:[#allocation4] ss:$8 sps:$4 sm:$0xff]  }
 0x4c7   : > { %v1468_v52 = vsel %vm1194_vm8, %v1461_v46, 0  ;;  %v1463_v59 = vpop.permute.xlu1 %1462 }
 0x4c8   : > { %4196 = vpow2.f32 %v1307_v14  ;;  %v1309_v56 = vmul.f32 1.442695, %v1306_v16  ;;  %v1315_v58 = vmul.f32 1.442695, %v1312_v47  ;;  %3819 = vmatpush3.bf16.xpose.msra.mxu0 %v1468_v52  ;;  %v1471_v62 = vsel %vm1194_vm8, %v1463_v59, 0 }
 0x4c9   : > { %4198 = vpow2.f32 %v1313_v15  ;;  %3820 = vmatprep.subr.bf16.mxu0 %v4376_v34 }
 0x4ca   : > { %4200 = vpow2.f32 %v1309_v56 }
 0x4cb   : > { %4202 = vpow2.f32 %v1315_v58  ;;  %v1516_v1 = vpop.permute.xlu1 %1515 }
 0x4cc   : > { %v1518_v19 = vsel %vm1194_vm8, %v1516_v1, 0 }
 0x4cf   : > { %v1451_v9 = vpop.permute.xlu1 %1450 }
 0x4d0   : > { %3821 = vmatpush3.bf16.xpose.msra.mxu0 %v1471_v62 }
 0x4d1   : > { %3832 = vmatprep.subr.bf16.mxu0 %v4376_v34 }
 0x4d2   : > { %v4783_v2 = vpop.eup %4196 }
 0x4d3   : > { %v4785_v4 = vpop.eup %4198 }
 0x4d4   : > { %v4787_v5 = vpop.eup %4200 }
 0x4d5   : > { %v4789_v6 = vpop.eup %4202  ;;  %v1331_v8 = vpack.c.bf16 %v4787_v5, %v4783_v2 }
 0x4d6   : > { %v1332_v11 = vpack.c.bf16 %v4789_v6, %v4785_v4 }
 0x4d7   : > { %3823 = vmatmul.mubr.msk.bf16.vlgmr.msra.gmra.mrb[12].mxu0 %vm1194_vm8, %v1451_v9 }
 0x4d8   : > { %3807 = vmatmul.mubr.msk.bf16.vlgmr.msra.gmra.mrb[12].mxu1 %vm1296_vm10, %v1332_v11  ;;  %3834 = vmatprep.mubr.msk.bf16.mxu0 %vm4377_vm1, %v4376_v34 }
 0x4d9   : > { %3811 = vmatpush3.bf16.msra.mxu1 %v4086_v12  ;;  %3814 = vmatprep.mubr.msk.bf16.mxu1 %vm4377_vm1, %v4376_v34 }
 0x4da   : > { %3812 = vmatprep.subr.bf16.mxu1 %v4376_v34 }
 0x4dd   : > { %3813 = vmatpush3.bf16.msra.mxu1 %v1392_v18 }
 0x4de   : > { %3826 = vmatprep.subr.bf16.mxu1 %v4376_v34 }
 0x4e4   : > { %3815 = vmatmul.mubr.msk.bf16.vlgmr.msra.gmra.mrb[12].mxu1 %vm1289_vm9, %v1331_v8 }
 0x4e5   : > { %3828 = vmatprep.mubr.msk.bf16.mxu1 %vm4377_vm1, %v4376_v34 }
 0x4e6   : > { %3827 = vmatpush3.bf16.xpose.msra.mxu1 %v1518_v19 }
 0x4e7   : > { %3846 = vmatprep.subr.bf16.mxu1 %v4376_v34 }
 0x4ed   : > { %3829 = vmatmul.mubr.msk.bf16.vlgmr.msra.gmra.mrb[16].mxu1 %vm1194_vm8, %v1451_v9 }
 0x4ee   : > { %3850 = vmatprep.mubr.msk.bf16.mxu1 %vm4377_vm1, %v4376_v34 }
 0x5aa   : > { %v1507_v20 = vpop.f32.mrb[12].mxu0 }
 0x5ab   : > { %v3824_v21 = vpop.f32.mrb[13].mxu0  ;;  %v1561_v22 = vsel %vm1289_vm9, %v1507_v20, -inf }
 0x5ac   : > { %1562 = vmax.xlane.f32.xlu0 %v1561_v22  ;;  %v1510_v23 = vpop.f32.mrb[14].mxu0 }
 0x5ad   : > { %v3825_v24 = vpop.f32.mrb[15].mxu0  ;;  %v1564_v25 = vsel %vm1289_vm9, %v1510_v23, -inf }
 0x5ae   : > { %1565 = vmax.xlane.f32.xlu1 %v1564_v25 }
 0x5b7   : > { %v4818_v26 = vpop.f32.mrb[12].mxu1 }
 0x5b8   : > { %v3816_v30 = vpop.f32.mrb[13].mxu1 }
 0x5b9   : > { %v4820_v33 = vpop.f32.mrb[14].mxu1 }
 0x5ba   : > { %v3817_v35 = vpop.f32.mrb[15].mxu1 }
 0x5bf   : > { %1659 = vrot.lane.b32.xlu1 %v4088_v36, %s4378_s19 }
 0x5c0   : > { %v1554_v37 = vpop.f32.mrb[16].mxu1 }
 0x5c1   : > { %v3830_v38 = vpop.f32.mrb[17].mxu1  ;;  %v1567_v42 = vsel %vm1296_vm10, %v1554_v37, -inf }
 0x5c2   : > { %1568 = vmax.xlane.f32.xlu0 %v1567_v42  ;;  %v1557_v44 = vpop.f32.mrb[18].mxu1 }
 0x5c3   : > { %v3831_v45 = vpop.f32.mrb[19].mxu1  ;;  %1661 = vrot.lane.b32.xlu1 %v4089_v43, %s4378_s19  ;;  %v1570_v49 = vsel %vm1296_vm10, %v1557_v44, -inf  ;;  %v4092_v43 = vld [vmem:[#allocation4 + $0x14] ss:$0 sps:$4 sm:$0x11]  }
 0x5c4   : > { %v4093_v45 = vld [vmem:[#allocation4] ss:$8 sps:$4 sm:$0xff]  }
 0x5c6   : > { %1571 = vmax.xlane.f32.xlu0 %v1570_v49 }
 0x5c7   : > { %1740 = vrot.lane.b32.xlu1 %v4090_v50, %s4379_s24 }
 0x5cb   : > { %1795 = vrot.lane.b32.xlu1 %v4754_v28, %s4379_s24 }
 0x5dc   : > { %1604 = vrot.lane.b32.xlu0 %v4758_v31, %s4378_s19 }
 0x5e0   : > { %1742 = vrot.lane.b32.xlu0 %v4091_v51, %s4379_s24 }
 0x5e4   : > { %1730 = vrot.lane.b32.xlu0 %v4745_v61, %s4379_s24 }
 0x639   : > { %v1563_v60 = vpop.xlane.xlu0 %1562 }
 0x63b   : > { %v1566_v53 = vpop.xlane.xlu1 %1565 }
 0x63f   : > { %v1660_v39 = vpop.permute.xlu1 %1659 }
 0x643   : > { %v1662_v54 = vpop.permute.xlu1 %1661 }
 0x644   : > { %v1668_v19 = vand.u32 %v1662_v54, %v4798_v17 }
 0x647   : > { %v1741_v55 = vpop.permute.xlu1 %1740 }
 0x648   : > { %v1748_v57 = vsel %vm1194_vm8, %v1741_v55, 0  ;;  %v4095_v55 = vld [vmem:[#allocation4 + $0x4] ss:$8 sps:$4 sm:$0xff]  }
 0x649   : > { %3847 = vmatpush3.bf16.xpose.msra.mxu1 %v1748_v57 }
 0x64a   : > { %3848 = vmatprep.subr.bf16.mxu1 %v4376_v34 }
 0x64f   : > { %v1569_v63 = vpop.xlane.xlu0 %1568 }
 0x650   : > { %v1573_v40 = vmax.f32 %v1563_v60, %v1569_v63 }
 0x652   : > { %v1575_v3 = vsub.f32 %v1507_v20, %v1573_v40  ;;  %v1581_v7 = vsub.f32 %v1554_v37, %v1573_v40  ;;  %v1796_v20 = vpop.permute.xlu1 %1795 }
 0x653   : > { %v1572_v10 = vpop.xlane.xlu0 %1571  ;;  %v1798_v21 = vsel %vm1194_vm8, %v1796_v20, 0 }
 0x654   : > { %v1577_v46 = vmul.f32 1.442695, %v1575_v3  ;;  %v1574_v14 = vmax.f32 %v1566_v53, %v1572_v10  ;;  %v1583_v15 = vmul.f32 1.442695, %v1581_v7 }
 0x656   : > { %v1576_v16 = vsub.f32 %v1510_v23, %v1574_v14  ;;  %v1582_v47 = vsub.f32 %v1557_v44, %v1574_v14  ;;  %4204 = vpow2.f32 %v1577_v46 }
 0x657   : > { %v1605_v52 = vpop.permute.xlu0 %1604  ;;  %4206 = vpow2.f32 %v1583_v15 }
 0x658   : > { %v1579_v56 = vmul.f32 1.442695, %v1576_v16  ;;  %v1585_v58 = vmul.f32 1.442695, %v1582_v47  ;;  %3833 = vmatpush3.bf16.msra.mxu0 %v1605_v52 }
 0x659   : > { %3838 = vmatprep.subr.bf16.mxu0 %v4376_v34 }
 0x65a   : > { %4208 = vpow2.f32 %v1579_v56 }
 0x65b   : > { %4210 = vpow2.f32 %v1585_v58  ;;  %v1743_v59 = vpop.permute.xlu0 %1742 }
 0x65c   : > { %v1751_v62 = vsel %vm1194_vm8, %v1743_v59, 0 }
 0x65d   : > { %3849 = vmatpush3.bf16.xpose.msra.mxu1 %v1751_v62 }
 0x65e   : > { %3860 = vmatprep.subr.bf16.mxu1 %v4376_v34 }
 0x65f   : > { %v1731_v9 = vpop.permute.xlu0 %1730 }
 0x660   : > { %v4839_v1 = vpop.eup %4204 }
 0x661   : > { %v4841_v8 = vpop.eup %4206 }
 0x664   : > { %v4843_v11 = vpop.eup %4208  ;;  %3851 = vmatmul.mubr.msk.bf16.vlgmr.msra.gmra.mrb[20].mxu1 %vm1194_vm8, %v1731_v9 }
 0x665   : > { %v4846_v12 = vpop.eup %4210  ;;  %v1601_v13 = vpack.c.bf16 %v4843_v11, %v4839_v1  ;;  %3862 = vmatprep.mubr.msk.bf16.mxu1 %vm4377_vm1, %v4376_v34 }
 0x666   : > { %v1602_v18 = vpack.c.bf16 %v4846_v12, %v4841_v8 }
 0x668   : > { %3835 = vmatmul.mubr.msk.bf16.vlgmr.msra.gmra.mrb[16].mxu0 %vm1296_vm10, %v1602_v18 }
 0x669   : > { %3839 = vmatpush3.bf16.msra.mxu0 %v1660_v39  ;;  %3842 = vmatprep.mubr.msk.bf16.mxu0 %vm4377_vm1, %v4376_v34  ;;  %v4094_v39 = vld [vmem:[#allocation4 + $0x10] ss:$0 sps:$4 sm:$0x11]  }
 0x66a   : > { %3840 = vmatprep.subr.bf16.mxu0 %v4376_v34 }
 0x66d   : > { %3841 = vmatpush3.bf16.msra.mxu0 %v1668_v19 }
 0x66e   : > { %3854 = vmatprep.subr.bf16.mxu0 %v4376_v34 }
 0x674   : > { %3843 = vmatmul.mubr.msk.bf16.vlgmr.msra.gmra.mrb[16].mxu0 %vm1289_vm9, %v1601_v13 }
 0x675   : > { %3856 = vmatprep.mubr.msk.bf16.mxu0 %vm4377_vm1, %v4376_v34 }
 0x676   : > { %3855 = vmatpush3.bf16.xpose.msra.mxu0 %v1798_v21 }
 0x677   : > { %3874 = vmatprep.subr.bf16.mxu0 %v4376_v34 }
 0x67d   : > { %3857 = vmatmul.mubr.msk.bf16.vlgmr.msra.gmra.mrb[20].mxu0 %vm1194_vm8, %v1731_v9 }
 0x67e   : > { %3878 = vmatprep.mubr.msk.bf16.mxu0 %vm4377_vm1, %v4376_v34 }
 0x737   : > { %v1787_v22 = vpop.f32.mrb[20].mxu1 }
 0x738   : > { %v3852_v23 = vpop.f32.mrb[21].mxu1  ;;  %v1841_v24 = vsel %vm1289_vm9, %v1787_v22, -inf }
 0x739   : > { %1842 = vmax.xlane.f32.xlu1 %v1841_v24  ;;  %v1790_v25 = vpop.f32.mrb[22].mxu1 }
 0x73a   : > { %v3853_v30 = vpop.f32.mrb[23].mxu1  ;;  %v1844_v35 = vsel %vm1289_vm9, %v1790_v25, -inf }
 0x73b   : > { %1845 = vmax.xlane.f32.xlu0 %v1844_v35 }
 0x747   : > { %v4870_v36 = vpop.f32.mrb[16].mxu0 }
 0x748   : > { %v3844_v37 = vpop.f32.mrb[17].mxu0 }
 0x749   : > { %v4872_v38 = vpop.f32.mrb[18].mxu0 }
 0x74a   : > { %v3845_v42 = vpop.f32.mrb[19].mxu0  ;;  %1884 = vrot.lane.b32.xlu1 %v4758_v31, %s4379_s24 }
 0x74e   : > { %1941 = vrot.lane.b32.xlu1 %v4092_v43, %s4379_s24 }
 0x750   : > { %v1834_v44 = vpop.f32.mrb[20].mxu0 }
 0x751   : > { %v3858_v49 = vpop.f32.mrb[21].mxu0  ;;  %v1847_v50 = vsel %vm1296_vm10, %v1834_v44, -inf }
 0x752   : > { %v1837_v51 = vpop.f32.mrb[22].mxu0  ;;  %1848 = vmax.xlane.f32.xlu0 %v1847_v50  ;;  %2020 = vrot.lane.b32.xlu1 %v4093_v45, %s4380_s15  ;;  %v4096_v50 = vld [vmem:[#allocation4 + $0x4] ss:$8 sps:$4 sm:$0xff]  }
 0x753   : > { %v3859_v53 = vpop.f32.mrb[23].mxu0  ;;  %v1850_v54 = vsel %vm1296_vm10, %v1837_v51, -inf }
 0x756   : > { %1851 = vmax.xlane.f32.xlu0 %v1850_v54  ;;  %2022 = vrot.lane.b32.xlu1 %v4094_v39, %s4380_s15 }
 0x75a   : > { %2010 = vrot.lane.b32.xlu1 %v4745_v61, %s4380_s15 }
 0x76c   : > { %1939 = vrot.lane.b32.xlu0 %v4095_v55, %s4379_s24 }
 0x770   : > { %2075 = vrot.lane.b32.xlu0 %v4754_v28, %s4380_s15 }
 0x7c6   : > { %v1843_v57 = vpop.xlane.xlu1 %1842 }
 0x7c8   : > { %v1846_v61 = vpop.xlane.xlu0 %1845 }
 0x7ca   : > { %v1885_v60 = vpop.permute.xlu1 %1884 }
 0x7cb   : > { %3861 = vmatpush3.bf16.msra.mxu1 %v1885_v60 }
 0x7cc   : > { %3866 = vmatprep.subr.bf16.mxu1 %v4376_v34 }
 0x7ce   : > { %v1942_v63 = vpop.permute.xlu1 %1941 }
 0x7d2   : > { %v2021_v40 = vpop.permute.xlu1 %2020 }
 0x7d3   : > { %v2028_v3 = vsel %vm1194_vm8, %v2021_v40, 0 }
 0x7d4   : > { %3875 = vmatpush3.bf16.xpose.msra.mxu0 %v2028_v3 }
 0x7d5   : > { %3876 = vmatprep.subr.bf16.mxu0 %v4376_v34 }
 0x7d6   : > { %v2023_v7 = vpop.permute.xlu1 %2022 }
 0x7d7   : > { %v2031_v10 = vsel %vm1194_vm8, %v2023_v7, 0 }
 0x7da   : > { %v2011_v14 = vpop.permute.xlu1 %2010 }
 0x7dc   : > { %3877 = vmatpush3.bf16.xpose.msra.mxu0 %v2031_v10 }
 0x7dd   : > { %3888 = vmatprep.subr.bf16.mxu0 %v4376_v34 }
 0x7df   : > { %v1849_v28 = vpop.xlane.xlu0 %1848 }
 0x7e0   : > { %v1853_v46 = vmax.f32 %v1843_v57, %v1849_v28 }
 0x7e2   : > { %v1855_v15 = vsub.f32 %v1787_v22, %v1853_v46  ;;  %v1861_v16 = vsub.f32 %v1834_v44, %v1853_v46  ;;  %v1590_v46 = vsel %vm1289_vm9, %v4843_v11, 0.0 }
 0x7e3   : > { %v1852_v47 = vpop.xlane.xlu0 %1851  ;;  %3879 = vmatmul.mubr.msk.bf16.vlgmr.msra.gmra.mrb[24].mxu0 %vm1194_vm8, %v2011_v14 }
 0x7e4   : > { %v1857_v52 = vmul.f32 1.442695, %v1855_v15  ;;  %v1854_v56 = vmax.f32 %v1846_v61, %v1852_v47  ;;  %3890 = vmatprep.mubr.msk.bf16.mxu0 %vm4377_vm1, %v4376_v34  ;;  %v1863_v58 = vmul.f32 1.442695, %v1861_v16  ;;  %v1587_v61 = vsel %vm1289_vm9, %v4839_v1, 0.0 }
 0x7e5   : > { %v1596_v1 = vsel %vm1296_vm10, %v4846_v12, 0.0 }
 0x7e6   : > { %v1856_v59 = vsub.f32 %v1790_v25, %v1854_v56  ;;  %v1862_v62 = vsub.f32 %v1837_v51, %v1854_v56  ;;  %4212 = vpow2.f32 %v1857_v52  ;;  %v1948_v25 = vand.u32 %v1942_v63, %v4798_v17  ;;  %v4097_v51 = vld [vmem:[#allocation4 + $0x14] ss:$0 sps:$4 sm:$0x11]  }
 0x7e7   : > { %4214 = vpow2.f32 %v1863_v58  ;;  %v1940_v24 = vpop.permute.xlu0 %1939 }
 0x7e8   : > { %v1859_v9 = vmul.f32 1.442695, %v1856_v59  ;;  %v1865_v13 = vmul.f32 1.442695, %v1862_v62 }
 0x7ea   : > { %4216 = vpow2.f32 %v1859_v9 }
 0x7eb   : > { %4218 = vpow2.f32 %v1865_v13  ;;  %v2076_v30 = vpop.permute.xlu0 %2075 }
 0x7ec   : > { %v2078_v35 = vsel %vm1194_vm8, %v2076_v30, 0 }
 0x7f0   : > { %v4213_v18 = vpop.eup %4212 }
 0x7f1   : > { %v4215_v19 = vpop.eup %4214  ;;  %v1867_v10 = vsel %vm1289_vm9, %v4213_v18, 0.0 }
 0x7f2   : > { %v1873_v28 = vsel %vm1296_vm10, %v4215_v19, 0.0 }
 0x7f4   : > { %v4217_v20 = vpop.eup %4216 }
 0x7f5   : > { %v4219_v21 = vpop.eup %4218  ;;  %v1881_v22 = vpack.c.bf16 %v4217_v20, %v4213_v18  ;;  %v1870_v15 = vsel %vm1289_vm9, %v4217_v20, 0.0 }
 0x7f6   : > { %v1882_v23 = vpack.c.bf16 %v4219_v21, %v4215_v19  ;;  %v1876_v16 = vsel %vm1296_vm10, %v4219_v21, 0.0 }
 0x7f8   : > { %3863 = vmatmul.mubr.msk.bf16.vlgmr.msra.gmra.mrb[24].mxu1 %vm1296_vm10, %v1882_v23 }
 0x7f9   : > { %3867 = vmatpush3.bf16.msra.mxu1 %v1940_v24  ;;  %3870 = vmatprep.mubr.msk.bf16.mxu1 %vm4377_vm1, %v4376_v34 }
 0x7fa   : > { %3868 = vmatprep.subr.bf16.mxu1 %v4376_v34 }
 0x7fd   : > { %3869 = vmatpush3.bf16.msra.mxu1 %v1948_v25 }
 0x7fe   : > { %3882 = vmatprep.subr.bf16.mxu1 %v4376_v34 }
 0x804   : > { %3871 = vmatmul.mubr.msk.bf16.vlgmr.msra.gmra.mrb[24].mxu1 %vm1289_vm9, %v1881_v22 }
 0x805   : > { %3884 = vmatprep.mubr.msk.bf16.mxu1 %vm4377_vm1, %v4376_v34 }
 0x806   : > { %3883 = vmatpush3.bf16.xpose.msra.mxu1 %v2078_v35 }
 0x807   : > { %3902 = vmatprep.subr.bf16.mxu1 %v4376_v34 }
 0x80d   : > { %3885 = vmatmul.mubr.msk.bf16.vlgmr.msra.gmra.mrb[28].mxu1 %vm1194_vm8, %v2011_v14  ;;  %v1593_v14 = vsel %vm1296_vm10, %v4841_v8, 0.0 }
 0x80e   : > { %3918 = vmatprep.mubr.msk.bf16.mxu1 %vm4377_vm1, %v4376_v34 }
 0x8b6   : > { %v2067_v37 = vpop.f32.mrb[24].mxu0 }
 0x8b7   : > { %v3880_v42 = vpop.f32.mrb[25].mxu0  ;;  %v2121_v43 = vsel %vm1289_vm9, %v2067_v37, -inf }
 0x8b8   : > { %v2070_v44 = vpop.f32.mrb[26].mxu0  ;;  %2122 = vmax.xlane.f32.xlu0 %v2121_v43 }
 0x8b9   : > { %v3881_v45 = vpop.f32.mrb[27].mxu0  ;;  %v2124_v49 = vsel %vm1289_vm9, %v2070_v44, -inf }
 0x8ba   : > { %2125 = vmax.xlane.f32.xlu1 %v2124_v49  ;;  %v1317_v45 = vsel %vm1289_vm9, %v4783_v2, 0.0  ;;  %v1326_v2 = vsel %vm1296_vm10, %v4789_v6, 0.0 }
 0x8cb   : > { %2219 = vrot.lane.b32.xlu1 %v4096_v50, %s4380_s15 }
 0x8cf   : > { %2221 = vrot.lane.b32.xlu1 %v4097_v51, %s4380_s15  ;;  %v1323_v51 = vsel %vm1296_vm10, %v4785_v4, 0.0 }
 0x8d7   : > { %v4912_v53 = vpop.f32.mrb[24].mxu1 }
 0x8d8   : > { %v3872_v39 = vpop.f32.mrb[25].mxu1 }
 0x8d9   : > { %v4914_v54 = vpop.f32.mrb[26].mxu1  ;;  %v1320_v39 = vsel %vm1289_vm9, %v4787_v5, 0.0 }
 0x8da   : > { %v3873_v55 = vpop.f32.mrb[27].mxu1 }
 0x8e0   : > { %v2114_v57 = vpop.f32.mrb[28].mxu1 }
 0x8e1   : > { %v3886_v60 = vpop.f32.mrb[29].mxu1  ;;  %v2127_v63 = vsel %vm1296_vm10, %v2114_v57, -inf }
 0x8e2   : > { %2128 = vmax.xlane.f32.xlu0 %v2127_v63  ;;  %v2117_v40 = vpop.f32.mrb[30].mxu1 }
 0x8e3   : > { %v3887_v3 = vpop.f32.mrb[31].mxu1  ;;  %v2130_v7 = vsel %vm1296_vm10, %v2117_v40, -inf }
 0x8e6   : > { %2131 = vmax.xlane.f32.xlu0 %v2130_v7 }
 0x8f3   : > { %1588 = vadd.xlane.f32.xlu1 %v1587_v61 }
 0x8f7   : > { %1868 = vadd.xlane.f32.xlu1 %v1867_v10 }
 0x8fb   : > { %1874 = vadd.xlane.f32.xlu1 %v1873_v28 }
 0x8fc   : > { %2164 = vrot.lane.b32.xlu0 %v4758_v31, %s4380_s15 }
 0x91b   : > { %1591 = vadd.xlane.f32.xlu0 %v1590_v46 }
 0x91f   : > { %1594 = vadd.xlane.f32.xlu0 %v1593_v14 }
 0x923   : > { %1597 = vadd.xlane.f32.xlu0 %v1596_v1 }
 0x927   : > { %1871 = vadd.xlane.f32.xlu0 %v1870_v15 }
 0x92b   : > { %1877 = vadd.xlane.f32.xlu0 %v1876_v16 }
 0x945   : > { %v2123_v47 = vpop.xlane.xlu0 %2122 }
 0x947   : > { %v2126_v58 = vpop.xlane.xlu1 %2125 }
 0x94b   : > { %v2220_v24 = vpop.permute.xlu1 %2219 }
 0x96f   : > { %v2129_v31 = vpop.xlane.xlu0 %2128 }
 0x970   : > { %v2133_v52 = vmax.f32 %v2123_v47, %v2129_v31 }
 0x972   : > { %v2135_v56 = vsub.f32 %v2067_v37, %v2133_v52  ;;  %v2141_v11 = vsub.f32 %v2114_v57, %v2133_v52 }
 0x973   : > { %v2132_v59 = vpop.xlane.xlu0 %2131 }
 0x974   : > { %v2137_v62 = vmul.f32 1.442695, %v2135_v56  ;;  %v2143_v8 = vmul.f32 1.442695, %v2141_v11  ;;  %v2134_v9 = vmax.f32 %v2126_v58, %v2132_v59  ;;  %v4098_v56 = vld [vmem:[%s4545_s12] sm:$0xff]   ;;  %v4101_v11 = vld [vmem:[%s4545_s12 + $0x18] sm:$0xff]  }
 0x975   : > { %3903 = vmatpush3.bf16.msra.mxu1 %v4098_v56 }
 0x976   : > { %4220 = vpow2.f32 %v2137_v62  ;;  %v2136_v13 = vsub.f32 %v2070_v44, %v2134_v9  ;;  %v2142_v12 = vsub.f32 %v2117_v40, %v2134_v9  ;;  %v2222_v44 = vpop.permute.xlu1 %2221  ;;  %3904 = vmatprep.subr.bf16.mxu1 %v4376_v34 }
 0x977   : > { %v2165_v18 = vpop.permute.xlu0 %2164  ;;  %4222 = vpow2.f32 %v2143_v8  ;;  %v2228_v50 = vand.u32 %v2222_v44, %v4798_v17  ;;  %v4105_v44 = vld [vmem:[%s4545_s12 + $0x38] sm:$0xff]  }
 0x978   : > { %v2139_v19 = vmul.f32 1.442695, %v2136_v13  ;;  %v2145_v20 = vmul.f32 1.442695, %v2142_v12  ;;  %3889 = vmatpush3.bf16.msra.mxu0 %v2165_v18 }
 0x979   : > { %3894 = vmatprep.subr.bf16.mxu0 %v4376_v34 }
 0x97a   : > { %4224 = vpow2.f32 %v2139_v19 }
 0x97b   : > { %4226 = vpow2.f32 %v2145_v20 }
 0x980   : > { %v4221_v21 = vpop.eup %4220  ;;  %v1589_v17 = vpop.xlane.xlu1 %1588 }
 0x981   : > { %v2147_v22 = vsel %vm1289_vm9, %v4221_v21, 0.0  ;;  %v4223_v23 = vpop.eup %4222 }
 0x982   : > { %2148 = vadd.xlane.f32.xlu1 %v2147_v22  ;;  %v2153_v35 = vsel %vm1296_vm10, %v4223_v23, 0.0 }
 0x984   : > { %v4225_v25 = vpop.eup %4224  ;;  %v1869_v57 = vpop.xlane.xlu1 %1868 }
 0x985   : > { %v4227_v30 = vpop.eup %4226  ;;  %v2150_v37 = vsel %vm1289_vm9, %v4225_v25, 0.0  ;;  %v2161_v42 = vpack.c.bf16 %v4225_v25, %v4221_v21 }
 0x986   : > { %2154 = vadd.xlane.f32.xlu1 %v2153_v35  ;;  %2151 = vadd.xlane.f32.xlu0 %v2150_v37  ;;  %v2162_v43 = vpack.c.bf16 %v4227_v30, %v4223_v23  ;;  %v2156_v49 = vsel %vm1296_vm10, %v4227_v30, 0.0 }
 0x988   : > { %3891 = vmatmul.mubr.msk.bf16.vlgmr.msra.gmra.mrb[28].mxu0 %vm1296_vm10, %v2162_v43  ;;  %v1875_v3 = vpop.xlane.xlu1 %1874  ;;  %v4104_v43 = vld [vmem:[%s4545_s12 + $0x30] sm:$0xff]  }
 0x989   : > { %3895 = vmatpush3.bf16.msra.mxu0 %v2220_v24  ;;  %3898 = vmatprep.mubr.msk.bf16.mxu0 %vm4377_vm1, %v4376_v34  ;;  %v1879_v7 = vadd.f32 %v1875_v3, %v1869_v57  ;;  %v4265_v3 = vld [vmem:[#allocation2 + $0x8] sm:$0xff] }
 0x98a   : > { %1318 = vadd.xlane.f32.xlu1 %v1317_v45  ;;  %2157 = vadd.xlane.f32.xlu0 %v2156_v49 }
 0x98b   : > { %3896 = vmatprep.subr.bf16.mxu0 %v4376_v34 }
 0x98d   : > { %3897 = vmatpush3.bf16.msra.mxu0 %v2228_v50 }
 0x98e   : > { %1324 = vadd.xlane.f32.xlu1 %v1323_v51  ;;  %1321 = vadd.xlane.f32.xlu0 %v1320_v39 }
 0x992   : > { %1327 = vadd.xlane.f32.xlu0 %v1326_v2 }
 0x994   : > { %3899 = vmatmul.mubr.msk.bf16.vlgmr.msra.gmra.mrb[28].mxu0 %vm1289_vm9, %v2161_v42 }
 0x995   : > { %2649 = vmatprep.mubr.bf16.mxu0 %v4375_v29 }
 0x9a8   : > { %v1592_v55 = vpop.xlane.xlu0 %1591 }
 0x9ac   : > { %v1595_v60 = vpop.xlane.xlu0 %1594 }
 0x9ad   : > { %v1599_v63 = vadd.f32 %v1595_v60, %v1589_v17  ;;  %v4264_v60 = vld [vmem:[#allocation2] sm:$0xff] }
 0x9af   : > { %4228 = vrcp.f32 %v1599_v63 }
 0x9b0   : > { %v1598_v40 = vpop.xlane.xlu0 %1597 }
 0x9b1   : > { %v1600_v4 = vadd.f32 %v1598_v40, %v1592_v55 }
 0x9b3   : > { %4230 = vrcp.f32 %v1600_v4 }
 0x9b4   : > { %v1872_v5 = vpop.xlane.xlu0 %1871  ;;  %4232 = vrcp.f32 %v1879_v7 }
 0x9b8   : > { %v1878_v61 = vpop.xlane.xlu0 %1877 }
 0x9b9   : > { %v1880_v6 = vadd.f32 %v1878_v61, %v1872_v5  ;;  %v4229_v10 = vpop.eup %4228  ;;  %v4106_v61 = vld [vmem:[%s4550_s14] ss:$16 sps:$4 sm:$0xff]  }
 0x9ba   : > { %v1713_v46 = vmul.f32 %v4229_v10, %v4870_v36  ;;  %v4099_v36 = vld [vmem:[%s4545_s12 + $0x8] sm:$0xff]  }
 0x9bb   : > { %4234 = vrcp.f32 %v1880_v6  ;;  %3905 = vmatpush3.bf16.msra.mxu1 %v4099_v36  ;;  %v4108_v6 = vld [vmem:[%s4550_s14 + $0x4] ss:$16 sps:$4 sm:$0xff]   ;;  %v4111_v10 = vld [vmem:[%s4550_s14 + $0xc] ss:$16 sps:$4 sm:$0xff]  }
 0x9bc   : > { %3906 = vmatprep.subr.bf16.mxu1 %v4376_v34  ;;  %2617 = vmatprep.subr.bf16.mxu0 %v4108_v6 }
 0x9bd   : > { %v4231_v28 = vpop.eup %4230  ;;  %2618 = vmatpush1.bf16.msra.mxu0 %v4106_v61 }
 0x9be   : > { %v1714_v14 = vmul.f32 %v4231_v28, %v4872_v38  ;;  %v4233_v15 = vpop.eup %4232  ;;  %v4100_v38 = vld [vmem:[%s4545_s12 + $0x10] sm:$0xff]  }
 0x9bf   : > { %v1993_v47 = vmul.f32 %v4233_v15, %v4912_v53  ;;  %3907 = vmatpush3.bf16.msra.mxu1 %v4100_v38  ;;  %v4102_v53 = vld [vmem:[%s4545_s12 + $0x20] sm:$0xff]  }
 0x9c0   : > { %v1715_v1 = vpack.c.bf16 %v1714_v14, %v1713_v46  ;;  %3908 = vmatprep.subr.bf16.mxu1 %v4376_v34  ;;  %v4114_v28 = vld [vmem:[%s4550_s14 + $0x24] ss:$16 sps:$4 sm:$0xff]   ;;  %v4117_v46 = vld [vmem:[%s4550_s14 + $0x2c] ss:$16 sps:$4 sm:$0xff]   ;;  %v4112_v14 = vld [vmem:[%s4550_s14 + $0x20] ss:$16 sps:$4 sm:$0xff]  }
 0x9c1   : > { %2619 = vmatprep.subr.bf16.mxu0 %v4114_v28  ;;  %v4155_v28 = vld [vmem:[%s4555_s0 + $0xc0] sm:$0xff]  }
 0x9c2   : > { %1717 = vrot.lane.b32.xlu1 %v1715_v1, %s4380_s15  ;;  %v4115_v1 = vld [vmem:[%s4550_s14 + $0x28] ss:$16 sps:$4 sm:$0xff]   ;;  %2620 = vmatpush1.bf16.msra.mxu0 %v4112_v14  ;;  %v4157_v14 = vld [vmem:[%s4555_s0 + $0x80] sm:$0xff]  }
 0x9c3   : > { %3909 = vmatpush3.bf16.msra.mxu1 %v4101_v11  ;;  %v4120_v11 = vld [vmem:[%s4550_s14 + $0x44] ss:$16 sps:$4 sm:$0xff]  }
 0x9c4   : > { %3910 = vmatprep.subr.bf16.mxu1 %v4376_v34  ;;  %2621 = vmatprep.subr.bf16.mxu0 %v4120_v11  ;;  %v4167_v11 = vld [vmem:[%s4555_s0 + $0xd8] sm:$0xff]  }
 0x9c5   : > { %v4235_v16 = vpop.eup %4234 }
 0x9c6   : > { %v1994_v31 = vmul.f32 %v4235_v16, %v4914_v54  ;;  %v4103_v54 = vld [vmem:[%s4545_s12 + $0x28] sm:$0xff]  }
 0x9c7   : > { %3911 = vmatpush3.bf16.msra.mxu1 %v4102_v53  ;;  %v4123_v53 = vld [vmem:[%s4550_s14 + $0x4c] ss:$16 sps:$4 sm:$0xff]  }
 0x9c8   : > { %v1995_v52 = vpack.c.bf16 %v1994_v31, %v1993_v47  ;;  %3912 = vmatprep.subr.bf16.mxu1 %v4376_v34 }
 0x9ca   : > { %1997 = vrot.lane.b32.xlu0 %v1995_v52, %s4379_s24 }
 0x9cb   : > { %3913 = vmatpush3.bf16.msra.mxu1 %v4103_v54  ;;  %v4118_v54 = vld [vmem:[%s4550_s14 + $0x40] ss:$16 sps:$4 sm:$0xff]  }
 0x9cc   : > { %3914 = vmatprep.subr.bf16.mxu1 %v4376_v34  ;;  %2622 = vmatpush1.bf16.msra.mxu0 %v4118_v54  ;;  %v4169_v54 = vld [vmem:[%s4555_s0 + $0x98] sm:$0xff]  }
 0x9cf   : > { %3915 = vmatpush3.bf16.msra.mxu1 %v4104_v43  ;;  %v4148_v43 = vld [vmem:[%s4550_s14 + $0xe0] ss:$16 sps:$4 sm:$0xff]  }
 0x9d0   : > { %3916 = vmatprep.subr.bf16.mxu1 %v4376_v34 }
 0x9d3   : > { %3917 = vmatpush3.bf16.msra.mxu1 %v4105_v44  ;;  %v4151_v44 = vld [vmem:[%s4550_s14 + $0xe8] ss:$16 sps:$4 sm:$0xff]  }
 0x9d4   : > { %2660 = vmatprep.subr.bf16.mxu1 %v4111_v10  ;;  %v4154_v10 = vld [vmem:[%s4555_s0 + $0x40] sm:$0xff]  }
 0xa0f   : > { %v2149_v58 = vpop.xlane.xlu1 %2148 }
 0xa13   : > { %v2155_v59 = vpop.xlane.xlu1 %2154  ;;  %v2152_v62 = vpop.xlane.xlu0 %2151 }
 0xa14   : > { %v2159_v8 = vadd.f32 %v2155_v59, %v2149_v58  ;;  %v4121_v58 = vld [vmem:[%s4550_s14 + $0x48] ss:$16 sps:$4 sm:$0xff]   ;;  %v4126_v59 = vld [vmem:[%s4550_s14 + $0x64] ss:$16 sps:$4 sm:$0xff]  }
 0xa15   : > { %2623 = vmatprep.subr.bf16.mxu0 %v4126_v59  ;;  %v4171_v59 = vld [vmem:[%s4555_s0 + $0xe0] sm:$0xff]  }
 0xa17   : > { %v1319_v9 = vpop.xlane.xlu1 %1318  ;;  %v2158_v13 = vpop.xlane.xlu0 %2157 }
 0xa18   : > { %v2160_v12 = vadd.f32 %v2158_v13, %v2152_v62  ;;  %v4129_v62 = vld [vmem:[%s4550_s14 + $0x6c] ss:$16 sps:$4 sm:$0xff]   ;;  %v4132_v13 = vld [vmem:[%s4550_s14 + $0x84] ss:$16 sps:$4 sm:$0xff]  }
 0xa1b   : > { %v1325_v18 = vpop.xlane.xlu1 %1324  ;;  %v1322_v19 = vpop.xlane.xlu0 %1321 }
 0xa1c   : > { %v1329_v20 = vadd.f32 %v1325_v18, %v1319_v9  ;;  %v4127_v9 = vld [vmem:[%s4550_s14 + $0x68] ss:$16 sps:$4 sm:$0xff]   ;;  %v4130_v18 = vld [vmem:[%s4550_s14 + $0x80] ss:$16 sps:$4 sm:$0xff]  }
 0xa1e   : > { %4236 = vrcp.f32 %v1329_v20  ;;  %v4138_v20 = vld [vmem:[%s4550_s14 + $0xa4] ss:$16 sps:$4 sm:$0xff]  }
 0xa1f   : > { %v1328_v21 = vpop.xlane.xlu0 %1327 }
 0xa20   : > { %v1330_v22 = vadd.f32 %v1328_v21, %v1322_v19  ;;  %v4133_v19 = vld [vmem:[%s4550_s14 + $0x88] ss:$16 sps:$4 sm:$0xff]   ;;  %v4141_v21 = vld [vmem:[%s4550_s14 + $0xac] ss:$16 sps:$4 sm:$0xff]  }
 0xa22   : > { %4238 = vrcp.f32 %v1330_v22  ;;  %v4136_v22 = vld [vmem:[%s4550_s14 + $0xa0] ss:$16 sps:$4 sm:$0xff]  }
 0xa23   : > { %4240 = vrcp.f32 %v2159_v8  ;;  %v4124_v8 = vld [vmem:[%s4550_s14 + $0x60] ss:$16 sps:$4 sm:$0xff]  }
 0xa24   : > { %4242 = vrcp.f32 %v2160_v12  ;;  %2624 = vmatpush1.bf16.msra.mxu0 %v4124_v8  ;;  %v4135_v12 = vld [vmem:[%s4550_s14 + $0x8c] ss:$16 sps:$4 sm:$0xff]   ;;  %v4173_v8 = vld [vmem:[%s4555_s0 + $0xa0] sm:$0xff]  }
 0xa25   : > { %2625 = vmatprep.subr.bf16.mxu0 %v4132_v13  ;;  %v4175_v13 = vld [vmem:[%s4555_s0 + $0xe8] sm:$0xff]  }
 0xa28   : > { %v4237_v23 = vpop.eup %4236  ;;  %2626 = vmatpush1.bf16.msra.mxu0 %v4130_v18  ;;  %v4177_v18 = vld [vmem:[%s4555_s0 + $0xa8] sm:$0xff]  }
 0xa29   : > { %v1437_v25 = vmul.f32 %v4237_v23, %v4818_v26  ;;  %v4139_v23 = vld [vmem:[%s4550_s14 + $0xa8] ss:$16 sps:$4 sm:$0xff]   ;;  %2627 = vmatprep.subr.bf16.mxu0 %v4138_v20  ;;  %v4179_v20 = vld [vmem:[%s4555_s0 + $0xf0] sm:$0xff]  }
 0xa2c   : > { %v4239_v24 = vpop.eup %4238  ;;  %2628 = vmatpush1.bf16.msra.mxu0 %v4136_v22  ;;  %v4181_v22 = vld [vmem:[%s4555_s0 + $0xb0] sm:$0xff]  }
 0xa2d   : > { %v1438_v30 = vmul.f32 %v4239_v24, %v4820_v33  ;;  %v4241_v45 = vpop.eup %4240  ;;  %v4144_v24 = vld [vmem:[%s4550_s14 + $0xc4] ss:$16 sps:$4 sm:$0xff]  }
 0xa2e   : > { %v4243_v50 = vpop.eup %4242  ;;  %2629 = vmatprep.subr.bf16.mxu0 %v4144_v24  ;;  %v4183_v24 = vld [vmem:[%s4555_s0 + $0xf8] sm:$0xff]  }
 0xa2f   : > { %v1439_v35 = vpack.c.bf16 %v1438_v30, %v1437_v25  ;;  %v4147_v25 = vld [vmem:[%s4550_s14 + $0xcc] ss:$16 sps:$4 sm:$0xff]   ;;  %v4142_v30 = vld [vmem:[%s4550_s14 + $0xc0] ss:$16 sps:$4 sm:$0xff]  }
 0xa30   : > { %2630 = vmatpush1.bf16.msra.mxu0 %v4142_v30  ;;  %v4185_v30 = vld [vmem:[%s4555_s0 + $0xb8] sm:$0xff]  }
 0xa31   : > { %1440 = vst.msk [vmem:[#allocation6] sm:$0xff] %vm1194_vm8, %v1439_v35  ;;  %v4145_v35 = vld [vmem:[%s4550_s14 + $0xc8] ss:$16 sps:$4 sm:$0xff]  }
 0xa34   : > { %v1718_v37 = vpop.permute.xlu1 %1717 }
 0xa35   : > { %1721 = vst.msk [vmem:[#allocation6] sm:$0xff] %vm1720_vm11, %v1718_v37  ;;  %v4150_v37 = vld [vmem:[%s4550_s14 + $0xe4] ss:$16 sps:$4 sm:$0xff]  }
 0xa36   : > { %2631 = vmatprep.subr.bf16.mxu0 %v4150_v37 }
 0xa37   : > { %2632 = vmatpush1.bf16.msra.mxu0 %v4148_v43 }
 0xa38   : > { %3697 = vmatprep.subr.bf16.mxu0 %v4154_v10 }
 0xa3c   : > { %v1998_v42 = vpop.permute.xlu0 %1997 }
 0xa3d   : > { %2001 = vst.msk [vmem:[#allocation6] sm:$0xff] %vm2000_vm12, %v1998_v42  ;;  %v4153_v42 = vld [vmem:[%s4550_s14 + $0xec] ss:$16 sps:$4 sm:$0xff]  }
 0xa67   : > { %v2264_v26 = vpop.f32.mrb[28].mxu0 }
 0xa68   : > { %v2273_v33 = vmul.f32 %v4241_v45, %v2264_v26  ;;  %v3900_v49 = vpop.f32.mrb[29].mxu0 }
 0xa69   : > { %v2267_v51 = vpop.f32.mrb[30].mxu0 }
 0xa6a   : > { %v2274_v39 = vmul.f32 %v4243_v50, %v2267_v51  ;;  %v3901_v2 = vpop.f32.mrb[31].mxu0 }
 0xa6b   : > { %v4266_v2 = vld [vmem:[%s4560_s25] sm:$0xff] }
 0xa6c   : > { %v2275_v17 = vpack.c.bf16 %v2274_v39, %v2273_v33  ;;  %v2414_v39 = vsub.s32 4, %v4705_v27 }
 0xa6e   : > { %2277 = vrot.lane.b32.xlu1 %v2275_v17, %s4378_s19  ;;  %v2415_v17 = vrot.slane %v4266_v2, %v2414_v39 }
 0xae0   : > { %v2278_v55 = vpop.permute.xlu1 %2277 }
 0xae1   : > { %2281 = vst.msk [vmem:[#allocation6] sm:$0xff] %vm2280_vm13, %v2278_v55  ;;  %v2420_v55 = vsub.s32 5, %v4705_v27 }
 0xae8   : > { %v2282_v57 = vld [vmem:[#allocation6] sm:$0xff] }
 0xae9   : > { %3919 = vmatmul.mubr.bf16.vlgmr.msra.gmra.mrb[32].mxu1 %v2282_v57 }
 0xaea   : > { %2692 = vmatprep.mubr.bf16.mxu1 %v4375_v29  ;;  %v4109_v29 = vld [vmem:[%s4550_s14 + $0x8] ss:$16 sps:$4 sm:$0xff]  }
 0xaeb   : > { %2661 = vmatpush1.bf16.msra.mxu1 %v4109_v29 }
 0xaec   : > { %2662 = vmatprep.subr.bf16.mxu1 %v4117_v46  ;;  %v4156_v46 = vld [vmem:[%s4555_s0] sm:$0xff]  }
 0xaef   : > { %2663 = vmatpush1.bf16.msra.mxu1 %v4115_v1  ;;  %v4158_v1 = vld [vmem:[%s4555_s0 + $0x48] sm:$0xff]  }
 0xaf0   : > { %2664 = vmatprep.subr.bf16.mxu1 %v4123_v53  ;;  %v4168_v53 = vld [vmem:[%s4555_s0 + $0x18] sm:$0xff]  }
 0xaf3   : > { %2665 = vmatpush1.bf16.msra.mxu1 %v4121_v58  ;;  %v4170_v58 = vld [vmem:[%s4555_s0 + $0x60] sm:$0xff]  }
 0xaf4   : > { %2666 = vmatprep.subr.bf16.mxu1 %v4129_v62  ;;  %v4172_v62 = vld [vmem:[%s4555_s0 + $0x20] sm:$0xff]  }
 0xaf7   : > { %2667 = vmatpush1.bf16.msra.mxu1 %v4127_v9  ;;  %v4174_v9 = vld [vmem:[%s4555_s0 + $0x68] sm:$0xff]  }
 0xaf8   : > { %2668 = vmatprep.subr.bf16.mxu1 %v4135_v12  ;;  %v4176_v12 = vld [vmem:[%s4555_s0 + $0x28] sm:$0xff]  }
 0xafb   : > { %2669 = vmatpush1.bf16.msra.mxu1 %v4133_v19  ;;  %v4178_v19 = vld [vmem:[%s4555_s0 + $0x70] sm:$0xff]  }
 0xafc   : > { %2670 = vmatprep.subr.bf16.mxu1 %v4141_v21  ;;  %v4180_v21 = vld [vmem:[%s4555_s0 + $0x30] sm:$0xff]  }
 0xaff   : > { %2671 = vmatpush1.bf16.msra.mxu1 %v4139_v23  ;;  %v4182_v23 = vld [vmem:[%s4555_s0 + $0x78] sm:$0xff]  }
 0xb00   : > { %2672 = vmatprep.subr.bf16.mxu1 %v4147_v25  ;;  %v4184_v25 = vld [vmem:[%s4555_s0 + $0x38] sm:$0xff]  }
 0xb03   : > { %2673 = vmatpush1.bf16.msra.mxu1 %v4145_v35 }
 0xb04   : > { %2674 = vmatprep.subr.bf16.mxu1 %v4153_v42 }
 0xb07   : > { %2675 = vmatpush1.bf16.msra.mxu1 %v4151_v44 }
 0xb08   : > { %3719 = vmatprep.subr.bf16.mxu1 %v4155_v28 }
 0xbbc   : > { %v2381_v34 = vpop.f32.mrb[32].mxu1 }
 0xbbd   : > { %v4978_v63 = vadd.f32 %v4264_v60, %v2381_v34  ;;  %v3920_v40 = vpop.f32.mrb[33].mxu1 }
 0xbbe   : > { %v2384_v4 = vpop.f32.mrb[34].mxu1 }
 0xbbf   : > { %v4980_v5 = vadd.f32 %v4265_v3, %v2384_v4  ;;  %2390 = vadd.xlane.f32.xlu1 %v4978_v63  ;;  %v3921_v7 = vpop.f32.mrb[35].mxu1  ;;  %v2421_v3 = vrot.slane %v4266_v2, %v2420_v55 }
 0xbc1   : > { %2392 = vadd.xlane.f32.xlu0 %v4980_v5 }
 0xc4c   : > { %v2391_v15 = vpop.xlane.xlu1 %2390 }
 0xc4d   : > { %v2394_v16 = vmul.f32 0.0078125, %v2391_v15  ;;  %v4159_v15 = vld [vmem:[%s4555_s0 + $0xc8] sm:$0xff]  }
 0xc4e   : > { %v2393_v47 = vpop.xlane.xlu0 %2392 }
 0xc4f   : > { %v4993_v31 = vsub.f32 %v4978_v63, %v2394_v16  ;;  %v2395_v52 = vmul.f32 0.0078125, %v2393_v47  ;;  %v4160_v16 = vld [vmem:[%s4555_s0 + $0x8] sm:$0xff]  }
 0xc50   : > { %v4161_v47 = vld [vmem:[%s4555_s0 + $0x88] sm:$0xff]  }
 0xc51   : > { %v4996_v56 = vsub.f32 %v4980_v5, %v2395_v52  ;;  %v2398_v36 = vmul.f32 %v4993_v31, %v4993_v31  ;;  %v4163_v52 = vld [vmem:[%s4555_s0 + $0xd0] sm:$0xff]  }
 0xc53   : > { %2400 = vadd.xlane.f32.xlu0 %v2398_v36  ;;  %v2399_v38 = vmul.f32 %v4996_v56, %v4996_v56  ;;  %v4165_v36 = vld [vmem:[%s4555_s0 + $0x90] sm:$0xff]  }
 0xc55   : > { %2402 = vadd.xlane.f32.xlu1 %v2399_v38  ;;  %v4166_v38 = vld [vmem:[%s4555_s0 + $0x58] sm:$0xff]  }
 0xce0   : > { %v2401_v45 = vpop.xlane.xlu0 %2400 }
 0xce1   : > { %v2404_v26 = vmul.f32 0.0078125, %v2401_v45 }
 0xce2   : > { %v2403_v33 = vpop.xlane.xlu1 %2402 }
 0xce3   : > { %v2406_v49 = vadd.f32 1e-05, %v2404_v26  ;;  %v2405_v50 = vmul.f32 0.0078125, %v2403_v33 }
 0xce5   : > { %4244 = vrsqrt.f32 %v2406_v49  ;;  %v2407_v51 = vadd.f32 1e-05, %v2405_v50 }
 0xce7   : > { %4246 = vrsqrt.f32 %v2407_v51 }
 0xcef   : > { %v4245_v57 = vpop.eup %4244 }
 0xcf0   : > { %v2410_v34 = vmul.f32 %v4245_v57, %v4993_v31  ;;  %v4162_v31 = vld [vmem:[%s4555_s0 + $0x50] sm:$0xff]  }
 0xcf1   : > { %v4247_v60 = vpop.eup %4246 }
 0xcf2   : > { %v2411_v40 = vmul.f32 %v4247_v60, %v4996_v56  ;;  %v2416_v4 = vmul.f32 %v2415_v17, %v2410_v34  ;;  %v4164_v56 = vld [vmem:[%s4555_s0 + $0x10] sm:$0xff]  }
 0xcf4   : > { %v2417_v7 = vmul.f32 %v2415_v17, %v2411_v40  ;;  %v2422_v61 = vadd.f32 %v2421_v3, %v2416_v4 }
 0xcf6   : > { %v2423_v6 = vadd.f32 %v2421_v3, %v2417_v7 }
 0xcf8   : > { %v2456_v29 = vpack.c.bf16 %v2423_v6, %v2422_v61 }
 0xcfa   : > { %2650 = vmatmul.mubr.bf16.vlgmr.msra.gmra.mrb[32].mxu0 %v2456_v29  ;;  %2693 = vmatmul.mubr.bf16.vlgmr.msra.gmra.mrb[36].mxu1 %v2456_v29 }
 0xcfb   : > { %3698 = vmatpush3.bf16.msra.mxu0 %v4156_v46  ;;  %3720 = vmatpush3.bf16.msra.mxu1 %v4157_v14 }
 0xcfc   : > { %3699 = vmatprep.subr.bf16.mxu0 %v4158_v1  ;;  %3721 = vmatprep.subr.bf16.mxu1 %v4159_v15 }
 0xcff   : > { %3700 = vmatpush3.bf16.msra.mxu0 %v4160_v16  ;;  %3722 = vmatpush3.bf16.msra.mxu1 %v4161_v47 }
 0xd00   : > { %3701 = vmatprep.subr.bf16.mxu0 %v4162_v31  ;;  %3723 = vmatprep.subr.bf16.mxu1 %v4163_v52 }
 0xd03   : > { %3702 = vmatpush3.bf16.msra.mxu0 %v4164_v56  ;;  %3724 = vmatpush3.bf16.msra.mxu1 %v4165_v36 }
 0xd04   : > { %3703 = vmatprep.subr.bf16.mxu0 %v4166_v38  ;;  %3725 = vmatprep.subr.bf16.mxu1 %v4167_v11 }
 0xd07   : > { %3704 = vmatpush3.bf16.msra.mxu0 %v4168_v53  ;;  %3726 = vmatpush3.bf16.msra.mxu1 %v4169_v54 }
 0xd08   : > { %3705 = vmatprep.subr.bf16.mxu0 %v4170_v58  ;;  %3727 = vmatprep.subr.bf16.mxu1 %v4171_v59 }
 0xd0b   : > { %3706 = vmatpush3.bf16.msra.mxu0 %v4172_v62  ;;  %3728 = vmatpush3.bf16.msra.mxu1 %v4173_v8 }
 0xd0c   : > { %3707 = vmatprep.subr.bf16.mxu0 %v4174_v9  ;;  %3729 = vmatprep.subr.bf16.mxu1 %v4175_v13 }
 0xd0f   : > { %3708 = vmatpush3.bf16.msra.mxu0 %v4176_v12  ;;  %3730 = vmatpush3.bf16.msra.mxu1 %v4177_v18 }
 0xd10   : > { %3709 = vmatprep.subr.bf16.mxu0 %v4178_v19  ;;  %3731 = vmatprep.subr.bf16.mxu1 %v4179_v20 }
 0xd13   : > { %3710 = vmatpush3.bf16.msra.mxu0 %v4180_v21  ;;  %3732 = vmatpush3.bf16.msra.mxu1 %v4181_v22 }
 0xd14   : > { %3711 = vmatprep.subr.bf16.mxu0 %v4182_v23  ;;  %3733 = vmatprep.subr.bf16.mxu1 %v4183_v24 }
 0xd17   : > { %3712 = vmatpush3.bf16.msra.mxu0 %v4184_v25  ;;  %3734 = vmatpush3.bf16.msra.mxu1 %v4185_v30 }
 0xdcd   : > { %v2651_v35 = vpop.f32.mrb[32].mxu0  ;;  %v2694_v37 = vpop.f32.mrb[36].mxu1 }
 0xdce   : > { %v2711_v42 = vmul.f32 0.044715, %v2651_v35  ;;  %v2713_v43 = vmul.f32 0.044715, %v2694_v37  ;;  %v5063_v44 = vpop.f32.mrb[33].mxu0  ;;  %v5065_v45 = vpop.f32.mrb[37].mxu1 }
 0xdcf   : > { %v2712_v49 = vmul.f32 0.044715, %v5063_v44  ;;  %v2714_v50 = vmul.f32 0.044715, %v5065_v45  ;;  %v2655_v51 = vpop.f32.mrb[34].mxu0  ;;  %v2698_v39 = vpop.f32.mrb[38].mxu1 }
 0xdd0   : > { %v2719_v26 = vmul.f32 %v2711_v42, %v2651_v35  ;;  %v2721_v33 = vmul.f32 %v2713_v43, %v2694_v37  ;;  %v2715_v2 = vmul.f32 0.044715, %v2655_v51  ;;  %v2717_v17 = vmul.f32 0.044715, %v2698_v39  ;;  %v2657_v40 = vpop.f32.mrb[35].mxu0  ;;  %v2700_v4 = vpop.f32.mrb[39].mxu1 }
 0xdd1   : > { %v2720_v34 = vmul.f32 %v2712_v49, %v5063_v44  ;;  %v2722_v60 = vmul.f32 %v2714_v50, %v5065_v45  ;;  %v2716_v61 = vmul.f32 0.044715, %v2657_v40  ;;  %v2718_v6 = vmul.f32 0.044715, %v2700_v4 }
 0xdd2   : > { %v2727_v55 = vmul.f32 %v2719_v26, %v2651_v35  ;;  %v2729_v57 = vmul.f32 %v2721_v33, %v2694_v37  ;;  %v2723_v3 = vmul.f32 %v2715_v2, %v2655_v51  ;;  %v2725_v7 = vmul.f32 %v2717_v17, %v2698_v39 }
 0xdd3   : > { %v2728_v28 = vmul.f32 %v2720_v34, %v5063_v44  ;;  %v2730_v46 = vmul.f32 %v2722_v60, %v5065_v45  ;;  %v2724_v15 = vmul.f32 %v2716_v61, %v2657_v40  ;;  %v2726_v16 = vmul.f32 %v2718_v6, %v2700_v4 }
 0xdd4   : > { %v2735_v29 = vadd.f32 %v2727_v55, %v2651_v35  ;;  %v2737_v10 = vadd.f32 %v2729_v57, %v2694_v37  ;;  %v2731_v14 = vmul.f32 %v2723_v3, %v2655_v51  ;;  %v2733_v1 = vmul.f32 %v2725_v7, %v2698_v39 }
 0xdd5   : > { %v2736_v52 = vadd.f32 %v2728_v28, %v5063_v44  ;;  %v2738_v56 = vadd.f32 %v2730_v46, %v5065_v45  ;;  %v2732_v11 = vmul.f32 %v2724_v15, %v2657_v40  ;;  %v2734_v53 = vmul.f32 %v2726_v16, %v2700_v4 }
 0xdd6   : > { %v2743_v47 = vmul.f32 0.7978846, %v2735_v29  ;;  %v2745_v31 = vmul.f32 0.7978846, %v2737_v10  ;;  %v2739_v36 = vadd.f32 %v2731_v14, %v2655_v51  ;;  %v2741_v38 = vadd.f32 %v2733_v1, %v2698_v39 }
 0xdd7   : > { %v2744_v54 = vmul.f32 0.7978846, %v2736_v52  ;;  %v2746_v58 = vmul.f32 0.7978846, %v2738_v56  ;;  %v2740_v8 = vadd.f32 %v2732_v11, %v2657_v40  ;;  %v2742_v9 = vadd.f32 %v2734_v53, %v2700_v4 }
 0xdd8   : > { %4248 = vtanh.f32 %v2743_v47  ;;  %v2747_v59 = vmul.f32 0.7978846, %v2739_v36  ;;  %v2749_v62 = vmul.f32 0.7978846, %v2741_v38  ;;  %v2703_v24 = vmul.f32 0.5, %v2651_v35 }
 0xdd9   : > { %4250 = vtanh.f32 %v2745_v31  ;;  %v2748_v13 = vmul.f32 0.7978846, %v2740_v8  ;;  %v2750_v12 = vmul.f32 0.7978846, %v2742_v9  ;;  %v2705_v25 = vmul.f32 0.5, %v2694_v37  ;;  %v4268_v9 = vld [vmem:[%s5181_s3 + $0x8] sm:$0xff] (!%p3606_p1)  }
 0xdda   : > { %4252 = vtanh.f32 %v2744_v54  ;;  %v2707_v43 = vmul.f32 0.5, %v2655_v51  ;;  %v2709_v26 = vmul.f32 0.5, %v2698_v39  ;;  %v2704_v2 = vmul.f32 0.5, %v5063_v44 }
 0xddb   : > { %4254 = vtanh.f32 %v2746_v58  ;;  %v2708_v17 = vmul.f32 0.5, %v2657_v40  ;;  %v2706_v3 = vmul.f32 0.5, %v5065_v45  ;;  %v2710_v35 = vmul.f32 0.5, %v2700_v4 }
 0xddc   : > { %4256 = vtanh.f32 %v2747_v59  ;;  %v4381_v8 = vmov (!%p3606_p1), 0.0  }
 0xddd   : > { %4258 = vtanh.f32 %v2749_v62  ;;  %v4267_v62 = vld [vmem:[%s5181_s3] sm:$0xff] (!%p3606_p1)   ;;  %3922 = vmatprep.subr.bf16.mxu0 (!%p3606_p1), %v4381_v8 }
 0xdde   : > { %4260 = vtanh.f32 %v2748_v13  ;;  %v4271_v13 = vld [vmem:[%s5181_s3 + $0x20] sm:$0xff] (!%p3606_p1)  }
 0xddf   : > { %4262 = vtanh.f32 %v2750_v12  ;;  %v4272_v12 = vld [vmem:[%s5181_s3 + $0x28] sm:$0xff] (!%p3606_p1)  }
 0xde2   : > { %v4249_v18 = vpop.eup %4248 }
 0xde3   : > { %v4251_v19 = vpop.eup %4250  ;;  %v2759_v22 = vadd.f32 1.0, %v4249_v18  ;;  %v4273_v18 = vld [vmem:[%s5181_s3 + $0x30] sm:$0xff] (!%p3606_p1)  }
 0xde4   : > { %v4253_v20 = vpop.eup %4252  ;;  %v2761_v30 = vadd.f32 1.0, %v4251_v19  ;;  %v4274_v19 = vld [vmem:[%s5181_s3 + $0x38] sm:$0xff] (!%p3606_p1)  }
 0xde5   : > { %v4255_v21 = vpop.eup %4254  ;;  %v2760_v33 = vadd.f32 1.0, %v4253_v20  ;;  %v2767_v7 = vmul.f32 %v2759_v22, %v2703_v24 }
 0xde6   : > { %v4257_v23 = vpop.eup %4256  ;;  %v2762_v55 = vadd.f32 1.0, %v4255_v21  ;;  %v2769_v6 = vmul.f32 %v2761_v30, %v2705_v25  ;;  %v3145_v21 = vrot.slane (!%p3606_p1), %v4520_v0, %v708_v48 }
 0xde7   : > { %v4259_v42 = vpop.eup %4258  ;;  %v2763_v49 = vadd.f32 1.0, %v4257_v23  ;;  %v2768_v51 = vmul.f32 %v2760_v33, %v2704_v2 }
 0xde8   : > { %v4261_v50 = vpop.eup %4260  ;;  %v2765_v57 = vadd.f32 1.0, %v4259_v42  ;;  %v2770_v28 = vmul.f32 %v2762_v55, %v2706_v3 }
 0xde9   : > { %v4263_v34 = vpop.eup %4262  ;;  %v2764_v60 = vadd.f32 1.0, %v4261_v50  ;;  %v2771_v61 = vmul.f32 %v2763_v49, %v2707_v43 }
 0xdea   : > { %v2766_v37 = vadd.f32 1.0, %v4263_v34  ;;  %v2773_v29 = vmul.f32 %v2765_v57, %v2709_v26 }
 0xdeb   : > { %v2772_v39 = vmul.f32 %v2764_v60, %v2708_v17  ;;  %v2839_v10 = vpack.c.bf16 %v2771_v61, %v2767_v7  ;;  %v3260_v61 = vrot.slane (!%p3606_p1), %v4520_v0, %v737_v32 }
 0xdec   : > { %v2774_v46 = vmul.f32 %v2766_v37, %v2710_v35  ;;  %v2841_v14 = vpack.c.bf16 %v2773_v29, %v2769_v6  ;;  %v3266_v37 = vrot.slane (!%p3606_p1), %v4520_v0, %v743_v41 }
 0xded   : > { %v2840_v44 = vpack.c.bf16 %v2772_v39, %v2768_v51 }
 0xdee   : > { %v2842_v40 = vpack.c.bf16 %v2774_v46, %v2770_v28 }
 0xdef   : > { %3067 = vmatprep.mubr.bf16.mxu0 %v2840_v44 }
 0xdf0   : > { %3108 = vmatprep.mubr.bf16.mxu1 %v2842_v40  ;;  %3068 = vmatmul.mubr.bf16.vlgmr.msra.gmra.mrb[36].mxu0 %v2839_v10 }
 0xdf1   : > { %3109 = vmatmul.mubr.bf16.vlgmr.msra.gmra.mrb[40].mxu1 %v2841_v14  ;;  %3923 = vmatpush3.bf16.msra.mxu0 (!%p3606_p1), %v4267_v62 }
 0xdf2   : > { %3938 = vmatprep.mubr.msk.bf16.mxu0 (!%p3606_p1), %vm4382_vm14, %v4381_v8  ;;  %3924 = vmatprep.subr.bf16.mxu0 (!%p3606_p1), %v4381_v8 }
 0xdf5   : > { %3925 = vmatpush3.bf16.msra.mxu0 (!%p3606_p1), %v4268_v9 }
 0xdf6   : > { %3926 = vmatprep.subr.bf16.mxu0 (!%p3606_p1), %v4381_v8 }
 0xec3   : > { %v3713_v1 = vpop.f32.mrb[36].mxu0 }
 0xec4   : > { %v3735_v45 = vpop.f32.mrb[40].mxu1  ;;  %v3714_v15 = vpop.f32.mrb[37].mxu0 }
 0xec5   : > { %v3715_v16 = vadd.f32 %v3714_v15, %v3713_v1  ;;  %v3736_v4 = vpop.f32.mrb[41].mxu1  ;;  %v3716_v47 = vpop.f32.mrb[38].mxu0 }
 0xec6   : > { %v3737_v31 = vadd.f32 %v3736_v4, %v3735_v45  ;;  %v3738_v52 = vpop.f32.mrb[42].mxu1  ;;  %v3717_v56 = vpop.f32.mrb[39].mxu0 }
 0xec7   : > { %v3718_v36 = vadd.f32 %v3717_v56, %v3716_v47  ;;  %v3739_v38 = vpop.f32.mrb[43].mxu1 }
 0xec8   : > { %v3111_v11 = vadd.f32 %v3737_v31, %v3715_v16  ;;  %v3740_v53 = vadd.f32 %v3739_v38, %v3738_v52  ;;  %3124 = sbr.rel (%p3606_p1) target bundleno = 4340 (0x10f4), region = 72 }
 0xeca   : > { %v3117_v54 = vadd.f32 %v3111_v11, %v4978_v63  ;;  %v3114_v58 = vadd.f32 %v3740_v53, %v3718_v36  ;;  %v4269_v63 = vld [vmem:[%s5181_s3 + $0x10] sm:$0xff] (!%p3606_p1)  }
 0xecb   : > { %3927 = vmatpush3.bf16.msra.mxu0 (!%p3606_p1), %v4269_v63 }
 0xecc   : > { %3119 = vst [vmem:[#allocation2] sm:$0xff] %v3117_v54  ;;  %v3118_v59 = vadd.f32 %v3114_v58, %v4980_v5  ;;  %v4270_v5 = vld [vmem:[%s5181_s3 + $0x18] sm:$0xff] (!%p3606_p1)   ;;  %3928 = vmatprep.subr.bf16.mxu0 (!%p3606_p1), %v4381_v8 }
 0xece   : > { %3120 = vst [vmem:[#allocation2 + $0x8] sm:$0xff] %v3118_v59  ;;  %v3141_v20 = vpack.c.bf16 (!%p3606_p1), %v3118_v59, %v3117_v54 }
 0xecf   : > { %3929 = vmatpush3.bf16.msra.mxu0 %v4270_v5 }
 0xed0   : > { %3930 = vmatprep.subr.bf16.mxu0 %v4381_v8 }
 0xed3   : > { %3931 = vmatpush3.bf16.msra.mxu0 %v4271_v13 }
 0xed4   : > { %3932 = vmatprep.subr.bf16.mxu0 %v4381_v8 }
 0xed7   : > { %3933 = vmatpush3.bf16.msra.mxu0 %v4272_v12 }
 0xed8   : > { %3934 = vmatprep.subr.bf16.mxu0 %v4381_v8 }
 0xedb   : > { %3935 = vmatpush3.bf16.msra.mxu0 %v4273_v18 }
 0xedc   : > { %3936 = vmatprep.subr.bf16.mxu0 %v4381_v8 }
 0xedf   : > { %3937 = vmatpush3.bf16.msra.mxu0 %v4274_v19 }
 0xee2   : > { %3939 = vmatmul.mubr.bf16.vlgmr.msra.gmra.mrb[0].mxu0 %v3141_v20 }
 0xfb5   : > { %v3228_v22 = vpop.f32.mrb[0].mxu0 }
 0xfb6   : > { %v3229_v23 = vadd.f32 %v3228_v22, %v3145_v21  ;;  %v3940_v24 = vpop.f32.mrb[1].mxu0 }
 0xfb7   : > { %v3231_v25 = vpop.f32.mrb[2].mxu0 }
 0xfb8   : > { %3235 = vadd.xlane.f32.xlu0 %v3229_v23  ;;  %v3941_v30 = vpop.f32.mrb[3].mxu0  ;;  %v3232_v42 = vadd.f32 %v3231_v25, %v3145_v21 }
 0xfbc   : > { %3237 = vadd.xlane.f32.xlu0 %v3232_v42 }
0x1045   : > { %v3236_v43 = vpop.xlane.xlu0 %3235 }
0x1046   : > { %v3239_v26 = vmul.f32 0.0078125, %v3236_v43 }
0x1048   : > { %v3241_v33 = vsub.f32 %v3229_v23, %v3239_v26 }
0x1049   : > { %v3238_v49 = vpop.xlane.xlu0 %3237 }
0x104a   : > { %v3240_v50 = vmul.f32 0.0078125, %v3238_v49  ;;  %v3243_v2 = vmul.f32 %v3241_v33, %v3241_v33 }
0x104c   : > { %v3242_v17 = vsub.f32 %v3232_v42, %v3240_v50  ;;  %3245 = vadd.xlane.f32.xlu1 %v3243_v2 }
0x104e   : > { %v3244_v55 = vmul.f32 %v3242_v17, %v3242_v17 }
0x1050   : > { %3247 = vadd.xlane.f32.xlu1 %v3244_v55 }
0x10d9   : > { %v3246_v57 = vpop.xlane.xlu1 %3245 }
0x10da   : > { %v3249_v48 = vmul.f32 0.0078125, %v3246_v57 }
0x10dc   : > { %v3251_v34 = vadd.f32 1e-05, %v3249_v48 }
0x10dd   : > { %v3248_v60 = vpop.xlane.xlu1 %3247 }
0x10de   : > { %4275 = vrsqrt.f32 %v3251_v34  ;;  %v3250_v3 = vmul.f32 0.0078125, %v3248_v60 }
0x10e0   : > { %v3252_v7 = vadd.f32 1e-05, %v3250_v3 }
0x10e2   : > { %4277 = vrsqrt.f32 %v3252_v7 }
0x10e8   : > { %v4276_v35 = vpop.eup %4275 }
0x10e9   : > { %v3255_v6 = vmul.f32 %v4276_v35, %v3241_v33 }
0x10eb   : > { %v3261_v29 = vmul.f32 %v3260_v61, %v3255_v6 }
0x10ec   : > { %v4278_v51 = vpop.eup %4277 }
0x10ed   : > { %v3267_v39 = vadd.f32 %v3266_v37, %v3261_v29  ;;  %v3256_v10 = vmul.f32 %v4278_v51, %v3242_v17 }
0x10ef   : > { %3269 = vst [vmem:[%s4562_s4] sm:$0xff] %v3267_v39  ;;  %v3262_v28 = vmul.f32 %v3260_v61, %v3256_v10 }
0x10f1   : > { %v3268_v46 = vadd.f32 %v3266_v37, %v3262_v28 }
0x10f3   : > { %3270 = vst [vmem:[%s4562_s4 + $0x8] sm:$0xff] %v3268_v46 }
0x10f4 PF: > { %s5221_s26 = sld [smem:[#allocation11_spill]]  ;;  %s3628_s24 = sshll.u32 %s4361_s21, 8 }
0x10f5   : > { %s5223_s12 = sld [smem:[#allocation23_spill]]  ;;  %s3285_s25 = sshll.u32 %s4562_s4, 4  ;;  %s5122_s25 = int_to_ptr.vmem [resolvable:$true] %s3285_s25 }
0x10f6   : > { %s4279_s20 = scalar_lea.vmem %s5122_s25, 256  ;;  %s4383_s21 = smov [#allocation7]  }
0x10f7   : > { %p4280_p2 = scmp.ne.s32.totalorder %s5122_s25, %s4279_s20  ;;  %s4283_s16 = sshll.u32 %s4383_s21, 4  ;;  %s4284_s16 = int_to_ptr.vmem [resolvable:$false] %s4283_s16 }
0x10f8   : > { %s4285_s23 = scalar_lea.vmem %s4284_s16, 512  ;;  %p4286_p6 = scmp.lt.s32.totalorder %s5122_s25, %s4284_s16 }
0x10f9   : > { %p4281_p4 = pnand %p4280_p2, %p4495_p3  ;;  %p4287_p7 = scmp.lt.s32.totalorder %s4285_s23, %s4279_s20 }
0x10fa   : > { %s5224_s17 = sand.u32 1, %s5221_s26  }
0x10fb   : > { %s5119_s14 = scalar_lea.hbm %s5223_s12, %s3628_s24  ;;  %s5126_s30 = scalar_lea.sflag [#allocation8], %s5224_s17 }
0x10fc   : > { %p4282_p5 = pneg %p4281_p4  ;;  %p4288_p8 = por %p4287_p7, %p4286_p6 }
0x10fe   : > { %p4289_p10 = pnand %p4288_p8, %p4282_p5 }
0x1100   : > { %4292 = shalt.err (!%p4289_p10)
}
0x1101   : > { %s4293_s4 = scalar_lea.hbm %s5119_s14, 256  ;;  %s4297_s13 = scalar_lea.hbm %s5223_s12, 512 }
0x1102   : > { %p4294_p11 = scmp.ne.s32.totalorder %s5119_s14, %s4293_s4  ;;  %p4298_p0 = scmp.lt.u32.totalorder %s5119_s14, %s5223_s12 }
0x1103   : > { %p4299_p1 = scmp.lt.u32.totalorder %s4297_s13, %s4293_s4  ;;  %p4301_p4 = scmp.lt.u32.totalorder %s4293_s4, %s5119_s14 }
0x1104   : > { %p4295_p12 = pnand %p4294_p11, %p4495_p3 }
0x1105   : > { %p4300_p2 = por %p4299_p1, %p4298_p0 }
0x1106   : > { %p4296_p13 = pneg %p4295_p12 }
0x1107   : > { %p4302_p5 = por %p4301_p4, %p4300_p2 }
0x1109   : > { %p4303_p6 = pnand %p4302_p5, %p4296_p13 }
0x110b   : > { %4306 = shalt.err (!%p4303_p6)
}
0x110c   : > { %s4384_s28 = smov 128   ;;  %s4385_s18 = smov 8  }
0x110d   : > { %3959 = dma.vmem_to_hbm [thread:$0]  (%p4495_p3), %s5122_s25, 256, %s5119_s14, %s5126_s30, %s4384_s28, %s4384_s28, %s4385_s18  }
0x110e PF: > { %s5225_s26 = sld [smem:[#allocation15_spill]]  ;;  %s5226_s24 = sld [smem:[#allocation10_spill]] }
0x1114   : > { %p3965_p7 = scmp.ge.s32.totalorder %s5225_s26, 2  ;;  %s3300_s0 = sand.u32 1, %s5226_s24  }
0x1115   : > { %s3301_s17 = scalar_lea.sflag [#allocation8], %s3300_s0 }
0x1116   : > { %p3962_p8 = pnand %p3965_p7, %p4505_p9 }
0x1118   : > { %4340 = dma.done.wait (!%p3962_p8), %s3301_s17, 256  }
0x1119   : > { %4342 = vsyncadd (!%p3962_p8), %s3301_s17, 4294967040  ;;  %s24_s24 = sadd.s32 1, %s5225_s26   ;;  %s5228_s17 = sld [smem:[#allocation11_spill]] }
0x111a   : > { %p21_p10 = scmp.ge.s32.totalorder %s24_s24, 6   ;;  %s5229_s18 = sld [smem:[#allocation12_spill]] }
0x111b   : > { %s5230_s19 = sld [smem:[#allocation20_spill]]  ;;  %s5231_s20 = sld [smem:[#allocation13_spill]] }
0x111c   : > { %s5232_s21 = sld [smem:[#allocation14_spill]]  ;;  %s5233_s22 = sld [smem:[#allocation16_spill]] }
0x111d   : > { %s5234_s23 = sld [smem:[#allocation18_spill]]  ;;  %23 = sbr.rel (!%p21_p10) target bundleno = 9 (0x9), region = 125 }
0x1124   :  { %3306 = vsyncpa [#allocation8], 1 }
0x1125   :  { %3308 = vsyncpa [#allocation8 + $0x1], 1 }

</bundles_post_ra>
